<compile_context>
chip_gen: v6e
topology: v6e:2x2x1
jax: 0.10.0
libtpu: 0.0.40
codegen_flags: <defaults>
</compile_context>

<pallas_src>
import jax
import jax.numpy as jnp
from jax.experimental import pallas as pl
from jax.experimental.pallas import tpu as pltpu

# Logical (PyTorch) dims.
D_IN, D1, D2, D3, D_OUT = 40, 512, 786, 1024, 54
# Lane-padded dims used inside the kernel.
D_IN_PAD = 128    # 1 * 128
D2_PAD = 896      # 7 * 128
D_OUT_PAD = 128   # 1 * 128


def _decoder_kernel(x_ref,
                    w1_ref, b1_ref,
                    w2_ref, b2_ref,
                    w3_ref, b3_ref,
                    w4_ref, b4_ref,
                    o_ref):
    # fc1 + relu  (bf16 MXU operands, f32 accumulation, f32 elementwise)
    h = jnp.dot(x_ref[...], w1_ref[...], preferred_element_type=jnp.float32)
    h = jnp.maximum(h + b1_ref[...], 0.0)
    # fc2 + relu
    h = jnp.dot(h.astype(jnp.bfloat16), w2_ref[...],
                preferred_element_type=jnp.float32)
    h = jnp.maximum(h + b2_ref[...], 0.0)
    # fc3 + relu
    h = jnp.dot(h.astype(jnp.bfloat16), w3_ref[...],
                preferred_element_type=jnp.float32)
    h = jnp.maximum(h + b3_ref[...], 0.0)
    # fc4 (no activation)
    h = jnp.dot(h.astype(jnp.bfloat16), w4_ref[...],
                preferred_element_type=jnp.float32)
    o_ref[...] = (h + b4_ref[...]).astype(o_ref.dtype)


def init_params(key):
    """Deterministic Kaiming-uniform-style init, matching nn.Linear math.

    Weights are stored pre-transposed as (in_features, out_features), f32."""
    dims = [(D_IN, D1), (D1, D2), (D2, D3), (D3, D_OUT)]
    params = []
    for i, (din, dout) in enumerate(dims):
        kw, kb = jax.random.split(jax.random.fold_in(key, i))
        bound = 1.0 / jnp.sqrt(din)
        w = jax.random.uniform(kw, (din, dout), jnp.float32, -bound, bound)
        b = jax.random.uniform(kb, (1, dout), jnp.float32, -bound, bound)
        params.append((w, b))
    return params


def prepare_params(params):
    """One-time prep: zero-pad ragged dims to multiples of 128 and cast
    weights to bf16 (biases stay f32).  The zero padding is numerically
    inert; only the bf16 cast changes values (validated vs. f32 ref)."""
    (w1, b1), (w2, b2), (w3, b3), (w4, b4) = params

    # fc1: pad input rows 40 -> 128 (fed by zero-padded x columns)
    w1p = jnp.pad(w1, ((0, D_IN_PAD - D_IN), (0, 0)))
    # fc2: pad output columns 786 -> 896
    w2p = jnp.pad(w2, ((0, 0), (0, D2_PAD - D2)))
    b2p = jnp.pad(b2, ((0, 0), (0, D2_PAD - D2)))
    # fc3: pad input rows 786 -> 896 (zero rows, fed by zero activations);
    # its bias (1024 cols) needs no padding.
    w3p = jnp.pad(w3, ((0, D2_PAD - D2), (0, 0)))
    # fc4: pad output columns 54 -> 128 (sliced off in the wrapper)
    w4p = jnp.pad(w4, ((0, 0), (0, D_OUT_PAD - D_OUT)))
    b4p = jnp.pad(b4, ((0, 0), (0, D_OUT_PAD - D_OUT)))

    bf16 = jnp.bfloat16
    return ((w1p.astype(bf16), b1),
            (w2p.astype(bf16), b2p),
            (w3p.astype(bf16), b3),
            (w4p.astype(bf16), b4p))


def decoder_forward(x, prepared_params):
    """x: (B, 40) float32 -> (B, 6, 3, 3) float32."""
    (w1, b1), (w2, b2), (w3, b3), (w4, b4) = prepared_params
    B = x.shape[0]

    # Batch tile: for large B use up to 1024 rows but always keep >= 2 grid
    # steps so v7x's dual TensorCores can split the parallel axis; for small
    # B use a single tile rounded to a multiple of 16 (bf16 sublane packing).
    if B >= 256:
        half = pl.cdiv(B, 2)
        tile_m = min(1024, pl.cdiv(half, 128) * 128)
    else:
        tile_m = max(16, pl.cdiv(B, 16) * 16)
    b_pad = pl.cdiv(B, tile_m) * tile_m
    grid_m = b_pad // tile_m

    # Cast activations to bf16 and zero-pad features 40 -> 128 and rows to
    # the tile boundary (padded rows are sliced off after the call).
    x = x.astype(jnp.bfloat16)
    x = jnp.pad(x, ((0, b_pad - B), (0, D_IN_PAD - D_IN)))

    # Weights/biases: constant index_map -> VMEM-resident across batch tiles;
    # single-buffered since the block index never changes.
    def const(shape):
        return pl.BlockSpec(shape, lambda i: tuple(0 for _ in shape),
                            pipeline_mode=pl.Buffered(1))

    out = pl.pallas_call(
        _decoder_kernel,
        out_shape=jax.ShapeDtypeStruct((b_pad, D_OUT_PAD), jnp.float32),
        grid=(grid_m,),
        in_specs=[
            pl.BlockSpec((tile_m, D_IN_PAD), lambda i: (i, 0)),
            const((D_IN_PAD, D1)), const((1, D1)),
            const((D1, D2_PAD)), const((1, D2_PAD)),
            const((D2_PAD, D3)), const((1, D3)),
            const((D3, D_OUT_PAD)), const((1, D_OUT_PAD)),
        ],
        out_specs=pl.BlockSpec((tile_m, D_OUT_PAD), lambda i: (i, 0)),
        compiler_params=pltpu.CompilerParams(
            dimension_semantics=("parallel",),
            vmem_limit_bytes=32 << 20,
        ),
    )(x, w1, b1, w2, b2, w3, b3, w4, b4)

    # Drop batch/output padding, then match PyTorch's out.view(-1, 6, 3, 3).
    return out[:B, :D_OUT].reshape(-1, 6, 3, 3)


def _reference_forward(x, params):
    """Pure-JAX f32 reference matching the PyTorch module."""
    (w1, b1), (w2, b2), (w3, b3), (w4, b4) = params
    h = jnp.maximum(x @ w1 + b1, 0.0)
    h = jnp.maximum(h @ w2 + b2, 0.0)
    h = jnp.maximum(h @ w3 + b3, 0.0)
    h = h @ w4 + b4
    return h.reshape(-1, 6, 3, 3)


if __name__ == "__main__":
    key = jax.random.PRNGKey(0)
    k_x, k_p = jax.random.split(key)

    B = 8
    x = jax.random.normal(k_x, (B, D_IN), jnp.float32)
    params = init_params(k_p)
    prepared = prepare_params(params)

    out = decoder_forward(x, prepared)
    jax.block_until_ready(out)

    assert out.shape == (B, 6, 3, 3), out.shape
    assert out.dtype == jnp.float32, out.dtype

    # Tolerance check vs. the f32 reference (bf16 weights/activations).
    ref = _reference_forward(x, params)
    assert jnp.allclose(out, ref, rtol=5e-2, atol=5e-2), (
        float(jnp.max(jnp.abs(out - ref))))

    print("KERNEL_OK")
</pallas_src>

<mosaic_0001>
module attributes {stable_mosaic.version = 11 : i64} {
  func.func @_decoder_kernel(%arg0: i32, %arg1: memref<16x128xbf16, #tpu.memory_space<vmem>>, %arg2: memref<128x512xbf16, #tpu.memory_space<vmem>>, %arg3: memref<1x512xf32, #tpu.memory_space<vmem>>, %arg4: memref<512x896xbf16, #tpu.memory_space<vmem>>, %arg5: memref<1x896xf32, #tpu.memory_space<vmem>>, %arg6: memref<896x1024xbf16, #tpu.memory_space<vmem>>, %arg7: memref<1x1024xf32, #tpu.memory_space<vmem>>, %arg8: memref<1024x128xbf16, #tpu.memory_space<vmem>>, %arg9: memref<1x128xf32, #tpu.memory_space<vmem>>, %arg10: memref<16x128xf32, #tpu.memory_space<vmem>>) attributes {dimension_semantics = [#tpu.dimension_semantics<parallel>], iteration_bounds = array<i64: 1>, scalar_prefetch = 0 : i64, scratch_operands = 0 : i64, tpu.core_type = #tpu.core_type<tc>, window_params = [{transform_indices = @transform_0, window_bounds = array<i64: 16, 128>}, {pipeline_mode = #tpu.pipeline_mode<synchronous>, transform_indices = @transform_1, window_bounds = array<i64: 128, 512>}, {pipeline_mode = #tpu.pipeline_mode<synchronous>, transform_indices = @transform_2, window_bounds = array<i64: 1, 512>}, {pipeline_mode = #tpu.pipeline_mode<synchronous>, transform_indices = @transform_3, window_bounds = array<i64: 512, 896>}, {pipeline_mode = #tpu.pipeline_mode<synchronous>, transform_indices = @transform_4, window_bounds = array<i64: 1, 896>}, {pipeline_mode = #tpu.pipeline_mode<synchronous>, transform_indices = @transform_5, window_bounds = array<i64: 896, 1024>}, {pipeline_mode = #tpu.pipeline_mode<synchronous>, transform_indices = @transform_6, window_bounds = array<i64: 1, 1024>}, {pipeline_mode = #tpu.pipeline_mode<synchronous>, transform_indices = @transform_7, window_bounds = array<i64: 1024, 128>}, {pipeline_mode = #tpu.pipeline_mode<synchronous>, transform_indices = @transform_8, window_bounds = array<i64: 1, 128>}, {transform_indices = @transform_9, window_bounds = array<i64: 16, 128>}]} {
    %c0 = arith.constant 0 : index
    %c0_0 = arith.constant 0 : index
    %0 = vector.load %arg1[%c0, %c0_0] : memref<16x128xbf16, #tpu.memory_space<vmem>>, vector<16x128xbf16>
    %c0_1 = arith.constant 0 : index
    %c0_2 = arith.constant 0 : index
    %1 = vector.load %arg2[%c0_1, %c0_2] : memref<128x512xbf16, #tpu.memory_space<vmem>>, vector<128x512xbf16>
    %cst = arith.constant dense<0.000000e+00> : vector<16x512xf32>
    %2 = tpu.matmul %0, %1, %cst {dimension_numbers = #tpu.dot_dimension_numbers<[1], [0], [0], [1], [0, 0, 1, 1], [], []>} : vector<16x128xbf16>, vector<128x512xbf16>, vector<16x512xf32> -> vector<16x512xf32>
    %c0_3 = arith.constant 0 : index
    %c0_4 = arith.constant 0 : index
    %3 = vector.load %arg3[%c0_3, %c0_4] : memref<1x512xf32, #tpu.memory_space<vmem>>, vector<1x512xf32>
    %4 = vector.broadcast %3 : vector<1x512xf32> to vector<16x512xf32>
    %5 = arith.addf %2, %4 : vector<16x512xf32>
    %cst_5 = arith.constant 0.000000e+00 : f32
    %6 = vector.broadcast %cst_5 : f32 to vector<16x512xf32>
    %7 = arith.maximumf %5, %6 : vector<16x512xf32>
    %8 = arith.truncf %7 : vector<16x512xf32> to vector<16x512xbf16>
    %c0_6 = arith.constant 0 : index
    %c0_7 = arith.constant 0 : index
    %9 = vector.load %arg4[%c0_6, %c0_7] : memref<512x896xbf16, #tpu.memory_space<vmem>>, vector<512x896xbf16>
    %cst_8 = arith.constant dense<0.000000e+00> : vector<16x896xf32>
    %10 = tpu.matmul %8, %9, %cst_8 {dimension_numbers = #tpu.dot_dimension_numbers<[1], [0], [0], [1], [0, 0, 1, 1], [], []>} : vector<16x512xbf16>, vector<512x896xbf16>, vector<16x896xf32> -> vector<16x896xf32>
    %c0_9 = arith.constant 0 : index
    %c0_10 = arith.constant 0 : index
    %11 = vector.load %arg5[%c0_9, %c0_10] : memref<1x896xf32, #tpu.memory_space<vmem>>, vector<1x896xf32>
    %12 = vector.broadcast %11 : vector<1x896xf32> to vector<16x896xf32>
    %13 = arith.addf %10, %12 : vector<16x896xf32>
    %cst_11 = arith.constant 0.000000e+00 : f32
    %14 = vector.broadcast %cst_11 : f32 to vector<16x896xf32>
    %15 = arith.maximumf %13, %14 : vector<16x896xf32>
    %16 = arith.truncf %15 : vector<16x896xf32> to vector<16x896xbf16>
    %c0_12 = arith.constant 0 : index
    %c0_13 = arith.constant 0 : index
    %17 = vector.load %arg6[%c0_12, %c0_13] : memref<896x1024xbf16, #tpu.memory_space<vmem>>, vector<896x1024xbf16>
    %cst_14 = arith.constant dense<0.000000e+00> : vector<16x1024xf32>
    %18 = tpu.matmul %16, %17, %cst_14 {dimension_numbers = #tpu.dot_dimension_numbers<[1], [0], [0], [1], [0, 0, 1, 1], [], []>} : vector<16x896xbf16>, vector<896x1024xbf16>, vector<16x1024xf32> -> vector<16x1024xf32>
    %c0_15 = arith.constant 0 : index
    %c0_16 = arith.constant 0 : index
    %19 = vector.load %arg7[%c0_15, %c0_16] : memref<1x1024xf32, #tpu.memory_space<vmem>>, vector<1x1024xf32>
    %20 = vector.broadcast %19 : vector<1x1024xf32> to vector<16x1024xf32>
    %21 = arith.addf %18, %20 : vector<16x1024xf32>
    %cst_17 = arith.constant 0.000000e+00 : f32
    %22 = vector.broadcast %cst_17 : f32 to vector<16x1024xf32>
    %23 = arith.maximumf %21, %22 : vector<16x1024xf32>
    %24 = arith.truncf %23 : vector<16x1024xf32> to vector<16x1024xbf16>
    %c0_18 = arith.constant 0 : index
    %c0_19 = arith.constant 0 : index
    %25 = vector.load %arg8[%c0_18, %c0_19] : memref<1024x128xbf16, #tpu.memory_space<vmem>>, vector<1024x128xbf16>
    %cst_20 = arith.constant dense<0.000000e+00> : vector<16x128xf32>
    %26 = tpu.matmul %24, %25, %cst_20 {dimension_numbers = #tpu.dot_dimension_numbers<[1], [0], [0], [1], [0, 0, 1, 1], [], []>} : vector<16x1024xbf16>, vector<1024x128xbf16>, vector<16x128xf32> -> vector<16x128xf32>
    %c0_21 = arith.constant 0 : index
    %c0_22 = arith.constant 0 : index
    %27 = vector.load %arg9[%c0_21, %c0_22] : memref<1x128xf32, #tpu.memory_space<vmem>>, vector<1x128xf32>
    %28 = vector.broadcast %27 : vector<1x128xf32> to vector<16x128xf32>
    %29 = arith.addf %26, %28 : vector<16x128xf32>
    %c0_23 = arith.constant 0 : index
    %c0_24 = arith.constant 0 : index
    %30 = vector.load %arg10[%c0_23, %c0_24] : memref<16x128xf32, #tpu.memory_space<vmem>>, vector<16x128xf32>
    tpu.vector_store %arg10[%c0_23, %c0_24], %29 {strides = array<i32>} : memref<16x128xf32, #tpu.memory_space<vmem>>, vector<16x128xf32>,
    return
  }
  func.func @transform_0(%arg0: i32) -> (i32, i32) {
    %c0_i32 = arith.constant 0 : i32
    %c0_i32_0 = arith.constant 0 : i32
    return %arg0, %c0_i32 : i32, i32
  }
  func.func @transform_1(%arg0: i32) -> (i32, i32) {
    %c0_i32 = arith.constant 0 : i32
    %c0_i32_0 = arith.constant 0 : i32
    %c0_i32_1 = arith.constant 0 : i32
    return %c0_i32, %c0_i32_0 : i32, i32
  }
  func.func @transform_2(%arg0: i32) -> (i32, i32) {
    %c0_i32 = arith.constant 0 : i32
    %c0_i32_0 = arith.constant 0 : i32
    %c0_i32_1 = arith.constant 0 : i32
    return %c0_i32, %c0_i32_0 : i32, i32
  }
  func.func @transform_3(%arg0: i32) -> (i32, i32) {
    %c0_i32 = arith.constant 0 : i32
    %c0_i32_0 = arith.constant 0 : i32
    %c0_i32_1 = arith.constant 0 : i32
    return %c0_i32, %c0_i32_0 : i32, i32
  }
  func.func @transform_4(%arg0: i32) -> (i32, i32) {
    %c0_i32 = arith.constant 0 : i32
    %c0_i32_0 = arith.constant 0 : i32
    %c0_i32_1 = arith.constant 0 : i32
    return %c0_i32, %c0_i32_0 : i32, i32
  }
  func.func @transform_5(%arg0: i32) -> (i32, i32) {
    %c0_i32 = arith.constant 0 : i32
    %c0_i32_0 = arith.constant 0 : i32
    %c0_i32_1 = arith.constant 0 : i32
    return %c0_i32, %c0_i32_0 : i32, i32
  }
  func.func @transform_6(%arg0: i32) -> (i32, i32) {
    %c0_i32 = arith.constant 0 : i32
    %c0_i32_0 = arith.constant 0 : i32
    %c0_i32_1 = arith.constant 0 : i32
    return %c0_i32, %c0_i32_0 : i32, i32
  }
  func.func @transform_7(%arg0: i32) -> (i32, i32) {
    %c0_i32 = arith.constant 0 : i32
    %c0_i32_0 = arith.constant 0 : i32
    %c0_i32_1 = arith.constant 0 : i32
    return %c0_i32, %c0_i32_0 : i32, i32
  }
  func.func @transform_8(%arg0: i32) -> (i32, i32) {
    %c0_i32 = arith.constant 0 : i32
    %c0_i32_0 = arith.constant 0 : i32
    %c0_i32_1 = arith.constant 0 : i32
    return %c0_i32, %c0_i32_0 : i32, i32
  }
  func.func @transform_9(%arg0: i32) -> (i32, i32) {
    %c0_i32 = arith.constant 0 : i32
    %c0_i32_0 = arith.constant 0 : i32
    return %arg0, %c0_i32 : i32, i32
  }
}

</mosaic_0001>

<bundles_post_ra>
// kernel: tpu_custom_call.1
= control target key start
LH: loop header
LB: loop body
LE: loop exit
PB: predicated region body
PF: predicated region fallthrough
CT: control target
= control target key end

     0   :  { %14 = vsyncpa [#allocation3], 0  ;;  %s8320_s0 = inlined_call_operand.hbm [shape: bf16[16,128], index: 0, kind: input, shape index: {}]   ;;  %s8321_s1 = inlined_call_operand.hbm [shape: bf16[128,512], index: 1, kind: input, shape index: {}]   ;;  %s8322_s2 = inlined_call_operand.hbm [shape: f32[1,512], index: 2, kind: input, shape index: {}]   ;;  %s8323_s3 = inlined_call_operand.hbm [shape: bf16[512,896], index: 3, kind: input, shape index: {}]   ;;  %s8324_s4 = inlined_call_operand.hbm [shape: f32[1,896], index: 4, kind: input, shape index: {}]   ;;  %s8325_s5 = inlined_call_operand.hbm [shape: bf16[896,1024], index: 5, kind: input, shape index: {}]   ;;  %s8326_s6 = inlined_call_operand.hbm [shape: f32[1,1024], index: 6, kind: input, shape index: {}]   ;;  %s8327_s7 = inlined_call_operand.hbm [shape: bf16[1024,128], index: 7, kind: input, shape index: {}]   ;;  %s8328_s8 = inlined_call_operand.hbm [shape: f32[1,128], index: 8, kind: input, shape index: {}]   ;;  %s8329_s9 = inlined_call_operand.hbm [shape: f32[16,128], index: 9, kind: output, shape index: {}]  }
   0x1   :  { %15 = vsyncpa [#allocation6], 0 }
   0x2   :  { %16 = vsyncpa [#allocation9], 0 }
   0x3   :  { %17 = vsyncpa [#allocation12], 0 }
   0x4   :  { %18 = vsyncpa [#allocation15], 0 }
   0x5   :  { %19 = vsyncpa [#allocation4], 0  ;;  %s7990_s30 = smov [#allocation5]  }
   0x6   :  { %s37_s10 = sshll.u32 %s7990_s30, 4  ;;  %s38_s10 = int_to_ptr.vmem [resolvable:$true] %s37_s10 }
   0x7   :  { %s7786_s11 = scalar_lea.vmem %s38_s10, 4096  ;;  %p7791_p1 = scmp.lt.s32.totalorder %s38_s10, %s38_s10 }
   0x8   :  { %p7787_p0 = scmp.ne.s32.totalorder %s38_s10, %s7786_s11  ;;  %p7792_p2 = scmp.lt.s32.totalorder %s7786_s11, %s7786_s11 }
   0xa   :  { %p7793_p3 = por %p7792_p2, %p7791_p1 }
   0xc   :  { %p7794_p4 = pnand %p7793_p3, %p7787_p0 }
   0xe   :  { %7797 = shalt.err (!%p7794_p4)
}
   0xf   :  { %s7991_s12 = smov 256   ;;  %s7992_s13 = smov 16  }
  0x10   :  { %43 = dma.hbm_to_vmem [thread:$0]  %s8321_s1, 4096, %s38_s10, [#allocation6], %s7991_s12, %s7991_s12, %s7992_s13  }
  0x11   :  { %s7993_s16 = smov [#allocation8]  }
  0x12   :  { %s59_s17 = sshll.u32 %s7993_s16, 4  ;;  %s60_s17 = int_to_ptr.vmem [resolvable:$true] %s59_s17 }
  0x13   :  { %s7806_s18 = scalar_lea.vmem %s60_s17, 28672  ;;  %p7811_p6 = scmp.lt.s32.totalorder %s60_s17, %s60_s17 }
  0x14   :  { %p7807_p5 = scmp.ne.s32.totalorder %s60_s17, %s7806_s18  ;;  %p7812_p7 = scmp.lt.s32.totalorder %s7806_s18, %s7806_s18 }
  0x16   :  { %p7813_p8 = por %p7812_p7, %p7811_p6 }
  0x18   :  { %p7814_p9 = pnand %p7813_p8, %p7807_p5 }
  0x1a   :  { %7817 = shalt.err (!%p7814_p9)
}
  0x1b   :  { %s7994_s19 = smov 448   ;;  %s7995_s20 = smov 28  }
  0x1c   :  { %65 = dma.hbm_to_vmem [thread:$0]  %s8323_s3, 28672, %s60_s17, [#allocation9], %s7994_s19, %s7994_s19, %s7995_s20  }
  0x1d   :  { %s7996_s23 = smov [#allocation11]  }
  0x1e   :  { %s81_s24 = sshll.u32 %s7996_s23, 4  ;;  %s82_s24 = int_to_ptr.vmem [resolvable:$true] %s81_s24 }
  0x1f   :  { %s7826_s1 = scalar_lea.vmem %s82_s24, 57344  ;;  %p7831_p11 = scmp.lt.s32.totalorder %s82_s24, %s82_s24 }
  0x20   :  { %p7827_p10 = scmp.ne.s32.totalorder %s82_s24, %s7826_s1  ;;  %p7832_p12 = scmp.lt.s32.totalorder %s7826_s1, %s7826_s1 }
  0x22   :  { %p7833_p13 = por %p7832_p12, %p7831_p11 }
  0x24   :  { %p7834_p0 = pnand %p7833_p13, %p7827_p10 }
  0x26   :  { %7837 = shalt.err (!%p7834_p0)
}
  0x27   :  { %s7997_s25 = smov 512   ;;  %s7998_s26 = smov 32  }
  0x28   :  { %87 = dma.hbm_to_vmem [thread:$0]  %s8325_s5, 57344, %s82_s24, [#allocation12], %s7997_s25, %s7997_s25, %s7998_s26  }
  0x29   :  { %s7999_s29 = smov [#allocation14]   ;;  %s8000_s3 = smov [#allocation2]  }
  0x2a   :  { %s103_s30 = sshll.u32 %s7999_s29, 4  ;;  %s25_s10 = sshll.u32 %s8000_s3, 4  ;;  %s104_s30 = int_to_ptr.vmem [resolvable:$true] %s103_s30  ;;  %s26_s10 = int_to_ptr.vmem [resolvable:$true] %s25_s10 }
  0x2b   :  { %s7846_s11 = scalar_lea.vmem %s104_s30, 8192  ;;  %p7851_p2 = scmp.lt.s32.totalorder %s104_s30, %s104_s30 }
  0x2c   :  { %p7847_p1 = scmp.ne.s32.totalorder %s104_s30, %s7846_s11  ;;  %p7852_p3 = scmp.lt.s32.totalorder %s7846_s11, %s7846_s11 }
  0x2e   :  { %p7853_p4 = por %p7852_p3, %p7851_p2 }
  0x30   :  { %p7854_p5 = pnand %p7853_p4, %p7847_p1 }
  0x32   :  { %7857 = shalt.err (!%p7854_p5)
}
  0x33   :  { %s8001_s12 = smov 64   ;;  %s8002_s13 = smov 4  }
  0x34   :  { %109 = dma.hbm_to_vmem [thread:$0]  %s8327_s7, 8192, %s104_s30, [#allocation15], %s8001_s12, %s8001_s12, %s8002_s13  }
  0x35   :  { %s7866_s5 = scalar_lea.vmem %s26_s10, 128  ;;  %p7871_p7 = scmp.lt.s32.totalorder %s26_s10, %s26_s10 }
  0x36   :  { %p7867_p6 = scmp.ne.s32.totalorder %s26_s10, %s7866_s5  ;;  %p7872_p8 = scmp.lt.s32.totalorder %s7866_s5, %s7866_s5 }
  0x38   :  { %p7873_p9 = por %p7872_p8, %p7871_p7 }
  0x3a   :  { %p7874_p10 = pnand %p7873_p9, %p7867_p6 }
  0x3c   :  { %7877 = shalt.err (!%p7874_p10)
}
  0x3d   :  { %31 = dma.hbm_to_vmem [thread:$0]  %s8320_s0, 128, %s26_s10, [#allocation3], %s8001_s12, %s8001_s12, %s8002_s13  }
  0x3e   :  { %s8003_s18 = smov [#allocation7]   ;;  %s8004_s20 = smov [#allocation10]  }
  0x3f   :  { %s50_s19 = sshll.u32 %s8003_s18, 4  ;;  %s72_s21 = sshll.u32 %s8004_s20, 4  ;;  %s51_s19 = int_to_ptr.vmem [resolvable:$true] %s50_s19  ;;  %s73_s21 = int_to_ptr.vmem [resolvable:$true] %s72_s21 }
  0x40   :  { %s7886_s22 = scalar_lea.vmem %s51_s19, 64  ;;  %p7891_p12 = scmp.lt.s32.totalorder %s51_s19, %s51_s19 }
  0x41   :  { %p7887_p11 = scmp.ne.s32.totalorder %s51_s19, %s7886_s22  ;;  %p7892_p13 = scmp.lt.s32.totalorder %s7886_s22, %s7886_s22 }
  0x43   :  { %p7893_p0 = por %p7892_p13, %p7891_p12 }
  0x45   :  { %p7894_p1 = pnand %p7893_p0, %p7887_p11 }
  0x47   :  { %7897 = shalt.err (!%p7894_p1)
}
  0x48   :  { %53 = dma.hbm_to_vmem [thread:$0]  %s8322_s2, 64, %s51_s19, [#allocation6]  }
  0x49   :  { %s7906_s24 = scalar_lea.vmem %s73_s21, 112  ;;  %s7910_s0 = scalar_lea.vmem %s73_s21, 128 }
  0x4a   :  { %p7907_p2 = scmp.ne.s32.totalorder %s73_s21, %s7906_s24  ;;  %p7911_p3 = scmp.lt.s32.totalorder %s73_s21, %s73_s21 }
  0x4b   :  { %p7912_p4 = scmp.lt.s32.totalorder %s7910_s0, %s7906_s24 }
  0x4d   :  { %p7913_p5 = por %p7912_p4, %p7911_p3 }
  0x4f   :  { %p7914_p6 = pnand %p7913_p5, %p7907_p2 }
  0x51   :  { %7917 = shalt.err (!%p7914_p6)
}
  0x52   :  { %75 = dma.hbm_to_vmem [thread:$0]  %s8324_s4, 112, %s73_s21, [#allocation9]  }
  0x53   :  { %s8005_s26 = smov [#allocation13]   ;;  %s8006_s28 = smov [#allocation16]  }
  0x54   :  { %s94_s27 = sshll.u32 %s8005_s26, 4  ;;  %s116_s29 = sshll.u32 %s8006_s28, 4  ;;  %s95_s27 = int_to_ptr.vmem [resolvable:$true] %s94_s27  ;;  %s117_s29 = int_to_ptr.vmem [resolvable:$true] %s116_s29 }
  0x55   :  { %s7926_s30 = scalar_lea.vmem %s95_s27, 128  ;;  %p7931_p8 = scmp.lt.s32.totalorder %s95_s27, %s95_s27 }
  0x56   :  { %p7927_p7 = scmp.ne.s32.totalorder %s95_s27, %s7926_s30  ;;  %p7932_p9 = scmp.lt.s32.totalorder %s7926_s30, %s7926_s30 }
  0x58   :  { %p7933_p10 = por %p7932_p9, %p7931_p8 }
  0x5a   :  { %p7934_p11 = pnand %p7933_p10, %p7927_p7 }
  0x5c   :  { %7937 = shalt.err (!%p7934_p11)
}
  0x5d   :  { %97 = dma.hbm_to_vmem [thread:$0]  %s8326_s6, 128, %s95_s27, [#allocation12]  }
  0x5e   :  { %s7946_s10 = scalar_lea.vmem %s117_s29, 16  ;;  %s7950_s4 = scalar_lea.vmem %s117_s29, 32 }
  0x5f   :  { %p7947_p12 = scmp.ne.s32.totalorder %s117_s29, %s7946_s10  ;;  %p7951_p13 = scmp.lt.s32.totalorder %s117_s29, %s117_s29 }
  0x60   :  { %p7952_p0 = scmp.lt.s32.totalorder %s7950_s4, %s7946_s10 }
  0x62   :  { %p7953_p1 = por %p7952_p0, %p7951_p13 }
  0x64   :  { %p7954_p2 = pnand %p7953_p1, %p7947_p12 }
  0x66   :  { %7957 = shalt.err (!%p7954_p2)
}
  0x67   :  { %119 = dma.hbm_to_vmem [thread:$0]  %s8328_s8, 16, %s117_s29, [#allocation15]  }
  0x68   :  { %7978 = dma.done.wait [#allocation3], 128  }
  0x69   :  { %7979 = vsyncadd [#allocation3], 4294967168 }
  0x6a   :  { %7980 = dma.done.wait [#allocation6], 4160  }
  0x6b   :  { %7981 = vsyncadd [#allocation6], 4294963136 }
  0x6c   :  { %7982 = dma.done.wait [#allocation9], 28784  }
  0x6d   :  { %7983 = vsyncadd [#allocation9], 4294938512 }
  0x6e   :  { %7984 = dma.done.wait [#allocation12], 57472  }
  0x6f   :  { %7985 = vsyncadd [#allocation12], 4294909824 }
  0x70   :  { %7986 = dma.done.wait [#allocation15], 8208  }
  0x71   :  { %7987 = vsyncadd [#allocation15], 4294959088  ;;  %v8007_v0 = vmov 0   ;;  %v7345_v1 = vld [vmem:[#allocation5 + $0xe4] ss:$16 sps:$4 sm:$0xff]   ;;  %v7393_v35 = vld [vmem:[#allocation2] sm:$0xff]  }
  0x72   :  { %402 = vmatprep.mubr.bf16.mxu0 %v8007_v0  ;;  %445 = vmatprep.mubr.bf16.mxu1 %v8007_v0  ;;  %v7347_v2 = vld [vmem:[#allocation5 + $0xec] ss:$16 sps:$4 sm:$0xff]   ;;  %v7349_v3 = vld [vmem:[#allocation5 + $0xe0] ss:$16 sps:$4 sm:$0xff]   ;;  %v7350_v4 = vld [vmem:[#allocation5 + $0xe8] ss:$16 sps:$4 sm:$0xff]  }
  0x73   :  { %370 = vmatprep.subr.bf16.mxu0 %v7345_v1  ;;  %413 = vmatprep.subr.bf16.mxu1 %v7347_v2  ;;  %v7351_v5 = vld [vmem:[#allocation5 + $0xc4] ss:$16 sps:$4 sm:$0xff]   ;;  %v7353_v6 = vld [vmem:[#allocation5 + $0xcc] ss:$16 sps:$4 sm:$0xff]   ;;  %v7355_v7 = vld [vmem:[#allocation5 + $0xc0] ss:$16 sps:$4 sm:$0xff]  }
  0x74   :  { %371 = vmatpush1.bf16.msra.mxu0 %v7349_v3  ;;  %414 = vmatpush1.bf16.msra.mxu1 %v7350_v4  ;;  %v7356_v8 = vld [vmem:[#allocation5 + $0xc8] ss:$16 sps:$4 sm:$0xff]   ;;  %v7357_v9 = vld [vmem:[#allocation5 + $0xa4] ss:$16 sps:$4 sm:$0xff]   ;;  %v7359_v10 = vld [vmem:[#allocation5 + $0xac] ss:$16 sps:$4 sm:$0xff]  }
  0x75   :  { %372 = vmatprep.subr.bf16.mxu0 %v7351_v5  ;;  %415 = vmatprep.subr.bf16.mxu1 %v7353_v6  ;;  %v7361_v11 = vld [vmem:[#allocation5 + $0xa0] ss:$16 sps:$4 sm:$0xff]   ;;  %v7362_v12 = vld [vmem:[#allocation5 + $0xa8] ss:$16 sps:$4 sm:$0xff]   ;;  %v7363_v13 = vld [vmem:[#allocation5 + $0x84] ss:$16 sps:$4 sm:$0xff]  }
  0x76   :  { %v7365_v14 = vld [vmem:[#allocation5 + $0x8c] ss:$16 sps:$4 sm:$0xff]   ;;  %v7367_v15 = vld [vmem:[#allocation5 + $0x80] ss:$16 sps:$4 sm:$0xff]   ;;  %v7368_v16 = vld [vmem:[#allocation5 + $0x88] ss:$16 sps:$4 sm:$0xff]  }
  0x77   :  { %v7369_v17 = vld [vmem:[#allocation5 + $0x64] ss:$16 sps:$4 sm:$0xff]   ;;  %v7371_v18 = vld [vmem:[#allocation5 + $0x6c] ss:$16 sps:$4 sm:$0xff]   ;;  %v7373_v19 = vld [vmem:[#allocation5 + $0x60] ss:$16 sps:$4 sm:$0xff]  }
  0x78   :  { %373 = vmatpush1.bf16.msra.mxu0 %v7355_v7  ;;  %416 = vmatpush1.bf16.msra.mxu1 %v7356_v8  ;;  %v7374_v20 = vld [vmem:[#allocation5 + $0x68] ss:$16 sps:$4 sm:$0xff]   ;;  %v7375_v21 = vld [vmem:[#allocation5 + $0x44] ss:$16 sps:$4 sm:$0xff]   ;;  %v7377_v22 = vld [vmem:[#allocation5 + $0x4c] ss:$16 sps:$4 sm:$0xff]  }
  0x79   :  { %374 = vmatprep.subr.bf16.mxu0 %v7357_v9  ;;  %417 = vmatprep.subr.bf16.mxu1 %v7359_v10  ;;  %v7379_v23 = vld [vmem:[#allocation5 + $0x40] ss:$16 sps:$4 sm:$0xff]   ;;  %v7380_v24 = vld [vmem:[#allocation5 + $0x48] ss:$16 sps:$4 sm:$0xff]   ;;  %v7381_v25 = vld [vmem:[#allocation5 + $0x24] ss:$16 sps:$4 sm:$0xff]  }
  0x7a   :  { %v7383_v26 = vld [vmem:[#allocation5 + $0x2c] ss:$16 sps:$4 sm:$0xff]   ;;  %v7385_v27 = vld [vmem:[#allocation5 + $0x20] ss:$16 sps:$4 sm:$0xff]   ;;  %v7386_v28 = vld [vmem:[#allocation5 + $0x28] ss:$16 sps:$4 sm:$0xff]  }
  0x7b   :  { %v7387_v29 = vld [vmem:[#allocation5 + $0x4] ss:$16 sps:$4 sm:$0xff]   ;;  %v7389_v30 = vld [vmem:[#allocation5 + $0xc] ss:$16 sps:$4 sm:$0xff]   ;;  %v7391_v31 = vld [vmem:[#allocation5] ss:$16 sps:$4 sm:$0xff]  }
  0x7c   :  { %375 = vmatpush1.bf16.msra.mxu0 %v7361_v11  ;;  %418 = vmatpush1.bf16.msra.mxu1 %v7362_v12  ;;  %v7392_v32 = vld [vmem:[#allocation5 + $0x8] ss:$16 sps:$4 sm:$0xff]   ;;  %v7396_v33 = vld [vmem:[#allocation8 + $0x18c] ss:$28 sps:$4 sm:$0xff]   ;;  %v7408_v42 = vld [vmem:[#allocation8 + $0x11c] ss:$28 sps:$4 sm:$0xff]  }
  0x7d   :  { %376 = vmatprep.subr.bf16.mxu0 %v7363_v13  ;;  %419 = vmatprep.subr.bf16.mxu1 %v7365_v14  ;;  %v7399_v34 = vld [vmem:[#allocation8 + $0x50c] ss:$28 sps:$4 sm:$0xff]   ;;  %v7402_v38 = vld [vmem:[#allocation8 + $0x154] ss:$28 sps:$4 sm:$0xff]   ;;  %v7411_v43 = vld [vmem:[#allocation8 + $0x49c] ss:$28 sps:$4 sm:$0xff]  }
  0x7e   :  { %v7394_v36 = vld [vmem:[#allocation8 + $0x188] ss:$28 sps:$4 sm:$0xff]   ;;  %v7405_v39 = vld [vmem:[#allocation8 + $0x4d4] ss:$28 sps:$4 sm:$0xff]   ;;  %v7412_v48 = vld [vmem:[#allocation8 + $0xe0] ss:$28 sps:$4 sm:$0xff]  }
  0x7f   :  { %v7397_v37 = vld [vmem:[#allocation8 + $0x508] ss:$28 sps:$4 sm:$0xff]   ;;  %v7400_v40 = vld [vmem:[#allocation8 + $0x150] ss:$28 sps:$4 sm:$0xff]   ;;  %v7406_v44 = vld [vmem:[#allocation8 + $0x118] ss:$28 sps:$4 sm:$0xff]  }
  0x80   :  { %377 = vmatpush1.bf16.msra.mxu0 %v7367_v15  ;;  %420 = vmatpush1.bf16.msra.mxu1 %v7368_v16  ;;  %v7403_v41 = vld [vmem:[#allocation8 + $0x4d0] ss:$28 sps:$4 sm:$0xff]   ;;  %v7409_v45 = vld [vmem:[#allocation8 + $0x498] ss:$28 sps:$4 sm:$0xff]   ;;  %v7414_v46 = vld [vmem:[#allocation8 + $0xe4] ss:$28 sps:$4 sm:$0xff]  }
  0x81   :  { %378 = vmatprep.subr.bf16.mxu0 %v7369_v17  ;;  %421 = vmatprep.subr.bf16.mxu1 %v7371_v18  ;;  %v7417_v47 = vld [vmem:[#allocation8 + $0x464] ss:$28 sps:$4 sm:$0xff]   ;;  %v7420_v50 = vld [vmem:[#allocation8 + $0xac] ss:$28 sps:$4 sm:$0xff]   ;;  %v7426_v54 = vld [vmem:[#allocation8 + $0x74] ss:$28 sps:$4 sm:$0xff]  }
  0x82   :  { %v7415_v49 = vld [vmem:[#allocation8 + $0x460] ss:$28 sps:$4 sm:$0xff]   ;;  %v7423_v51 = vld [vmem:[#allocation8 + $0x42c] ss:$28 sps:$4 sm:$0xff]   ;;  %v7429_v55 = vld [vmem:[#allocation8 + $0x3f4] ss:$28 sps:$4 sm:$0xff]  }
  0x83   :  { %v7418_v52 = vld [vmem:[#allocation8 + $0xa8] ss:$28 sps:$4 sm:$0xff]   ;;  %v7424_v56 = vld [vmem:[#allocation8 + $0x70] ss:$28 sps:$4 sm:$0xff]   ;;  %v7432_v58 = vld [vmem:[#allocation8 + $0x3c] ss:$28 sps:$4 sm:$0xff]  }
  0x84   :  { %379 = vmatpush1.bf16.msra.mxu0 %v7373_v19  ;;  %422 = vmatpush1.bf16.msra.mxu1 %v7374_v20  ;;  %v7421_v53 = vld [vmem:[#allocation8 + $0x428] ss:$28 sps:$4 sm:$0xff]   ;;  %v7427_v57 = vld [vmem:[#allocation8 + $0x3f0] ss:$28 sps:$4 sm:$0xff]   ;;  %v7435_v59 = vld [vmem:[#allocation8 + $0x3bc] ss:$28 sps:$4 sm:$0xff]  }
  0x85   :  { %380 = vmatprep.subr.bf16.mxu0 %v7375_v21  ;;  %423 = vmatprep.subr.bf16.mxu1 %v7377_v22  ;;  %v7430_v60 = vld [vmem:[#allocation8 + $0x38] ss:$28 sps:$4 sm:$0xff]   ;;  %v7438_v62 = vld [vmem:[#allocation8 + $0x4] ss:$28 sps:$4 sm:$0xff]   ;;  %v7444_v3 = vld [vmem:[#allocation8 + $0x34c] ss:$28 sps:$4 sm:$0xff]  }
  0x86   :  { %v7433_v61 = vld [vmem:[#allocation8 + $0x3b8] ss:$28 sps:$4 sm:$0xff]   ;;  %v7441_v63 = vld [vmem:[#allocation8 + $0x384] ss:$28 sps:$4 sm:$0xff]   ;;  %v7447_v4 = vld [vmem:[#allocation8 + $0x6cc] ss:$28 sps:$4 sm:$0xff]  }
  0x87   :  { %v7436_v1 = vld [vmem:[#allocation8] ss:$28 sps:$4 sm:$0xff]   ;;  %v7442_v5 = vld [vmem:[#allocation8 + $0x348] ss:$28 sps:$4 sm:$0xff]   ;;  %v7450_v7 = vld [vmem:[#allocation8 + $0x314] ss:$28 sps:$4 sm:$0xff]  }
  0x88   :  { %381 = vmatpush1.bf16.msra.mxu0 %v7379_v23  ;;  %424 = vmatpush1.bf16.msra.mxu1 %v7380_v24  ;;  %v7439_v2 = vld [vmem:[#allocation8 + $0x380] ss:$28 sps:$4 sm:$0xff]   ;;  %v7445_v6 = vld [vmem:[#allocation8 + $0x6c8] ss:$28 sps:$4 sm:$0xff]   ;;  %v7453_v8 = vld [vmem:[#allocation8 + $0x694] ss:$28 sps:$4 sm:$0xff]  }
  0x89   :  { %382 = vmatprep.subr.bf16.mxu0 %v7381_v25  ;;  %425 = vmatprep.subr.bf16.mxu1 %v7383_v26  ;;  %v7448_v9 = vld [vmem:[#allocation8 + $0x310] ss:$28 sps:$4 sm:$0xff]   ;;  %v7456_v11 = vld [vmem:[#allocation8 + $0x2dc] ss:$28 sps:$4 sm:$0xff]   ;;  %v7462_v15 = vld [vmem:[#allocation8 + $0x2a4] ss:$28 sps:$4 sm:$0xff]  }
  0x8a   :  { %v7451_v10 = vld [vmem:[#allocation8 + $0x690] ss:$28 sps:$4 sm:$0xff]   ;;  %v7459_v12 = vld [vmem:[#allocation8 + $0x65c] ss:$28 sps:$4 sm:$0xff]   ;;  %v7465_v16 = vld [vmem:[#allocation8 + $0x624] ss:$28 sps:$4 sm:$0xff]  }
  0x8b   :  { %v7454_v13 = vld [vmem:[#allocation8 + $0x2d8] ss:$28 sps:$4 sm:$0xff]   ;;  %v7460_v17 = vld [vmem:[#allocation8 + $0x2a0] ss:$28 sps:$4 sm:$0xff]   ;;  %v7468_v19 = vld [vmem:[#allocation8 + $0x26c] ss:$28 sps:$4 sm:$0xff]  }
  0x8c   :  { %383 = vmatpush1.bf16.msra.mxu0 %v7385_v27  ;;  %426 = vmatpush1.bf16.msra.mxu1 %v7386_v28  ;;  %v7457_v14 = vld [vmem:[#allocation8 + $0x658] ss:$28 sps:$4 sm:$0xff]   ;;  %v7463_v18 = vld [vmem:[#allocation8 + $0x620] ss:$28 sps:$4 sm:$0xff]   ;;  %v7471_v20 = vld [vmem:[#allocation8 + $0x5ec] ss:$28 sps:$4 sm:$0xff]  }
  0x8d   :  { %384 = vmatprep.subr.bf16.mxu0 %v7387_v29  ;;  %427 = vmatprep.subr.bf16.mxu1 %v7389_v30  ;;  %v7466_v21 = vld [vmem:[#allocation8 + $0x268] ss:$28 sps:$4 sm:$0xff]   ;;  %v7474_v23 = vld [vmem:[#allocation8 + $0x234] ss:$28 sps:$4 sm:$0xff]   ;;  %v7480_v27 = vld [vmem:[#allocation8 + $0x1fc] ss:$28 sps:$4 sm:$0xff]  }
  0x8e   :  { %v7469_v22 = vld [vmem:[#allocation8 + $0x5e8] ss:$28 sps:$4 sm:$0xff]   ;;  %v7477_v24 = vld [vmem:[#allocation8 + $0x5b4] ss:$28 sps:$4 sm:$0xff]   ;;  %v7483_v28 = vld [vmem:[#allocation8 + $0x57c] ss:$28 sps:$4 sm:$0xff]  }
  0x8f   :  { %v7472_v25 = vld [vmem:[#allocation8 + $0x230] ss:$28 sps:$4 sm:$0xff]   ;;  %v7478_v29 = vld [vmem:[#allocation8 + $0x1f8] ss:$28 sps:$4 sm:$0xff]   ;;  %s8008_s6 = smov [#allocation17]  }
  0x90   :  { %385 = vmatpush1.bf16.msra.mxu0 %v7391_v31  ;;  %428 = vmatpush1.bf16.msra.mxu1 %v7392_v32  ;;  %v7475_v26 = vld [vmem:[#allocation8 + $0x5b0] ss:$28 sps:$4 sm:$0xff]   ;;  %v7481_v30 = vld [vmem:[#allocation8 + $0x578] ss:$28 sps:$4 sm:$0xff]   ;;  %v7486_v31 = vld [vmem:[#allocation8 + $0x1c4] ss:$28 sps:$4 sm:$0xff]  }
  0x91   :  { %1913 = vmatprep.subr.bf16.mxu0 %v7396_v33  ;;  %1956 = vmatprep.subr.bf16.mxu1 %v7399_v34  ;;  %v7489_v32 = vld [vmem:[#allocation8 + $0x544] ss:$28 sps:$4 sm:$0xff]   ;;  %s6406_s8 = sshll.u32 %s8008_s6, 4  ;;  %s6407_s8 = int_to_ptr.vmem [resolvable:$true] %s6406_s8 }
  0x92   :  { %v7484_v33 = vld [vmem:[#allocation8 + $0x1c0] ss:$28 sps:$4 sm:$0xff]   ;;  %s7958_s13 = scalar_lea.vmem %s6407_s8, 256  ;;  %p7963_p4 = scmp.lt.s32.totalorder %s6407_s8, %s6407_s8 }
  0x93   :  { %403 = vmatmul.mubr.bf16.vlgmr.msra.gmra.mxu0 %v7393_v35  ;;  %446 = vmatmul.mubr.bf16.vlgmr.msra.gmra.mxu1 %v7393_v35  ;;  %v7487_v34 = vld [vmem:[#allocation8 + $0x540] ss:$28 sps:$4 sm:$0xff]   ;;  %v7492_v35 = vld [vmem:[#allocation8 + $0x194] ss:$28 sps:$4 sm:$0xff]   ;;  %p7959_p3 = scmp.ne.s32.totalorder %s6407_s8, %s7958_s13  ;;  %p7964_p5 = scmp.lt.s32.totalorder %s7958_s13, %s7958_s13 }
  0x94   :  { %1914 = vmatpush1.bf16.msra.mxu0 %v7394_v36  ;;  %1957 = vmatpush1.bf16.msra.mxu1 %v7397_v37  ;;  %v7495_v36 = vld [vmem:[#allocation8 + $0x514] ss:$28 sps:$4 sm:$0xff]   ;;  %v184_v37 = vlaneseq }
  0x95   :  { %1915 = vmatprep.subr.bf16.mxu0 %v7402_v38  ;;  %1958 = vmatprep.subr.bf16.mxu1 %v7405_v39  ;;  %p7965_p6 = por %p7964_p5, %p7963_p4 }
  0x96   :  { %v8090_v38 = vshrl.u32 %v184_v37, 7  ;;  %v7526_v37 = vld [vmem:[#allocation8 + $0x40] ss:$28 sps:$4 sm:$0xff]  }
  0x97   :  { %p7966_p7 = pnand %p7965_p6, %p7959_p3 }
  0x98   :  { %1916 = vmatpush1.bf16.msra.mxu0 %v7400_v40  ;;  %1959 = vmatpush1.bf16.msra.mxu1 %v7403_v41  ;;  %v8093_v39 = vsub.s32 1, %v8090_v38  ;;  %v8096_v40 = vsub.s32 3, %v8090_v38  ;;  %v8099_v41 = vsub.s32 0, %v8090_v38 }
  0x99   :  { %1917 = vmatprep.subr.bf16.mxu0 %v7408_v42  ;;  %1960 = vmatprep.subr.bf16.mxu1 %v7411_v43  ;;  %v8102_v42 = vsub.s32 2, %v8090_v38  ;;  %v182_v43 = vld [vmem:[#allocation7] sm:$0xf] }
  0x9c   :  { %1918 = vmatpush1.bf16.msra.mxu0 %v7406_v44  ;;  %1961 = vmatpush1.bf16.msra.mxu1 %v7409_v45 }
  0x9d   :  { %1919 = vmatprep.subr.bf16.mxu0 %v7414_v46  ;;  %1962 = vmatprep.subr.bf16.mxu1 %v7417_v47  ;;  %v191_v46 = vrot.slane %v182_v43, %v8093_v39  ;;  %v199_v47 = vrot.slane %v182_v43, %v8096_v40 }
  0xa0   :  { %1920 = vmatpush1.bf16.msra.mxu0 %v7412_v48  ;;  %1963 = vmatpush1.bf16.msra.mxu1 %v7415_v49  ;;  %v187_v48 = vrot.slane %v182_v43, %v8099_v41  ;;  %v195_v49 = vrot.slane %v182_v43, %v8102_v42  ;;  %v7529_v43 = vld [vmem:[#allocation8 + $0x3c0] ss:$28 sps:$4 sm:$0xff]  }
  0xa1   :  { %1921 = vmatprep.subr.bf16.mxu0 %v7420_v50  ;;  %1964 = vmatprep.subr.bf16.mxu1 %v7423_v51 }
  0xa4   :  { %1922 = vmatpush1.bf16.msra.mxu0 %v7418_v52  ;;  %1965 = vmatpush1.bf16.msra.mxu1 %v7421_v53 }
  0xa5   :  { %1923 = vmatprep.subr.bf16.mxu0 %v7426_v54  ;;  %1966 = vmatprep.subr.bf16.mxu1 %v7429_v55 }
  0xa8   :  { %1924 = vmatpush1.bf16.msra.mxu0 %v7424_v56  ;;  %1967 = vmatpush1.bf16.msra.mxu1 %v7427_v57 }
  0xa9   :  { %1925 = vmatprep.subr.bf16.mxu0 %v7432_v58  ;;  %1968 = vmatprep.subr.bf16.mxu1 %v7435_v59 }
  0xac   :  { %1926 = vmatpush1.bf16.msra.mxu0 %v7430_v60  ;;  %1969 = vmatpush1.bf16.msra.mxu1 %v7433_v61 }
  0xad   :  { %1927 = vmatprep.subr.bf16.mxu0 %v7438_v62  ;;  %1970 = vmatprep.subr.bf16.mxu1 %v7441_v63 }
  0xb0   :  { %1928 = vmatpush1.bf16.msra.mxu0 %v7436_v1  ;;  %1971 = vmatpush1.bf16.msra.mxu1 %v7439_v2 }
  0xb1   :  { %1929 = vmatprep.subr.bf16.mxu0 %v7444_v3  ;;  %1972 = vmatprep.subr.bf16.mxu1 %v7447_v4 }
  0xb4   :  { %1930 = vmatpush2.bf16.msra.mxu0 %v7442_v5  ;;  %1973 = vmatpush2.bf16.msra.mxu1 %v7445_v6 }
  0xb5   :  { %1931 = vmatprep.subr.bf16.mxu0 %v7450_v7  ;;  %1974 = vmatprep.subr.bf16.mxu1 %v7453_v8 }
  0xb8   :  { %1932 = vmatpush2.bf16.msra.mxu0 %v7448_v9  ;;  %1975 = vmatpush2.bf16.msra.mxu1 %v7451_v10 }
  0xb9   :  { %1933 = vmatprep.subr.bf16.mxu0 %v7456_v11  ;;  %1976 = vmatprep.subr.bf16.mxu1 %v7459_v12  ;;  %v7490_v11 = vld [vmem:[#allocation8 + $0x190] ss:$28 sps:$4 sm:$0xff]  }
  0xba   :  { %v7493_v12 = vld [vmem:[#allocation8 + $0x510] ss:$28 sps:$4 sm:$0xff]  }
  0xbc   :  { %1934 = vmatpush2.bf16.msra.mxu0 %v7454_v13  ;;  %1977 = vmatpush2.bf16.msra.mxu1 %v7457_v14 }
  0xbd   :  { %1935 = vmatprep.subr.bf16.mxu0 %v7462_v15  ;;  %1978 = vmatprep.subr.bf16.mxu1 %v7465_v16  ;;  %v7498_v15 = vld [vmem:[#allocation8 + $0x15c] ss:$28 sps:$4 sm:$0xff]  }
  0xbe   :  { %v7501_v16 = vld [vmem:[#allocation8 + $0x4dc] ss:$28 sps:$4 sm:$0xff]  }
  0xc0   :  { %1936 = vmatpush2.bf16.msra.mxu0 %v7460_v17  ;;  %1979 = vmatpush2.bf16.msra.mxu1 %v7463_v18  ;;  %v7496_v17 = vld [vmem:[#allocation8 + $0x158] ss:$28 sps:$4 sm:$0xff]  }
  0xc1   :  { %1937 = vmatprep.subr.bf16.mxu0 %v7468_v19  ;;  %1980 = vmatprep.subr.bf16.mxu1 %v7471_v20  ;;  %v7499_v18 = vld [vmem:[#allocation8 + $0x4d8] ss:$28 sps:$4 sm:$0xff]   ;;  %v7504_v19 = vld [vmem:[#allocation8 + $0x124] ss:$28 sps:$4 sm:$0xff]  }
  0xc2   :  { %v7507_v20 = vld [vmem:[#allocation8 + $0x4a4] ss:$28 sps:$4 sm:$0xff]  }
  0xc4   :  { %1938 = vmatpush2.bf16.msra.mxu0 %v7466_v21  ;;  %1981 = vmatpush2.bf16.msra.mxu1 %v7469_v22  ;;  %v7502_v21 = vld [vmem:[#allocation8 + $0x120] ss:$28 sps:$4 sm:$0xff]  }
  0xc5   :  { %1939 = vmatprep.subr.bf16.mxu0 %v7474_v23  ;;  %1982 = vmatprep.subr.bf16.mxu1 %v7477_v24  ;;  %v7505_v22 = vld [vmem:[#allocation8 + $0x4a0] ss:$28 sps:$4 sm:$0xff]   ;;  %v7510_v23 = vld [vmem:[#allocation8 + $0xec] ss:$28 sps:$4 sm:$0xff]  }
  0xc6   :  { %v7513_v24 = vld [vmem:[#allocation8 + $0x46c] ss:$28 sps:$4 sm:$0xff]  }
  0xc8   :  { %1940 = vmatpush2.bf16.msra.mxu0 %v7472_v25  ;;  %1983 = vmatpush2.bf16.msra.mxu1 %v7475_v26  ;;  %v7508_v25 = vld [vmem:[#allocation8 + $0xe8] ss:$28 sps:$4 sm:$0xff]  }
  0xc9   :  { %1941 = vmatprep.subr.bf16.mxu0 %v7480_v27  ;;  %1984 = vmatprep.subr.bf16.mxu1 %v7483_v28  ;;  %v7511_v26 = vld [vmem:[#allocation8 + $0x468] ss:$28 sps:$4 sm:$0xff]   ;;  %v7516_v27 = vld [vmem:[#allocation8 + $0xb4] ss:$28 sps:$4 sm:$0xff]  }
  0xca   :  { %v7519_v28 = vld [vmem:[#allocation8 + $0x434] ss:$28 sps:$4 sm:$0xff]  }
  0xcc   :  { %1942 = vmatpush2.bf16.msra.mxu0 %v7478_v29  ;;  %1985 = vmatpush2.bf16.msra.mxu1 %v7481_v30  ;;  %v7514_v29 = vld [vmem:[#allocation8 + $0xb0] ss:$28 sps:$4 sm:$0xff]  }
  0xcd   :  { %1943 = vmatprep.subr.bf16.mxu0 %v7486_v31  ;;  %1986 = vmatprep.subr.bf16.mxu1 %v7489_v32  ;;  %v7517_v30 = vld [vmem:[#allocation8 + $0x430] ss:$28 sps:$4 sm:$0xff]   ;;  %v7522_v31 = vld [vmem:[#allocation8 + $0x7c] ss:$28 sps:$4 sm:$0xff]  }
  0xce   :  { %v7525_v32 = vld [vmem:[#allocation8 + $0x3fc] ss:$28 sps:$4 sm:$0xff]  }
  0xd0   :  { %1944 = vmatpush2.bf16.msra.mxu0 %v7484_v33  ;;  %1987 = vmatpush2.bf16.msra.mxu1 %v7487_v34  ;;  %v7520_v33 = vld [vmem:[#allocation8 + $0x78] ss:$28 sps:$4 sm:$0xff]  }
  0xd1   :  { %1999 = vmatprep.subr.bf16.mxu0 %v7492_v35  ;;  %2042 = vmatprep.subr.bf16.mxu1 %v7495_v36  ;;  %v7523_v34 = vld [vmem:[#allocation8 + $0x3f8] ss:$28 sps:$4 sm:$0xff]   ;;  %v7528_v35 = vld [vmem:[#allocation8 + $0x44] ss:$28 sps:$4 sm:$0xff]  }
  0xd2   :  { %v7531_v36 = vld [vmem:[#allocation8 + $0x3c4] ss:$28 sps:$4 sm:$0xff]  }
 0x153   :  { %v404_v44 = vpop.f32.mrf.mxu0  ;;  %v447_v45 = vpop.f32.mrf.mxu1 }
 0x154   :  { %v405_v58 = vadd.f32 %v404_v44, %v187_v48  ;;  %v448_v59 = vadd.f32 %v447_v45, %v195_v49  ;;  %v7534_v44 = vld [vmem:[#allocation8 + $0xc] ss:$28 sps:$4 sm:$0xff]  }
 0x155   :  { %v406_v50 = vpop.f32.mrf.mxu0  ;;  %v449_v51 = vpop.f32.mrf.mxu1  ;;  %v7537_v45 = vld [vmem:[#allocation8 + $0x38c] ss:$28 sps:$4 sm:$0xff]  }
 0x156   :  { %v407_v54 = vadd.f32 %v406_v50, %v191_v46  ;;  %v450_v55 = vadd.f32 %v449_v51, %v199_v47  ;;  %v456_v7 = vmax.f32 %v405_v58, 0.0  ;;  %v458_v8 = vmax.f32 %v448_v59, 0.0  ;;  %v7538_v50 = vld [vmem:[#allocation8 + $0x350] ss:$28 sps:$4 sm:$0xff]   ;;  %v7550_v58 = vld [vmem:[#allocation8 + $0x2e0] ss:$28 sps:$4 sm:$0xff]  }
 0x157   :  { %v408_v52 = vpop.f32.mrf.mxu0  ;;  %v451_v53 = vpop.f32.mrf.mxu1  ;;  %v7541_v51 = vld [vmem:[#allocation8 + $0x6d0] ss:$28 sps:$4 sm:$0xff]   ;;  %v7553_v59 = vld [vmem:[#allocation8 + $0x660] ss:$28 sps:$4 sm:$0xff]  }
 0x158   :  { %v409_v56 = vadd.f32 %v408_v52, %v187_v48  ;;  %v452_v57 = vadd.f32 %v451_v53, %v195_v49  ;;  %v457_v3 = vmax.f32 %v407_v54, 0.0  ;;  %v459_v4 = vmax.f32 %v450_v55, 0.0  ;;  %v7540_v48 = vld [vmem:[#allocation8 + $0x354] ss:$28 sps:$4 sm:$0xff]   ;;  %v7546_v52 = vld [vmem:[#allocation8 + $0x31c] ss:$28 sps:$4 sm:$0xff]  }
 0x159   :  { %v410_v60 = vpop.f32.mrf.mxu0  ;;  %v453_v61 = vpop.f32.mrf.mxu1  ;;  %v7543_v49 = vld [vmem:[#allocation8 + $0x6d4] ss:$28 sps:$4 sm:$0xff]   ;;  %v7549_v53 = vld [vmem:[#allocation8 + $0x69c] ss:$28 sps:$4 sm:$0xff]  }
 0x15a   :  { %v411_v62 = vadd.f32 %v410_v60, %v191_v46  ;;  %v454_v63 = vadd.f32 %v453_v61, %v199_v47  ;;  %v460_v1 = vmax.f32 %v409_v56, 0.0  ;;  %v462_v2 = vmax.f32 %v452_v57, 0.0  ;;  %v7532_v46 = vld [vmem:[#allocation8 + $0x8] ss:$28 sps:$4 sm:$0xff]   ;;  %v7544_v54 = vld [vmem:[#allocation8 + $0x318] ss:$28 sps:$4 sm:$0xff]  }
 0x15b   :  { %v7535_v47 = vld [vmem:[#allocation8 + $0x388] ss:$28 sps:$4 sm:$0xff]   ;;  %v7547_v55 = vld [vmem:[#allocation8 + $0x698] ss:$28 sps:$4 sm:$0xff]  }
 0x15c   :  { %v461_v5 = vmax.f32 %v411_v62, 0.0  ;;  %v463_v6 = vmax.f32 %v454_v63, 0.0  ;;  %v8112_v13 = vpack.c.bf16 %v460_v1, %v456_v7  ;;  %v8114_v14 = vpack.c.bf16 %v462_v2, %v458_v8  ;;  %v7552_v56 = vld [vmem:[#allocation8 + $0x2e4] ss:$28 sps:$4 sm:$0xff]   ;;  %v7558_v60 = vld [vmem:[#allocation8 + $0x2ac] ss:$28 sps:$4 sm:$0xff]  }
 0x15d   :  { %v7555_v57 = vld [vmem:[#allocation8 + $0x664] ss:$28 sps:$4 sm:$0xff]   ;;  %v7561_v61 = vld [vmem:[#allocation8 + $0x62c] ss:$28 sps:$4 sm:$0xff]   ;;  %v7564_v1 = vld [vmem:[#allocation8 + $0x274] ss:$28 sps:$4 sm:$0xff]  }
 0x15e   :  { %v8108_v9 = vpack.c.bf16 %v461_v5, %v457_v3  ;;  %v8110_v10 = vpack.c.bf16 %v463_v6, %v459_v4  ;;  %v7556_v62 = vld [vmem:[#allocation8 + $0x2a8] ss:$28 sps:$4 sm:$0xff]   ;;  %v7567_v2 = vld [vmem:[#allocation8 + $0x5f4] ss:$28 sps:$4 sm:$0xff]   ;;  %v7570_v5 = vld [vmem:[#allocation8 + $0x23c] ss:$28 sps:$4 sm:$0xff]  }
 0x15f   :  { %v7559_v63 = vld [vmem:[#allocation8 + $0x628] ss:$28 sps:$4 sm:$0xff]   ;;  %v7562_v3 = vld [vmem:[#allocation8 + $0x270] ss:$28 sps:$4 sm:$0xff]   ;;  %v7573_v6 = vld [vmem:[#allocation8 + $0x5bc] ss:$28 sps:$4 sm:$0xff]  }
 0x160   :  { %1945 = vmatprep.mubr.bf16.mxu0 %v8108_v9  ;;  %1988 = vmatprep.mubr.bf16.mxu1 %v8110_v10  ;;  %v7565_v4 = vld [vmem:[#allocation8 + $0x5f0] ss:$28 sps:$4 sm:$0xff]   ;;  %v7568_v7 = vld [vmem:[#allocation8 + $0x238] ss:$28 sps:$4 sm:$0xff]  }
 0x161   :  { %1946 = vmatmul.mubr.bf16.vlgmr.msra.gmra.mxu0 %v8112_v13  ;;  %1989 = vmatmul.mubr.bf16.vlgmr.msra.gmra.mxu1 %v8114_v14  ;;  %v7571_v8 = vld [vmem:[#allocation8 + $0x5b8] ss:$28 sps:$4 sm:$0xff]  }
 0x162   :  { %2000 = vmatpush1.bf16.msra.mxu0 %v7490_v11  ;;  %2043 = vmatpush1.bf16.msra.mxu1 %v7493_v12  ;;  %v7576_v11 = vld [vmem:[#allocation8 + $0x204] ss:$28 sps:$4 sm:$0xff]  }
 0x163   :  { %2031 = vmatprep.mubr.bf16.mxu0 %v8108_v9  ;;  %2074 = vmatprep.mubr.bf16.mxu1 %v8110_v10  ;;  %v7579_v12 = vld [vmem:[#allocation8 + $0x584] ss:$28 sps:$4 sm:$0xff]  }
 0x164   :  { %2001 = vmatprep.subr.bf16.mxu0 %v7498_v15  ;;  %2044 = vmatprep.subr.bf16.mxu1 %v7501_v16  ;;  %v7574_v15 = vld [vmem:[#allocation8 + $0x200] ss:$28 sps:$4 sm:$0xff]  }
 0x165   :  { %v7577_v16 = vld [vmem:[#allocation8 + $0x580] ss:$28 sps:$4 sm:$0xff]  }
 0x166   :  { %2002 = vmatpush1.bf16.msra.mxu0 %v7496_v17  ;;  %2045 = vmatpush1.bf16.msra.mxu1 %v7499_v18  ;;  %v7582_v17 = vld [vmem:[#allocation8 + $0x1cc] ss:$28 sps:$4 sm:$0xff]  }
 0x167   :  { %2003 = vmatprep.subr.bf16.mxu0 %v7504_v19  ;;  %2046 = vmatprep.subr.bf16.mxu1 %v7507_v20  ;;  %v7585_v18 = vld [vmem:[#allocation8 + $0x54c] ss:$28 sps:$4 sm:$0xff]  }
 0x168   :  { %v7580_v19 = vld [vmem:[#allocation8 + $0x1c8] ss:$28 sps:$4 sm:$0xff]  }
 0x169   :  { %v7583_v20 = vld [vmem:[#allocation8 + $0x548] ss:$28 sps:$4 sm:$0xff]  }
 0x16a   :  { %2004 = vmatpush1.bf16.msra.mxu0 %v7502_v21  ;;  %2047 = vmatpush1.bf16.msra.mxu1 %v7505_v22  ;;  %v7588_v21 = vld [vmem:[#allocation8 + $0x19c] ss:$28 sps:$4 sm:$0xff]  }
 0x16b   :  { %2005 = vmatprep.subr.bf16.mxu0 %v7510_v23  ;;  %2048 = vmatprep.subr.bf16.mxu1 %v7513_v24  ;;  %v7591_v22 = vld [vmem:[#allocation8 + $0x51c] ss:$28 sps:$4 sm:$0xff]  }
 0x16c   :  { %v7586_v23 = vld [vmem:[#allocation8 + $0x198] ss:$28 sps:$4 sm:$0xff]  }
 0x16d   :  { %v7589_v24 = vld [vmem:[#allocation8 + $0x518] ss:$28 sps:$4 sm:$0xff]  }
 0x16e   :  { %2006 = vmatpush1.bf16.msra.mxu0 %v7508_v25  ;;  %2049 = vmatpush1.bf16.msra.mxu1 %v7511_v26  ;;  %v7594_v25 = vld [vmem:[#allocation8 + $0x164] ss:$28 sps:$4 sm:$0xff]  }
 0x16f   :  { %2007 = vmatprep.subr.bf16.mxu0 %v7516_v27  ;;  %2050 = vmatprep.subr.bf16.mxu1 %v7519_v28  ;;  %v7597_v26 = vld [vmem:[#allocation8 + $0x4e4] ss:$28 sps:$4 sm:$0xff]  }
 0x170   :  { %v7592_v27 = vld [vmem:[#allocation8 + $0x160] ss:$28 sps:$4 sm:$0xff]  }
 0x171   :  { %v7595_v28 = vld [vmem:[#allocation8 + $0x4e0] ss:$28 sps:$4 sm:$0xff]  }
 0x172   :  { %2008 = vmatpush1.bf16.msra.mxu0 %v7514_v29  ;;  %2051 = vmatpush1.bf16.msra.mxu1 %v7517_v30  ;;  %v7600_v29 = vld [vmem:[#allocation8 + $0x12c] ss:$28 sps:$4 sm:$0xff]  }
 0x173   :  { %2009 = vmatprep.subr.bf16.mxu0 %v7522_v31  ;;  %2052 = vmatprep.subr.bf16.mxu1 %v7525_v32  ;;  %v7603_v30 = vld [vmem:[#allocation8 + $0x4ac] ss:$28 sps:$4 sm:$0xff]  }
 0x174   :  { %v7598_v31 = vld [vmem:[#allocation8 + $0x128] ss:$28 sps:$4 sm:$0xff]  }
 0x175   :  { %v7601_v32 = vld [vmem:[#allocation8 + $0x4a8] ss:$28 sps:$4 sm:$0xff]  }
 0x176   :  { %2010 = vmatpush1.bf16.msra.mxu0 %v7520_v33  ;;  %2053 = vmatpush1.bf16.msra.mxu1 %v7523_v34  ;;  %v7606_v33 = vld [vmem:[#allocation8 + $0xf4] ss:$28 sps:$4 sm:$0xff]  }
 0x177   :  { %2011 = vmatprep.subr.bf16.mxu0 %v7528_v35  ;;  %2054 = vmatprep.subr.bf16.mxu1 %v7531_v36  ;;  %v7609_v34 = vld [vmem:[#allocation8 + $0x474] ss:$28 sps:$4 sm:$0xff]  }
 0x178   :  { %v7604_v35 = vld [vmem:[#allocation8 + $0xf0] ss:$28 sps:$4 sm:$0xff]  }
 0x179   :  { %v7607_v36 = vld [vmem:[#allocation8 + $0x470] ss:$28 sps:$4 sm:$0xff]  }
 0x17a   :  { %2012 = vmatpush1.bf16.msra.mxu0 %v7526_v37  ;;  %2055 = vmatpush1.bf16.msra.mxu1 %v7529_v43  ;;  %v7612_v37 = vld [vmem:[#allocation8 + $0xbc] ss:$28 sps:$4 sm:$0xff]  }
 0x17b   :  { %2013 = vmatprep.subr.bf16.mxu0 %v7534_v44  ;;  %2056 = vmatprep.subr.bf16.mxu1 %v7537_v45  ;;  %v7615_v43 = vld [vmem:[#allocation8 + $0x43c] ss:$28 sps:$4 sm:$0xff]  }
 0x17c   :  { %v7610_v44 = vld [vmem:[#allocation8 + $0xb8] ss:$28 sps:$4 sm:$0xff]  }
 0x17d   :  { %v7613_v45 = vld [vmem:[#allocation8 + $0x438] ss:$28 sps:$4 sm:$0xff]  }
 0x17e   :  { %2014 = vmatpush1.bf16.msra.mxu0 %v7532_v46  ;;  %2057 = vmatpush1.bf16.msra.mxu1 %v7535_v47  ;;  %v7618_v46 = vld [vmem:[#allocation8 + $0x84] ss:$28 sps:$4 sm:$0xff]  }
 0x17f   :  { %2015 = vmatprep.subr.bf16.mxu0 %v7540_v48  ;;  %2058 = vmatprep.subr.bf16.mxu1 %v7543_v49  ;;  %v7621_v47 = vld [vmem:[#allocation8 + $0x404] ss:$28 sps:$4 sm:$0xff]  }
 0x180   :  { %v7616_v48 = vld [vmem:[#allocation8 + $0x80] ss:$28 sps:$4 sm:$0xff]  }
 0x181   :  { %v7619_v49 = vld [vmem:[#allocation8 + $0x400] ss:$28 sps:$4 sm:$0xff]  }
 0x182   :  { %2016 = vmatpush2.bf16.msra.mxu0 %v7538_v50  ;;  %2059 = vmatpush2.bf16.msra.mxu1 %v7541_v51  ;;  %v7624_v50 = vld [vmem:[#allocation8 + $0x4c] ss:$28 sps:$4 sm:$0xff]  }
 0x183   :  { %2017 = vmatprep.subr.bf16.mxu0 %v7546_v52  ;;  %2060 = vmatprep.subr.bf16.mxu1 %v7549_v53  ;;  %v7627_v51 = vld [vmem:[#allocation8 + $0x3cc] ss:$28 sps:$4 sm:$0xff]  }
 0x184   :  { %v7622_v52 = vld [vmem:[#allocation8 + $0x48] ss:$28 sps:$4 sm:$0xff]  }
 0x185   :  { %v7625_v53 = vld [vmem:[#allocation8 + $0x3c8] ss:$28 sps:$4 sm:$0xff]  }
 0x186   :  { %2018 = vmatpush2.bf16.msra.mxu0 %v7544_v54  ;;  %2061 = vmatpush2.bf16.msra.mxu1 %v7547_v55  ;;  %v7630_v54 = vld [vmem:[#allocation8 + $0x14] ss:$28 sps:$4 sm:$0xff]  }
 0x187   :  { %2019 = vmatprep.subr.bf16.mxu0 %v7552_v56  ;;  %2062 = vmatprep.subr.bf16.mxu1 %v7555_v57  ;;  %v7633_v55 = vld [vmem:[#allocation8 + $0x394] ss:$28 sps:$4 sm:$0xff]  }
 0x188   :  { %v7628_v56 = vld [vmem:[#allocation8 + $0x10] ss:$28 sps:$4 sm:$0xff]  }
 0x189   :  { %v7631_v57 = vld [vmem:[#allocation8 + $0x390] ss:$28 sps:$4 sm:$0xff]  }
 0x18a   :  { %2020 = vmatpush2.bf16.msra.mxu0 %v7550_v58  ;;  %2063 = vmatpush2.bf16.msra.mxu1 %v7553_v59  ;;  %v7636_v58 = vld [vmem:[#allocation8 + $0x35c] ss:$28 sps:$4 sm:$0xff]  }
 0x18b   :  { %2021 = vmatprep.subr.bf16.mxu0 %v7558_v60  ;;  %2064 = vmatprep.subr.bf16.mxu1 %v7561_v61  ;;  %v7639_v59 = vld [vmem:[#allocation8 + $0x6dc] ss:$28 sps:$4 sm:$0xff]  }
 0x18c   :  { %v7634_v60 = vld [vmem:[#allocation8 + $0x358] ss:$28 sps:$4 sm:$0xff]  }
 0x18d   :  { %v7637_v61 = vld [vmem:[#allocation8 + $0x6d8] ss:$28 sps:$4 sm:$0xff]  }
 0x18e   :  { %2022 = vmatpush2.bf16.msra.mxu0 %v7556_v62  ;;  %2065 = vmatpush2.bf16.msra.mxu1 %v7559_v63  ;;  %v7642_v62 = vld [vmem:[#allocation8 + $0x324] ss:$28 sps:$4 sm:$0xff]  }
 0x18f   :  { %2023 = vmatprep.subr.bf16.mxu0 %v7564_v1  ;;  %2066 = vmatprep.subr.bf16.mxu1 %v7567_v2  ;;  %v7645_v63 = vld [vmem:[#allocation8 + $0x6a4] ss:$28 sps:$4 sm:$0xff]  }
 0x190   :  { %v7640_v1 = vld [vmem:[#allocation8 + $0x320] ss:$28 sps:$4 sm:$0xff]  }
 0x191   :  { %v7643_v2 = vld [vmem:[#allocation8 + $0x6a0] ss:$28 sps:$4 sm:$0xff]  }
 0x192   :  { %2024 = vmatpush2.bf16.msra.mxu0 %v7562_v3  ;;  %2067 = vmatpush2.bf16.msra.mxu1 %v7565_v4  ;;  %v7648_v3 = vld [vmem:[#allocation8 + $0x2ec] ss:$28 sps:$4 sm:$0xff]  }
 0x193   :  { %2025 = vmatprep.subr.bf16.mxu0 %v7570_v5  ;;  %2068 = vmatprep.subr.bf16.mxu1 %v7573_v6  ;;  %v7651_v4 = vld [vmem:[#allocation8 + $0x66c] ss:$28 sps:$4 sm:$0xff]  }
 0x194   :  { %v7646_v5 = vld [vmem:[#allocation8 + $0x2e8] ss:$28 sps:$4 sm:$0xff]  }
 0x195   :  { %v7649_v6 = vld [vmem:[#allocation8 + $0x668] ss:$28 sps:$4 sm:$0xff]  }
 0x196   :  { %2026 = vmatpush2.bf16.msra.mxu0 %v7568_v7  ;;  %2069 = vmatpush2.bf16.msra.mxu1 %v7571_v8  ;;  %v7654_v7 = vld [vmem:[#allocation8 + $0x2b4] ss:$28 sps:$4 sm:$0xff]  }
 0x197   :  { %2027 = vmatprep.subr.bf16.mxu0 %v7576_v11  ;;  %2070 = vmatprep.subr.bf16.mxu1 %v7579_v12  ;;  %v7657_v8 = vld [vmem:[#allocation8 + $0x634] ss:$28 sps:$4 sm:$0xff]  }
 0x198   :  { %v7652_v11 = vld [vmem:[#allocation8 + $0x2b0] ss:$28 sps:$4 sm:$0xff]  }
 0x199   :  { %v7655_v12 = vld [vmem:[#allocation8 + $0x630] ss:$28 sps:$4 sm:$0xff]  }
 0x19a   :  { %2028 = vmatpush2.bf16.msra.mxu0 %v7574_v15  ;;  %2071 = vmatpush2.bf16.msra.mxu1 %v7577_v16  ;;  %v7660_v15 = vld [vmem:[#allocation8 + $0x27c] ss:$28 sps:$4 sm:$0xff]  }
 0x19b   :  { %2029 = vmatprep.subr.bf16.mxu0 %v7582_v17  ;;  %2072 = vmatprep.subr.bf16.mxu1 %v7585_v18  ;;  %v7663_v16 = vld [vmem:[#allocation8 + $0x5fc] ss:$28 sps:$4 sm:$0xff]  }
 0x19c   :  { %v7658_v17 = vld [vmem:[#allocation8 + $0x278] ss:$28 sps:$4 sm:$0xff]  }
 0x19d   :  { %v7661_v18 = vld [vmem:[#allocation8 + $0x5f8] ss:$28 sps:$4 sm:$0xff]  }
 0x19e   :  { %2030 = vmatpush2.bf16.msra.mxu0 %v7580_v19  ;;  %2073 = vmatpush2.bf16.msra.mxu1 %v7583_v20  ;;  %v7666_v19 = vld [vmem:[#allocation8 + $0x244] ss:$28 sps:$4 sm:$0xff]  }
 0x19f   :  { %2085 = vmatprep.subr.bf16.mxu0 %v7588_v21  ;;  %2128 = vmatprep.subr.bf16.mxu1 %v7591_v22  ;;  %v7669_v20 = vld [vmem:[#allocation8 + $0x5c4] ss:$28 sps:$4 sm:$0xff]  }
 0x1a0   :  { %v7664_v21 = vld [vmem:[#allocation8 + $0x240] ss:$28 sps:$4 sm:$0xff]  }
 0x1a1   :  { %2032 = vmatmul.mubr.bf16.vlgmr.msra.gmra.mxu0 %v8112_v13  ;;  %2075 = vmatmul.mubr.bf16.vlgmr.msra.gmra.mxu1 %v8114_v14  ;;  %v7667_v22 = vld [vmem:[#allocation8 + $0x5c0] ss:$28 sps:$4 sm:$0xff]  }
 0x1a2   :  { %2086 = vmatpush1.bf16.msra.mxu0 %v7586_v23  ;;  %2117 = vmatprep.mubr.bf16.mxu0 %v8108_v9  ;;  %v7672_v23 = vld [vmem:[#allocation8 + $0x20c] ss:$28 sps:$4 sm:$0xff]  }
 0x1a3   :  { %2129 = vmatpush1.bf16.msra.mxu1 %v7589_v24  ;;  %2160 = vmatprep.mubr.bf16.mxu1 %v8110_v10  ;;  %v7675_v24 = vld [vmem:[#allocation8 + $0x58c] ss:$28 sps:$4 sm:$0xff]  }
 0x1a4   :  { %2087 = vmatprep.subr.bf16.mxu0 %v7594_v25  ;;  %2130 = vmatprep.subr.bf16.mxu1 %v7597_v26  ;;  %v7670_v25 = vld [vmem:[#allocation8 + $0x208] ss:$28 sps:$4 sm:$0xff]  }
 0x1a5   :  { %v7673_v26 = vld [vmem:[#allocation8 + $0x588] ss:$28 sps:$4 sm:$0xff]  }
 0x1a6   :  { %2088 = vmatpush1.bf16.msra.mxu0 %v7592_v27  ;;  %v7678_v27 = vld [vmem:[#allocation8 + $0x1d4] ss:$28 sps:$4 sm:$0xff]  }
 0x1a7   :  { %2131 = vmatpush1.bf16.msra.mxu1 %v7595_v28  ;;  %2089 = vmatprep.subr.bf16.mxu0 %v7600_v29  ;;  %v7681_v28 = vld [vmem:[#allocation8 + $0x554] ss:$28 sps:$4 sm:$0xff]  }
 0x1a8   :  { %2132 = vmatprep.subr.bf16.mxu1 %v7603_v30  ;;  %v7676_v29 = vld [vmem:[#allocation8 + $0x1d0] ss:$28 sps:$4 sm:$0xff]  }
 0x1a9   :  { %v7679_v30 = vld [vmem:[#allocation8 + $0x550] ss:$28 sps:$4 sm:$0xff]  }
 0x1aa   :  { %2090 = vmatpush1.bf16.msra.mxu0 %v7598_v31  ;;  %v7682_v31 = vld [vmem:[#allocation8 + $0x360] ss:$28 sps:$4 sm:$0xff]  }
 0x1ab   :  { %2133 = vmatpush1.bf16.msra.mxu1 %v7601_v32  ;;  %2091 = vmatprep.subr.bf16.mxu0 %v7606_v33  ;;  %v7683_v32 = vld [vmem:[#allocation8 + $0x6e0] ss:$28 sps:$4 sm:$0xff]  }
 0x1ac   :  { %2134 = vmatprep.subr.bf16.mxu1 %v7609_v34  ;;  %v7684_v33 = vld [vmem:[#allocation8 + $0x1a0] ss:$28 sps:$4 sm:$0xff]  }
 0x1ad   :  { %v7685_v34 = vld [vmem:[#allocation8 + $0x520] ss:$28 sps:$4 sm:$0xff]  }
 0x1ae   :  { %2092 = vmatpush1.bf16.msra.mxu0 %v7604_v35  ;;  %v7686_v35 = vld [vmem:[#allocation8 + $0x328] ss:$28 sps:$4 sm:$0xff]  }
 0x1af   :  { %2135 = vmatpush1.bf16.msra.mxu1 %v7607_v36  ;;  %2093 = vmatprep.subr.bf16.mxu0 %v7612_v37  ;;  %v7687_v36 = vld [vmem:[#allocation8 + $0x6a8] ss:$28 sps:$4 sm:$0xff]  }
 0x1b0   :  { %2136 = vmatprep.subr.bf16.mxu1 %v7615_v43  ;;  %v7688_v37 = vld [vmem:[#allocation8 + $0x168] ss:$28 sps:$4 sm:$0xff]  }
 0x1b1   :  { %v7689_v43 = vld [vmem:[#allocation8 + $0x4e8] ss:$28 sps:$4 sm:$0xff]  }
 0x1b2   :  { %2094 = vmatpush1.bf16.msra.mxu0 %v7610_v44  ;;  %v7690_v44 = vld [vmem:[#allocation8 + $0x2f0] ss:$28 sps:$4 sm:$0xff]  }
 0x1b3   :  { %2137 = vmatpush1.bf16.msra.mxu1 %v7613_v45  ;;  %2095 = vmatprep.subr.bf16.mxu0 %v7618_v46  ;;  %v7691_v45 = vld [vmem:[#allocation8 + $0x670] ss:$28 sps:$4 sm:$0xff]  }
 0x1b4   :  { %2138 = vmatprep.subr.bf16.mxu1 %v7621_v47  ;;  %v7692_v46 = vld [vmem:[#allocation8 + $0x130] ss:$28 sps:$4 sm:$0xff]  }
 0x1b5   :  { %v7693_v47 = vld [vmem:[#allocation8 + $0x4b0] ss:$28 sps:$4 sm:$0xff]  }
 0x1b6   :  { %2096 = vmatpush1.bf16.msra.mxu0 %v7616_v48  ;;  %v7694_v48 = vld [vmem:[#allocation8 + $0x2b8] ss:$28 sps:$4 sm:$0xff]  }
 0x1b7   :  { %2139 = vmatpush1.bf16.msra.mxu1 %v7619_v49  ;;  %2097 = vmatprep.subr.bf16.mxu0 %v7624_v50  ;;  %v7695_v49 = vld [vmem:[#allocation8 + $0x638] ss:$28 sps:$4 sm:$0xff]  }
 0x1b8   :  { %2140 = vmatprep.subr.bf16.mxu1 %v7627_v51  ;;  %v7696_v50 = vld [vmem:[#allocation8 + $0xf8] ss:$28 sps:$4 sm:$0xff]   ;;  %v7698_v51 = vld [vmem:[#allocation8 + $0x280] ss:$28 sps:$4 sm:$0xff]  }
 0x1ba   :  { %2098 = vmatpush1.bf16.msra.mxu0 %v7622_v52  ;;  %v7699_v52 = vld [vmem:[#allocation8 + $0x600] ss:$28 sps:$4 sm:$0xff]  }
 0x1bb   :  { %2141 = vmatpush1.bf16.msra.mxu1 %v7625_v53  ;;  %2099 = vmatprep.subr.bf16.mxu0 %v7630_v54  ;;  %v7701_v53 = vld [vmem:[#allocation8 + $0x440] ss:$28 sps:$4 sm:$0xff]   ;;  %v7702_v54 = vld [vmem:[#allocation8 + $0x248] ss:$28 sps:$4 sm:$0xff]  }
 0x1bc   :  { %2142 = vmatprep.subr.bf16.mxu1 %v7633_v55  ;;  %v7703_v55 = vld [vmem:[#allocation8 + $0x5c8] ss:$28 sps:$4 sm:$0xff]  }
 0x1be   :  { %2100 = vmatpush1.bf16.msra.mxu0 %v7628_v56  ;;  %v7704_v56 = vld [vmem:[#allocation8 + $0x88] ss:$28 sps:$4 sm:$0xff]  }
 0x1bf   :  { %2143 = vmatpush1.bf16.msra.mxu1 %v7631_v57  ;;  %2101 = vmatprep.subr.bf16.mxu0 %v7636_v58  ;;  %v7705_v57 = vld [vmem:[#allocation8 + $0x408] ss:$28 sps:$4 sm:$0xff]   ;;  %v7706_v58 = vld [vmem:[#allocation8 + $0x210] ss:$28 sps:$4 sm:$0xff]  }
 0x1c0   :  { %2144 = vmatprep.subr.bf16.mxu1 %v7639_v59  ;;  %v7707_v59 = vld [vmem:[#allocation8 + $0x590] ss:$28 sps:$4 sm:$0xff]  }
 0x1c2   :  { %2102 = vmatpush2.bf16.msra.mxu0 %v7634_v60  ;;  %v7708_v60 = vld [vmem:[#allocation8 + $0x50] ss:$28 sps:$4 sm:$0xff]  }
 0x1c3   :  { %2145 = vmatpush2.bf16.msra.mxu1 %v7637_v61  ;;  %2103 = vmatprep.subr.bf16.mxu0 %v7642_v62  ;;  %v7709_v61 = vld [vmem:[#allocation8 + $0x3d0] ss:$28 sps:$4 sm:$0xff]   ;;  %v7710_v62 = vld [vmem:[#allocation8 + $0x1d8] ss:$28 sps:$4 sm:$0xff]  }
 0x1c4   :  { %2146 = vmatprep.subr.bf16.mxu1 %v7645_v63  ;;  %v7711_v63 = vld [vmem:[#allocation8 + $0x558] ss:$28 sps:$4 sm:$0xff]  }
 0x1c6   :  { %2104 = vmatpush2.bf16.msra.mxu0 %v7640_v1  ;;  %v2330_v1 = vld [vmem:[#allocation11 + $0x1c0] sm:$0xff] }
 0x1c7   :  { %2147 = vmatpush2.bf16.msra.mxu1 %v7643_v2  ;;  %2105 = vmatprep.subr.bf16.mxu0 %v7648_v3  ;;  %v2334_v2 = vld [vmem:[#allocation11 + $0x1e0] sm:$0xff] }
 0x1c8   :  { %2148 = vmatprep.subr.bf16.mxu1 %v7651_v4  ;;  %v2458_v3 = vld [vmem:[#allocation11 + $0x5c0] sm:$0xff] }
 0x1c9   :  { %v2462_v4 = vld [vmem:[#allocation11 + $0x5e0] sm:$0xff] }
 0x1ca   :  { %2106 = vmatpush2.bf16.msra.mxu0 %v7646_v5  ;;  %v7712_v5 = vld [vmem:[#allocation8 + $0x18] ss:$28 sps:$4 sm:$0xff]  }
 0x1cb   :  { %2149 = vmatpush2.bf16.msra.mxu1 %v7649_v6  ;;  %2107 = vmatprep.subr.bf16.mxu0 %v7654_v7  ;;  %v7713_v6 = vld [vmem:[#allocation8 + $0x398] ss:$28 sps:$4 sm:$0xff]   ;;  %v6736_v7 = vcombine.high %v2330_v1, %v2334_v2 }
 0x1cc   :  { %2150 = vmatprep.subr.bf16.mxu1 %v7657_v8  ;;  %v2322_v8 = vld [vmem:[#allocation11 + $0x180] sm:$0xff] }
 0x1ce   :  { %2108 = vmatpush2.bf16.msra.mxu0 %v7652_v11  ;;  %v2326_v11 = vld [vmem:[#allocation11 + $0x1a0] sm:$0xff] }
 0x1cf   :  { %2151 = vmatpush2.bf16.msra.mxu1 %v7655_v12  ;;  %2109 = vmatprep.subr.bf16.mxu0 %v7660_v15  ;;  %v6864_v12 = vcombine.high %v2458_v3, %v2462_v4  ;;  %v2450_v15 = vld [vmem:[#allocation11 + $0x580] sm:$0xff] }
 0x1d0   :  { %2152 = vmatprep.subr.bf16.mxu1 %v7663_v16  ;;  %v2454_v16 = vld [vmem:[#allocation11 + $0x5a0] sm:$0xff] }
 0x1d2   :  { %2110 = vmatpush2.bf16.msra.mxu0 %v7658_v17  ;;  %v6735_v17 = vcombine.low %v2330_v1, %v2334_v2  ;;  %v2402_v1 = vld [vmem:[#allocation11 + $0x400] sm:$0xff] }
 0x1d3   :  { %2153 = vmatpush2.bf16.msra.mxu1 %v7661_v18  ;;  %2111 = vmatprep.subr.bf16.mxu0 %v7666_v19  ;;  %v6728_v18 = vcombine.high %v2322_v8, %v2326_v11  ;;  %v6863_v19 = vcombine.low %v2458_v3, %v2462_v4  ;;  %v2406_v2 = vld [vmem:[#allocation11 + $0x420] sm:$0xff] }
 0x1d4   :  { %2154 = vmatprep.subr.bf16.mxu1 %v7669_v20  ;;  %v2314_v20 = vld [vmem:[#allocation11 + $0x140] sm:$0xff] }
 0x1d6   :  { %2112 = vmatpush2.bf16.msra.mxu0 %v7664_v21  ;;  %v2318_v21 = vld [vmem:[#allocation11 + $0x160] sm:$0xff] }
 0x1d7   :  { %2155 = vmatpush2.bf16.msra.mxu1 %v7667_v22  ;;  %2113 = vmatprep.subr.bf16.mxu0 %v7672_v23  ;;  %v6856_v22 = vcombine.high %v2450_v15, %v2454_v16  ;;  %v2442_v23 = vld [vmem:[#allocation11 + $0x540] sm:$0xff] }
 0x1d8   :  { %2156 = vmatprep.subr.bf16.mxu1 %v7675_v24  ;;  %v2446_v24 = vld [vmem:[#allocation11 + $0x560] sm:$0xff] }
 0x1da   :  { %2114 = vmatpush2.bf16.msra.mxu0 %v7670_v25  ;;  %v6727_v25 = vcombine.low %v2322_v8, %v2326_v11  ;;  %v6808_v8 = vcombine.high %v2402_v1, %v2406_v2  ;;  %v2522_v11 = vld [vmem:[#allocation11 + $0x7c0] sm:$0xff] }
 0x1db   :  { %2157 = vmatpush2.bf16.msra.mxu1 %v7673_v26  ;;  %2115 = vmatprep.subr.bf16.mxu0 %v7678_v27  ;;  %v6720_v26 = vcombine.high %v2314_v20, %v2318_v21  ;;  %v6855_v27 = vcombine.low %v2450_v15, %v2454_v16 }
 0x1dc   :  { %2158 = vmatprep.subr.bf16.mxu1 %v7681_v28  ;;  %v2306_v28 = vld [vmem:[#allocation11 + $0x100] sm:$0xff] }
 0x1de   :  { %2116 = vmatpush2.bf16.msra.mxu0 %v7676_v29  ;;  %v2310_v29 = vld [vmem:[#allocation11 + $0x120] sm:$0xff] }
 0x1df   :  { %2159 = vmatpush2.bf16.msra.mxu1 %v7679_v30  ;;  %7192 = vmatprep.subr.bf16.mxu0 %v7682_v31  ;;  %v6848_v30 = vcombine.high %v2442_v23, %v2446_v24  ;;  %v2434_v31 = vld [vmem:[#allocation11 + $0x500] sm:$0xff] }
 0x1e0   :  { %7214 = vmatprep.subr.bf16.mxu1 %v7683_v32  ;;  %v2438_v32 = vld [vmem:[#allocation11 + $0x520] sm:$0xff] }
 0x1e1   :  { %2118 = vmatmul.mubr.bf16.vlgmr.msra.gmra.mxu0 %v8112_v13 }
 0x1e2   :  { %2161 = vmatmul.mubr.bf16.vlgmr.msra.gmra.mxu1 %v8114_v14  ;;  %7193 = vmatpush3.bf16.msra.mxu0 %v7684_v33  ;;  %v6719_v33 = vcombine.low %v2314_v20, %v2318_v21  ;;  %v2514_v21 = vld [vmem:[#allocation11 + $0x780] sm:$0xff] }
 0x1e3   :  { %2203 = vmatprep.mubr.bf16.mxu0 %v8108_v9  ;;  %7215 = vmatpush3.bf16.msra.mxu1 %v7685_v34  ;;  %v7697_v9 = vld [vmem:[#allocation8 + $0x478] ss:$28 sps:$4 sm:$0xff]   ;;  %v6847_v34 = vcombine.low %v2442_v23, %v2446_v24  ;;  %v8132_v24 = vld [vmem:[#allocation10] sm:$0xff] }
 0x1e4   :  { %2244 = vmatprep.mubr.bf16.mxu1 %v8110_v10  ;;  %7194 = vmatprep.subr.bf16.mxu0 %v7686_v35  ;;  %v7700_v10 = vld [vmem:[#allocation8 + $0xc0] ss:$28 sps:$4 sm:$0xff]   ;;  %v2298_v35 = vld [vmem:[#allocation11 + $0xc0] sm:$0xff] }
 0x1e5   :  { %7216 = vmatprep.subr.bf16.mxu1 %v7687_v36  ;;  %v6840_v36 = vcombine.high %v2434_v31, %v2438_v32 }
 0x1e6   :  { %7195 = vmatpush3.bf16.msra.mxu0 %v7688_v37  ;;  %v2426_v37 = vld [vmem:[#allocation11 + $0x4c0] sm:$0xff] }
 0x1e7   :  { %7217 = vmatpush3.bf16.msra.mxu1 %v7689_v43  ;;  %7196 = vmatprep.subr.bf16.mxu0 %v7690_v44  ;;  %v2430_v43 = vld [vmem:[#allocation11 + $0x4e0] sm:$0xff]  ;;  %v6711_v44 = vcombine.low %v2306_v28, %v2310_v29 }
 0x1e8   :  { %7218 = vmatprep.subr.bf16.mxu1 %v7691_v45 }
 0x1ea   :  { %7197 = vmatpush3.bf16.msra.mxu0 %v7692_v46  ;;  %v6839_v46 = vcombine.low %v2434_v31, %v2438_v32 }
 0x1eb   :  { %7219 = vmatpush3.bf16.msra.mxu1 %v7693_v47  ;;  %7198 = vmatprep.subr.bf16.mxu0 %v7694_v48  ;;  %v2290_v47 = vld [vmem:[#allocation11 + $0x80] sm:$0xff] }
 0x1ec   :  { %7220 = vmatprep.subr.bf16.mxu1 %v7695_v49  ;;  %v2294_v48 = vld [vmem:[#allocation11 + $0xa0] sm:$0xff]  ;;  %v6832_v49 = vcombine.high %v2426_v37, %v2430_v43 }
 0x1ee   :  { %7199 = vmatpush3.bf16.msra.mxu0 %v7696_v50  ;;  %v2418_v50 = vld [vmem:[#allocation11 + $0x480] sm:$0xff] }
 0x1ef   :  { %7221 = vmatpush3.bf16.msra.mxu1 %v7697_v9  ;;  %7200 = vmatprep.subr.bf16.mxu0 %v7698_v51  ;;  %v2422_v9 = vld [vmem:[#allocation11 + $0x4a0] sm:$0xff] }
 0x1f0   :  { %7222 = vmatprep.subr.bf16.mxu1 %v7699_v52  ;;  %v6696_v52 = vcombine.high %v2290_v47, %v2294_v48 }
 0x1f2   :  { %7201 = vmatpush3.bf16.msra.mxu0 %v7700_v10  ;;  %v6831_v10 = vcombine.low %v2426_v37, %v2430_v43 }
 0x1f3   :  { %7223 = vmatpush3.bf16.msra.mxu1 %v7701_v53  ;;  %7202 = vmatprep.subr.bf16.mxu0 %v7702_v54  ;;  %v2282_v53 = vld [vmem:[#allocation11 + $0x40] sm:$0xff] }
 0x1f4   :  { %7224 = vmatprep.subr.bf16.mxu1 %v7703_v55  ;;  %v2286_v54 = vld [vmem:[#allocation11 + $0x60] sm:$0xff]  ;;  %v6824_v55 = vcombine.high %v2418_v50, %v2422_v9 }
 0x1f5   :  { %v6687_v3 = vcombine.low %v2282_v53, %v2286_v54 }
 0x1f6   :  { %7203 = vmatpush3.bf16.msra.mxu0 %v7704_v56  ;;  %v2410_v56 = vld [vmem:[#allocation11 + $0x440] sm:$0xff] }
 0x1f7   :  { %7225 = vmatpush3.bf16.msra.mxu1 %v7705_v57  ;;  %7204 = vmatprep.subr.bf16.mxu0 %v7706_v58  ;;  %v2414_v57 = vld [vmem:[#allocation11 + $0x460] sm:$0xff]  ;;  %v6695_v58 = vcombine.low %v2290_v47, %v2294_v48 }
 0x1f8   :  { %7226 = vmatprep.subr.bf16.mxu1 %v7707_v59  ;;  %v6688_v59 = vcombine.high %v2282_v53, %v2286_v54 }
 0x1fa   :  { %7205 = vmatpush3.bf16.msra.mxu0 %v7708_v60  ;;  %v6823_v60 = vcombine.low %v2418_v50, %v2422_v9  ;;  %v2502_v50 = vld [vmem:[#allocation11 + $0x720] sm:$0xff] }
 0x1fb   :  { %7227 = vmatpush3.bf16.msra.mxu1 %v7709_v61  ;;  %7206 = vmatprep.subr.bf16.mxu0 %v7710_v62  ;;  %v2274_v61 = vld [vmem:[#allocation11] sm:$0xff] }
 0x1fc   :  { %7228 = vmatprep.subr.bf16.mxu1 %v7711_v63  ;;  %v2278_v62 = vld [vmem:[#allocation11 + $0x20] sm:$0xff]  ;;  %v6816_v63 = vcombine.high %v2410_v56, %v2414_v57 }
 0x1fd   :  { %v6680_v4 = vcombine.high %v2274_v61, %v2278_v62  ;;  %v6679_v15 = vcombine.low %v2274_v61, %v2278_v62 }
 0x1fe   :  { %7207 = vmatpush3.bf16.msra.mxu0 %v7712_v5  ;;  %v6815_v5 = vcombine.low %v2410_v56, %v2414_v57  ;;  %v2366_v56 = vld [vmem:[#allocation11 + $0x2e0] sm:$0xff] }
 0x1ff   :  { %7229 = vmatpush3.bf16.msra.mxu1 %v7713_v6  ;;  %5004 = vmatprep.subr.bf16.mxu0 %v6736_v7  ;;  %v2394_v6 = vld [vmem:[#allocation11 + $0x3c0] sm:$0xff] }
 0x200   :  { %5047 = vmatprep.subr.bf16.mxu1 %v6864_v12  ;;  %v2398_v7 = vld [vmem:[#allocation11 + $0x3e0] sm:$0xff] }
 0x201   :  { %2204 = vmatmul.mubr.bf16.vlgmr.msra.gmra.mxu0 %v8112_v13  ;;  %v6712_v13 = vcombine.high %v2306_v28, %v2310_v29  ;;  %v2526_v12 = vld [vmem:[#allocation11 + $0x7e0] sm:$0xff]  ;;  %v6800_v16 = vcombine.high %v2394_v6, %v2398_v7  ;;  %v6799_v23 = vcombine.low %v2394_v6, %v2398_v7 }
 0x202   :  { %2245 = vmatmul.mubr.bf16.vlgmr.msra.gmra.mxu1 %v8114_v14  ;;  %5005 = vmatpush1.bf16.msra.mxu0 %v6735_v17  ;;  %v2302_v14 = vld [vmem:[#allocation11 + $0xe0] sm:$0xff]  ;;  %v6807_v17 = vcombine.low %v2402_v1, %v2406_v2  ;;  %v6928_v20 = vcombine.high %v2522_v11, %v2526_v12 }
 0x203   :  { %5006 = vmatprep.subr.bf16.mxu0 %v6728_v18  ;;  %5048 = vmatpush1.bf16.msra.mxu1 %v6863_v19  ;;  %v6704_v45 = vcombine.high %v2298_v35, %v2302_v14  ;;  %v6703_v51 = vcombine.low %v2298_v35, %v2302_v14  ;;  %v2386_v18 = vld [vmem:[#allocation11 + $0x380] sm:$0xff] }
 0x204   :  { %5049 = vmatprep.subr.bf16.mxu1 %v6856_v22  ;;  %v2390_v19 = vld [vmem:[#allocation11 + $0x3a0] sm:$0xff] }
 0x205   :  { %v2518_v22 = vld [vmem:[#allocation11 + $0x7a0] sm:$0xff] }
 0x206   :  { %5007 = vmatpush1.bf16.msra.mxu0 %v6727_v25  ;;  %v6792_v25 = vcombine.high %v2386_v18, %v2390_v19  ;;  %v2378_v28 = vld [vmem:[#allocation11 + $0x340] sm:$0xff]  ;;  %v6919_v37 = vcombine.low %v2514_v21, %v2518_v22 }
 0x207   :  { %5008 = vmatprep.subr.bf16.mxu0 %v6720_v26  ;;  %5050 = vmatpush1.bf16.msra.mxu1 %v6855_v27  ;;  %v6927_v26 = vcombine.low %v2522_v11, %v2526_v12  ;;  %v733_v27 = vrot.slane %v8132_v24, %v8093_v39  ;;  %v2382_v29 = vld [vmem:[#allocation11 + $0x360] sm:$0xff] }
 0x208   :  { %5051 = vmatprep.subr.bf16.mxu1 %v6848_v30  ;;  %v6920_v30 = vcombine.high %v2514_v21, %v2518_v22  ;;  %v6783_v9 = vcombine.low %v2378_v28, %v2382_v29  ;;  %v2482_v7 = vld [vmem:[#allocation11 + $0x680] sm:$0xff] }
 0x209   :  { %v2474_v21 = vld [vmem:[#allocation11 + $0x640] sm:$0xff] }
 0x20a   :  { %5009 = vmatpush1.bf16.msra.mxu0 %v6719_v33  ;;  %v2506_v33 = vld [vmem:[#allocation11 + $0x740] sm:$0xff] }
 0x20b   :  { %5010 = vmatprep.subr.bf16.mxu0 %v6712_v13  ;;  %5052 = vmatpush1.bf16.msra.mxu1 %v6847_v34  ;;  %v2510_v13 = vld [vmem:[#allocation11 + $0x760] sm:$0xff]  ;;  %v6791_v34 = vcombine.low %v2386_v18, %v2390_v19 }
 0x20c   :  { %5053 = vmatprep.subr.bf16.mxu1 %v6840_v36  ;;  %v6784_v36 = vcombine.high %v2378_v28, %v2382_v29  ;;  %v2350_v18 = vld [vmem:[#allocation11 + $0x260] sm:$0xff] }
 0x20d   :  { %v2478_v22 = vld [vmem:[#allocation11 + $0x660] sm:$0xff] }
 0x20e   :  { %5011 = vmatpush1.bf16.msra.mxu0 %v6711_v44  ;;  %v2370_v44 = vld [vmem:[#allocation11 + $0x300] sm:$0xff] }
 0x20f   :  { %5012 = vmatprep.subr.bf16.mxu0 %v6704_v45  ;;  %5054 = vmatpush1.bf16.msra.mxu1 %v6839_v46  ;;  %v2374_v45 = vld [vmem:[#allocation11 + $0x320] sm:$0xff]  ;;  %v6912_v46 = vcombine.high %v2506_v33, %v2510_v13 }
 0x210   :  { %5055 = vmatprep.subr.bf16.mxu1 %v6832_v49  ;;  %v2498_v49 = vld [vmem:[#allocation11 + $0x700] sm:$0xff]  ;;  %v6775_v62 = vcombine.low %v2370_v44, %v2374_v45 }
 0x211   :  { %v6904_v57 = vcombine.high %v2498_v49, %v2502_v50  ;;  %v6903_v1 = vcombine.low %v2498_v49, %v2502_v50  ;;  %v2338_v28 = vld [vmem:[#allocation11 + $0x200] sm:$0xff] }
 0x212   :  { %5013 = vmatpush1.bf16.msra.mxu0 %v6703_v51  ;;  %v2342_v29 = vld [vmem:[#allocation11 + $0x220] sm:$0xff] }
 0x213   :  { %5014 = vmatprep.subr.bf16.mxu0 %v6696_v52  ;;  %5056 = vmatpush1.bf16.msra.mxu1 %v6831_v10  ;;  %v6776_v52 = vcombine.high %v2370_v44, %v2374_v45  ;;  %v6911_v10 = vcombine.low %v2506_v33, %v2510_v13  ;;  %v2466_v13 = vld [vmem:[#allocation11 + $0x600] sm:$0xff] }
 0x214   :  { %5057 = vmatprep.subr.bf16.mxu1 %v6824_v55  ;;  %v2362_v55 = vld [vmem:[#allocation11 + $0x2c0] sm:$0xff] }
 0x215   :  { %v6767_v12 = vcombine.low %v2362_v55, %v2366_v56  ;;  %v2586_v44 = vld [vmem:[#allocation11 + $0x9c0] sm:$0xff] }
 0x216   :  { %5015 = vmatpush1.bf16.msra.mxu0 %v6695_v58  ;;  %v2590_v45 = vld [vmem:[#allocation11 + $0x9e0] sm:$0xff] }
 0x217   :  { %5016 = vmatprep.subr.bf16.mxu0 %v6688_v59  ;;  %5058 = vmatpush1.bf16.msra.mxu1 %v6823_v60  ;;  %v2490_v59 = vld [vmem:[#allocation11 + $0x6c0] sm:$0xff] }
 0x218   :  { %5059 = vmatprep.subr.bf16.mxu1 %v6816_v63  ;;  %v2494_v60 = vld [vmem:[#allocation11 + $0x6e0] sm:$0xff]  ;;  %v6768_v63 = vcombine.high %v2362_v55, %v2366_v56 }
 0x219   :  { %v6896_v6 = vcombine.high %v2490_v59, %v2494_v60  ;;  %v8152_v49 = vld [vmem:[#allocation11 + $0xde0] sm:$0xff] }
 0x21a   :  { %5017 = vmatpush1.bf16.msra.mxu0 %v6687_v3  ;;  %v2570_v56 = vld [vmem:[#allocation11 + $0x940] sm:$0xff] }
 0x21b   :  { %5018 = vmatprep.subr.bf16.mxu0 %v6680_v4  ;;  %5060 = vmatpush1.bf16.msra.mxu1 %v6815_v5  ;;  %v2354_v4 = vld [vmem:[#allocation11 + $0x280] sm:$0xff] }
 0x21c   :  { %5061 = vmatprep.subr.bf16.mxu1 %v6808_v8  ;;  %v2358_v5 = vld [vmem:[#allocation11 + $0x2a0] sm:$0xff] }
 0x21d   :  { %v2486_v8 = vld [vmem:[#allocation11 + $0x6a0] sm:$0xff] }
 0x21e   :  { %5019 = vmatpush1.bf16.msra.mxu0 %v6679_v15  ;;  %v6760_v15 = vcombine.high %v2354_v4, %v2358_v5  ;;  %v6888_v19 = vcombine.high %v2482_v7, %v2486_v8 }
 0x21f   :  { %5020 = vmatprep.subr.bf16.mxu0 %v6800_v16  ;;  %5062 = vmatpush1.bf16.msra.mxu1 %v6807_v17  ;;  %v6895_v16 = vcombine.low %v2490_v59, %v2494_v60  ;;  %v2346_v17 = vld [vmem:[#allocation11 + $0x240] sm:$0xff] }
 0x220   :  { %5063 = vmatprep.subr.bf16.mxu1 %v6928_v20  ;;  %v729_v20 = vrot.slane %v8132_v24, %v8099_v41  ;;  %v2562_v60 = vld [vmem:[#allocation11 + $0x900] sm:$0xff] }
 0x221   :  { %v8136_v31 = vpop.f32.mrf.mxu0  ;;  %v8138_v32 = vpop.f32.mrf.mxu1 }
 0x222   :  { %5021 = vmatpush2.bf16.msra.mxu0 %v6799_v23  ;;  %v6759_v23 = vcombine.low %v2354_v4, %v2358_v5  ;;  %v1948_v33 = vadd.f32 %v8136_v31, %v729_v20  ;;  %v6743_v31 = vcombine.low %v2338_v28, %v2342_v29  ;;  %v2546_v5 = vld [vmem:[#allocation11 + $0x880] sm:$0xff] }
 0x223   :  { %v1949_v35 = vpop.f32.mrf.mxu0  ;;  %v1992_v14 = vpop.f32.mrf.mxu1  ;;  %5022 = vmatprep.subr.bf16.mxu0 %v6792_v25  ;;  %5064 = vmatpush2.bf16.msra.mxu1 %v6927_v26  ;;  %v6752_v26 = vcombine.high %v2346_v17, %v2350_v18 }
 0x224   :  { %v1950_v43 = vadd.f32 %v1949_v35, %v733_v27  ;;  %5065 = vmatprep.subr.bf16.mxu1 %v6920_v30  ;;  %v6880_v30 = vcombine.high %v2474_v21, %v2478_v22  ;;  %v6751_v35 = vcombine.low %v2346_v17, %v2350_v18  ;;  %v8161_v17 = vld [vmem:[#allocation11 + $0x1e8] sm:$0xff] }
 0x225   :  { %v1951_v47 = vpop.f32.mrf.mxu0  ;;  %v8140_v48 = vpop.f32.mrf.mxu1 }
 0x226   :  { %5023 = vmatpush2.bf16.msra.mxu0 %v6791_v34  ;;  %v1993_v53 = vadd.f32 %v1992_v14, %v1950_v43  ;;  %v1952_v25 = vadd.f32 %v1951_v47, %v729_v20  ;;  %v2470_v34 = vld [vmem:[#allocation11 + $0x620] sm:$0xff] }
 0x227   :  { %v1953_v51 = vpop.f32.mrf.mxu0  ;;  %5024 = vmatprep.subr.bf16.mxu0 %v6784_v36  ;;  %5066 = vmatpush2.bf16.msra.mxu1 %v6919_v37  ;;  %v1996_v58 = vpop.f32.mrf.mxu1  ;;  %v6744_v36 = vcombine.high %v2338_v28, %v2342_v29  ;;  %v6879_v37 = vcombine.low %v2474_v21, %v2478_v22  ;;  %v6872_v43 = vcombine.high %v2466_v13, %v2470_v34  ;;  %v8150_v47 = vld [vmem:[#allocation11 + $0xdc0] sm:$0xff] }
 0x228   :  { %v1954_v54 = vadd.f32 %v1953_v51, %v733_v27  ;;  %5067 = vmatprep.subr.bf16.mxu1 %v6912_v46  ;;  %v2254_v2 = vmax.f32 %v1993_v53, 0.0  ;;  %v6887_v27 = vcombine.low %v2482_v7, %v2486_v8  ;;  %v1995_v14 = vadd.f32 %v8140_v48, %v1952_v25  ;;  %v2578_v51 = vld [vmem:[#allocation11 + $0x980] sm:$0xff] }
 0x229   :  { %v1991_v46 = vadd.f32 %v8138_v32, %v1948_v33  ;;  %v6871_v48 = vcombine.low %v2466_v13, %v2470_v34  ;;  %v6991_v32 = vcombine.low %v2586_v44, %v2590_v45  ;;  %v2530_v21 = vld [vmem:[#allocation11 + $0x800] sm:$0xff] }
 0x22a   :  { %v1997_v61 = vadd.f32 %v1996_v58, %v1954_v54  ;;  %5025 = vmatpush2.bf16.msra.mxu0 %v6783_v9  ;;  %v2260_v50 = vmax.f32 %v1995_v14, 0.0  ;;  %v6992_v9 = vcombine.high %v2586_v44, %v2590_v45  ;;  %v2534_v22 = vld [vmem:[#allocation11 + $0x820] sm:$0xff] }
 0x22b   :  { %5026 = vmatprep.subr.bf16.mxu0 %v6776_v52  ;;  %5068 = vmatpush2.bf16.msra.mxu1 %v6911_v10  ;;  %v2582_v52 = vld [vmem:[#allocation11 + $0x9a0] sm:$0xff]  ;;  %v7120_v10 = vcombine.high %v8150_v47, %v8152_v49  ;;  %v2253_v53 = vmax.f32 %v1991_v46, 0.0  ;;  %v6936_v25 = vcombine.high %v2530_v21, %v2534_v22  ;;  %v6935_v28 = vcombine.low %v2530_v21, %v2534_v22 }
 0x22c   :  { %v2261_v3 = vmax.f32 %v1997_v61, 0.0  ;;  %5069 = vmatprep.subr.bf16.mxu1 %v6904_v57  ;;  %v6984_v55 = vcombine.high %v2578_v51, %v2582_v52  ;;  %v2574_v57 = vld [vmem:[#allocation11 + $0x960] sm:$0xff]  ;;  %v6983_v58 = vcombine.low %v2578_v51, %v2582_v52 }
 0x22d   :  { %v8156_v54 = vpack.c.bf16 %v2260_v50, %v2253_v53  ;;  %v6976_v59 = vcombine.high %v2570_v56, %v2574_v57  ;;  %v2566_v61 = vld [vmem:[#allocation11 + $0x920] sm:$0xff] }
 0x22e   :  { %v8142_v11 = vpack.c.bf16 %v2261_v3, %v2254_v2  ;;  %5027 = vmatpush2.bf16.msra.mxu0 %v6775_v62  ;;  %v6975_v62 = vcombine.low %v2570_v56, %v2574_v57  ;;  %v2558_v2 = vld [vmem:[#allocation11 + $0x8e0] sm:$0xff]  ;;  %v6967_v3 = vcombine.low %v2562_v60, %v2566_v61 }
 0x22f   :  { %5028 = vmatprep.subr.bf16.mxu0 %v6768_v63  ;;  %5070 = vmatpush2.bf16.msra.mxu1 %v6903_v1  ;;  %v6968_v63 = vcombine.high %v2562_v60, %v2566_v61  ;;  %v2554_v1 = vld [vmem:[#allocation11 + $0x8c0] sm:$0xff] }
 0x230   :  { %5036 = vmatprep.mubr.bf16.mxu0 %v8142_v11  ;;  %5071 = vmatprep.subr.bf16.mxu1 %v6896_v6  ;;  %v6960_v4 = vcombine.high %v2554_v1, %v2558_v2  ;;  %v2550_v6 = vld [vmem:[#allocation11 + $0x8a0] sm:$0xff]  ;;  %v6959_v7 = vcombine.low %v2554_v1, %v2558_v2 }
 0x231   :  { %v6952_v8 = vcombine.high %v2546_v5, %v2550_v6  ;;  %v2646_v33 = vld [vmem:[#allocation11 + $0xba0] sm:$0xff] }
 0x232   :  { %5029 = vmatpush2.bf16.msra.mxu0 %v6767_v12  ;;  %v2538_v12 = vld [vmem:[#allocation11 + $0x840] sm:$0xff] }
 0x233   :  { %5030 = vmatprep.subr.bf16.mxu0 %v6760_v15  ;;  %5072 = vmatpush2.bf16.msra.mxu1 %v6895_v16  ;;  %v2542_v15 = vld [vmem:[#allocation11 + $0x860] sm:$0xff]  ;;  %v8159_v16 = vld [vmem:[#allocation11 + $0x1c8] sm:$0xff] }
 0x234   :  { %5073 = vmatprep.subr.bf16.mxu1 %v6888_v19  ;;  %v6737_v18 = vcombine.low %v8159_v16, %v8161_v17  ;;  %v6951_v19 = vcombine.low %v2546_v5, %v2550_v6  ;;  %v6944_v20 = vcombine.high %v2538_v12, %v2542_v15  ;;  %v2634_v14 = vld [vmem:[#allocation11 + $0xb40] sm:$0xff] }
 0x235   :  { %v2630_v51 = vld [vmem:[#allocation11 + $0xb20] sm:$0xff] }
 0x236   :  { %5031 = vmatpush2.bf16.msra.mxu0 %v6759_v23  ;;  %v6943_v23 = vcombine.low %v2538_v12, %v2542_v15  ;;  %v2618_v61 = vld [vmem:[#allocation11 + $0xac0] sm:$0xff] }
 0x237   :  { %5032 = vmatprep.subr.bf16.mxu0 %v6752_v26  ;;  %5074 = vmatpush2.bf16.msra.mxu1 %v6887_v27  ;;  %v2650_v26 = vld [vmem:[#allocation11 + $0xbc0] sm:$0xff] }
 0x238   :  { %5075 = vmatprep.subr.bf16.mxu1 %v6880_v30  ;;  %v2654_v27 = vld [vmem:[#allocation11 + $0xbe0] sm:$0xff] }
 0x239   :  { %v7056_v29 = vcombine.high %v2650_v26, %v2654_v27  ;;  %v2642_v30 = vld [vmem:[#allocation11 + $0xb80] sm:$0xff]  ;;  %v7055_v13 = vcombine.low %v2650_v26, %v2654_v27 }
 0x23a   :  { %5033 = vmatpush2.bf16.msra.mxu0 %v6751_v35  ;;  %v7048_v34 = vcombine.high %v2642_v30, %v2646_v33  ;;  %v741_v35 = vrot.slane %v8132_v24, %v8096_v40  ;;  %v7047_v45 = vcombine.low %v2642_v30, %v2646_v33  ;;  %v2610_v6 = vld [vmem:[#allocation11 + $0xa80] sm:$0xff] }
 0x23b   :  { %5034 = vmatprep.subr.bf16.mxu0 %v6744_v36  ;;  %5076 = vmatpush2.bf16.msra.mxu1 %v6879_v37  ;;  %v2638_v36 = vld [vmem:[#allocation11 + $0xb60] sm:$0xff]  ;;  %v737_v37 = vrot.slane %v8132_v24, %v8102_v42 }
 0x23c   :  { %5077 = vmatprep.subr.bf16.mxu1 %v6872_v43  ;;  %v7040_v50 = vcombine.high %v2634_v14, %v2638_v36  ;;  %v2614_v12 = vld [vmem:[#allocation11 + $0xaa0] sm:$0xff] }
 0x23d   :  { %v2706_v15 = vld [vmem:[#allocation11 + $0xd80] sm:$0xff]  ;;  %v7016_v26 = vcombine.high %v2610_v6, %v2614_v12 }
 0x23e   :  { %5035 = vmatpush2.bf16.msra.mxu0 %v6743_v31  ;;  %v2602_v27 = vld [vmem:[#allocation11 + $0xa40] sm:$0xff] }
 0x23f   :  { %5078 = vmatpush2.bf16.msra.mxu1 %v6871_v48  ;;  %5090 = vmatprep.subr.bf16.mxu0 %v6992_v9  ;;  %v2626_v9 = vld [vmem:[#allocation11 + $0xb00] sm:$0xff] }
 0x240   :  { %5133 = vmatprep.subr.bf16.mxu1 %v7120_v10  ;;  %v7032_v57 = vcombine.high %v2626_v9, %v2630_v51  ;;  %v2698_v30 = vld [vmem:[#allocation11 + $0xd40] sm:$0xff] }
 0x241   :  { %5037 = vmatmul.mubr.bf16.vlgmr.msra.gmra.mxu0 %v8156_v54  ;;  %v2702_v33 = vld [vmem:[#allocation11 + $0xd60] sm:$0xff] }
 0x242   :  { %5091 = vmatpush1.bf16.msra.mxu0 %v6991_v32 }
 0x243   :  { %5092 = vmatprep.subr.bf16.mxu0 %v6984_v55  ;;  %v7039_v55 = vcombine.low %v2634_v14, %v2638_v36  ;;  %v2598_v14 = vld [vmem:[#allocation11 + $0xa20] sm:$0xff] }
 0x244   :  { %v2690_v36 = vld [vmem:[#allocation11 + $0xd00] sm:$0xff] }
 0x246   :  { %5093 = vmatpush1.bf16.msra.mxu0 %v6983_v58 }
 0x247   :  { %5094 = vmatprep.subr.bf16.mxu0 %v6976_v59 }
 0x24a   :  { %5095 = vmatpush1.bf16.msra.mxu0 %v6975_v62  ;;  %v2622_v62 = vld [vmem:[#allocation11 + $0xae0] sm:$0xff] }
 0x24b   :  { %5096 = vmatprep.subr.bf16.mxu0 %v6968_v63  ;;  %v7024_v5 = vcombine.high %v2618_v61, %v2622_v62  ;;  %v7023_v22 = vcombine.low %v2618_v61, %v2622_v62  ;;  %v2658_v62 = vld [vmem:[#allocation11 + $0xc00] sm:$0xff] }
 0x24e   :  { %5097 = vmatpush1.bf16.msra.mxu0 %v6967_v3  ;;  %v7031_v3 = vcombine.low %v2626_v9, %v2630_v51  ;;  %v2686_v9 = vld [vmem:[#allocation11 + $0xce0] sm:$0xff] }
 0x24f   :  { %5098 = vmatprep.subr.bf16.mxu0 %v6960_v4 }
 0x252   :  { %5099 = vmatpush1.bf16.msra.mxu0 %v6959_v7 }
 0x253   :  { %5100 = vmatprep.subr.bf16.mxu0 %v6952_v8 }
 0x256   :  { %5101 = vmatpush1.bf16.msra.mxu0 %v6951_v19  ;;  %v2710_v19 = vld [vmem:[#allocation11 + $0xda0] sm:$0xff] }
 0x257   :  { %5102 = vmatprep.subr.bf16.mxu0 %v6944_v20 }
 0x25a   :  { %5103 = vmatpush1.bf16.msra.mxu0 %v6943_v23  ;;  %v7119_v23 = vcombine.low %v8150_v47, %v8152_v49  ;;  %v2594_v47 = vld [vmem:[#allocation11 + $0xa00] sm:$0xff]  ;;  %v7104_v49 = vcombine.high %v2698_v30, %v2702_v33 }
 0x25b   :  { %5104 = vmatprep.subr.bf16.mxu0 %v6936_v25  ;;  %v6999_v51 = vcombine.low %v2594_v47, %v2598_v14 }
 0x25e   :  { %5105 = vmatpush1.bf16.msra.mxu0 %v6935_v28  ;;  %v7112_v28 = vcombine.high %v2706_v15, %v2710_v19 }
 0x25f   :  { %5106 = vmatprep.subr.bf16.mxu0 %v7056_v29  ;;  %v2606_v29 = vld [vmem:[#allocation11 + $0xa60] sm:$0xff] }
 0x261   :  { %v2033_v43 = vpop.f32.mrf.mxu0  ;;  %v2076_v44 = vpop.f32.mrf.mxu1 }
 0x262   :  { %5107 = vmatpush2.bf16.msra.mxu0 %v7055_v13  ;;  %v2034_v52 = vadd.f32 %v2033_v43, %v737_v37  ;;  %v7015_v13 = vcombine.low %v2610_v6, %v2614_v12  ;;  %v7007_v43 = vcombine.low %v2602_v27, %v2606_v29  ;;  %v744_v6 = vsub.s32 4, %v8090_v38 }
 0x263   :  { %v2035_v46 = vpop.f32.mrf.mxu0  ;;  %v2078_v31 = vpop.f32.mrf.mxu1  ;;  %5108 = vmatprep.subr.bf16.mxu0 %v7048_v34  ;;  %v7111_v34 = vcombine.low %v2706_v15, %v2710_v19 }
 0x264   :  { %v2036_v48 = vadd.f32 %v2035_v46, %v741_v35  ;;  %v2077_v63 = vadd.f32 %v2076_v44, %v2034_v52  ;;  %v7103_v44 = vcombine.low %v2698_v30, %v2702_v33  ;;  %v8178_v46 = vld [vmem:[#allocation11 + $0x5c8] sm:$0xff] }
 0x265   :  { %v2037_v10 = vpop.f32.mrf.mxu0  ;;  %v2080_v53 = vpop.f32.mrf.mxu1 }
 0x266   :  { %v2038_v32 = vadd.f32 %v2037_v10, %v737_v37  ;;  %5109 = vmatpush2.bf16.msra.mxu0 %v7047_v45  ;;  %v2079_v58 = vadd.f32 %v2078_v31, %v2036_v48  ;;  %v2255_v20 = vmax.f32 %v2077_v63, 0.0  ;;  %v2694_v37 = vld [vmem:[#allocation11 + $0xd20] sm:$0xff]  ;;  %v7000_v45 = vcombine.high %v2594_v47, %v2598_v14 }
 0x267   :  { %v2039_v56 = vpop.f32.mrf.mxu0  ;;  %5110 = vmatprep.subr.bf16.mxu0 %v7040_v50  ;;  %v2082_v1 = vpop.f32.mrf.mxu1  ;;  %v7096_v31 = vcombine.high %v2690_v36, %v2694_v37  ;;  %v8180_v50 = vld [vmem:[#allocation11 + $0x5e8] sm:$0xff]  ;;  %v2682_v48 = vld [vmem:[#allocation11 + $0xcc0] sm:$0xff]  ;;  %v7095_v52 = vcombine.low %v2690_v36, %v2694_v37 }
 0x268   :  { %v2081_v59 = vadd.f32 %v2080_v53, %v2038_v32  ;;  %v2040_v60 = vadd.f32 %v2039_v56, %v741_v35  ;;  %v2256_v7 = vmax.f32 %v2079_v58, 0.0  ;;  %v7008_v35 = vcombine.high %v2602_v27, %v2606_v29  ;;  %v2674_v32 = vld [vmem:[#allocation11 + $0xc80] sm:$0xff]  ;;  %v2451_v37 = vld [vmem:[#allocation11 + $0x588] sm:$0xff] }
 0x269   :  { %v6866_v10 = vcombine.high %v8178_v46, %v8180_v50  ;;  %v7088_v53 = vcombine.high %v2682_v48, %v2686_v9  ;;  %v7087_v56 = vcombine.low %v2682_v48, %v2686_v9  ;;  %v2666_v58 = vld [vmem:[#allocation11 + $0xc40] sm:$0xff] }
 0x26a   :  { %v2083_v2 = vadd.f32 %v2082_v1, %v2040_v60  ;;  %5111 = vmatpush2.bf16.msra.mxu0 %v7039_v55  ;;  %v2262_v4 = vmax.f32 %v2081_v59, 0.0  ;;  %v2678_v55 = vld [vmem:[#allocation11 + $0xca0] sm:$0xff] }
 0x26b   :  { %5112 = vmatprep.subr.bf16.mxu0 %v7032_v57  ;;  %v7080_v57 = vcombine.high %v2674_v32, %v2678_v55  ;;  %v2670_v59 = vld [vmem:[#allocation11 + $0xc60] sm:$0xff]  ;;  %v7079_v60 = vcombine.low %v2674_v32, %v2678_v55  ;;  %v2435_v32 = vld [vmem:[#allocation11 + $0x508] sm:$0xff] }
 0x26c   :  { %v2263_v8 = vmax.f32 %v2083_v2, 0.0  ;;  %v8173_v25 = vpack.c.bf16 %v2262_v4, %v2255_v20  ;;  %v7072_v61 = vcombine.high %v2666_v58, %v2670_v59  ;;  %v2662_v63 = vld [vmem:[#allocation11 + $0xc20] sm:$0xff]  ;;  %v7071_v1 = vcombine.low %v2666_v58, %v2670_v59  ;;  %v2439_v55 = vld [vmem:[#allocation11 + $0x528] sm:$0xff] }
 0x26d   :  { %v7064_v2 = vcombine.high %v2658_v62, %v2662_v63  ;;  %v6738_v4 = vcombine.high %v8159_v16, %v8161_v17  ;;  %v6841_v58 = vcombine.low %v2435_v32, %v2439_v55  ;;  %v2491_v17 = vld [vmem:[#allocation11 + $0x6c8] sm:$0xff] }
 0x26e   :  { %v8169_v21 = vpack.c.bf16 %v2263_v8, %v2256_v7  ;;  %5113 = vmatpush2.bf16.msra.mxu0 %v7031_v3  ;;  %v7063_v3 = vcombine.low %v2658_v62, %v2662_v63  ;;  %v745_v8 = vrot.slane %v8132_v24, %v744_v6  ;;  %v752_v63 = vsub.s32 6, %v8090_v38 }
 0x26f   :  { %5114 = vmatprep.subr.bf16.mxu0 %v7024_v5  ;;  %v748_v5 = vsub.s32 5, %v8090_v38 }
 0x270   :  { %5079 = vmatprep.mubr.bf16.mxu1 %v8169_v21 }
 0x271   :  { %5080 = vmatmul.mubr.bf16.vlgmr.msra.gmra.mxu1 %v8173_v25  ;;  %v749_v7 = vrot.slane %v8132_v24, %v748_v5 }
 0x272   :  { %5115 = vmatpush2.bf16.msra.mxu0 %v7023_v22  ;;  %5134 = vmatpush1.bf16.msra.mxu1 %v7119_v23 }
 0x273   :  { %5116 = vmatprep.subr.bf16.mxu0 %v7016_v26  ;;  %5135 = vmatprep.subr.bf16.mxu1 %v7112_v28 }
 0x274   :  { %5165 = vmatprep.mubr.bf16.mxu1 %v8007_v0 }
 0x276   :  { %5117 = vmatpush2.bf16.msra.mxu0 %v7015_v13  ;;  %5136 = vmatpush1.bf16.msra.mxu1 %v7111_v34 }
 0x277   :  { %5118 = vmatprep.subr.bf16.mxu0 %v7008_v35  ;;  %5137 = vmatprep.subr.bf16.mxu1 %v7104_v49 }
 0x27a   :  { %5119 = vmatpush2.bf16.msra.mxu0 %v7007_v43  ;;  %5138 = vmatpush1.bf16.msra.mxu1 %v7103_v44  ;;  %v2455_v43 = vld [vmem:[#allocation11 + $0x5a8] sm:$0xff] }
 0x27b   :  { %5120 = vmatprep.subr.bf16.mxu0 %v7000_v45  ;;  %5139 = vmatprep.subr.bf16.mxu1 %v7096_v31  ;;  %v6865_v31 = vcombine.low %v8178_v46, %v8180_v50  ;;  %v6858_v9 = vcombine.high %v2451_v37, %v2455_v43  ;;  %v6842_v46 = vcombine.high %v2435_v32, %v2439_v55  ;;  %v2427_v50 = vld [vmem:[#allocation11 + $0x4c8] sm:$0xff] }
 0x27e   :  { %5121 = vmatpush2.bf16.msra.mxu0 %v6999_v51  ;;  %5140 = vmatpush1.bf16.msra.mxu1 %v7095_v52  ;;  %v2443_v51 = vld [vmem:[#allocation11 + $0x548] sm:$0xff] }
 0x27f   :  { %5219 = vmatprep.subr.bf16.mxu0 %v6866_v10  ;;  %5141 = vmatprep.subr.bf16.mxu1 %v7088_v53  ;;  %v2447_v52 = vld [vmem:[#allocation11 + $0x568] sm:$0xff]  ;;  %v6857_v10 = vcombine.low %v2451_v37, %v2455_v43 }
 0x280   :  { %v6850_v53 = vcombine.high %v2443_v51, %v2447_v52 }
 0x282   :  { %5142 = vmatpush1.bf16.msra.mxu1 %v7087_v56  ;;  %v6849_v56 = vcombine.low %v2443_v51, %v2447_v52  ;;  %v2519_v51 = vld [vmem:[#allocation11 + $0x7a8] sm:$0xff] }
 0x283   :  { %5143 = vmatprep.subr.bf16.mxu1 %v7080_v57  ;;  %v2431_v57 = vld [vmem:[#allocation11 + $0x4e8] sm:$0xff] }
 0x284   :  { %v6834_v59 = vcombine.high %v2427_v50, %v2431_v57  ;;  %v6833_v62 = vcombine.low %v2427_v50, %v2431_v57  ;;  %v2323_v52 = vld [vmem:[#allocation11 + $0x188] sm:$0xff] }
 0x285   :  { %v2507_v57 = vld [vmem:[#allocation11 + $0x748] sm:$0xff] }
 0x286   :  { %5144 = vmatpush1.bf16.msra.mxu1 %v7079_v60  ;;  %v2419_v60 = vld [vmem:[#allocation11 + $0x488] sm:$0xff] }
 0x287   :  { %5145 = vmatprep.subr.bf16.mxu1 %v7072_v61  ;;  %v2423_v61 = vld [vmem:[#allocation11 + $0x4a8] sm:$0xff] }
 0x28a   :  { %5146 = vmatpush1.bf16.msra.mxu1 %v7071_v1  ;;  %v6826_v1 = vcombine.high %v2419_v60, %v2423_v61 }
 0x28b   :  { %5147 = vmatprep.subr.bf16.mxu1 %v7064_v2  ;;  %v2411_v2 = vld [vmem:[#allocation11 + $0x448] sm:$0xff] }
 0x28e   :  { %5148 = vmatpush1.bf16.msra.mxu1 %v7063_v3  ;;  %v2415_v3 = vld [vmem:[#allocation11 + $0x468] sm:$0xff] }
 0x28f   :  { %5176 = vmatprep.subr.bf16.mxu1 %v6738_v4 }
 0x2a1   :  { %v2119_v12 = vpop.f32.mrf.mxu0 }
 0x2a2   :  { %v2162_v15 = vpop.f32.mrf.mxu1  ;;  %v2120_v23 = vadd.f32 %v2119_v12, %v745_v8  ;;  %v6825_v12 = vcombine.low %v2419_v60, %v2423_v61  ;;  %v2319_v60 = vld [vmem:[#allocation11 + $0x168] sm:$0xff] }
 0x2a3   :  { %v2121_v19 = vpop.f32.mrf.mxu0 }
 0x2a4   :  { %v2122_v20 = vadd.f32 %v2121_v19, %v749_v7  ;;  %v2164_v22 = vpop.f32.mrf.mxu1  ;;  %v2163_v34 = vadd.f32 %v2162_v15, %v2120_v23  ;;  %v6818_v19 = vcombine.high %v2411_v2, %v2415_v3  ;;  %v2403_v23 = vld [vmem:[#allocation11 + $0x408] sm:$0xff] }
 0x2a5   :  { %v2123_v26 = vpop.f32.mrf.mxu0 }
 0x2a6   :  { %v2124_v27 = vadd.f32 %v2123_v26, %v745_v8  ;;  %v2166_v28 = vpop.f32.mrf.mxu1  ;;  %v2165_v30 = vadd.f32 %v2164_v22, %v2122_v20  ;;  %v2257_v44 = vmax.f32 %v2163_v34, 0.0  ;;  %v753_v8 = vrot.slane %v8132_v24, %v752_v63  ;;  %v2407_v26 = vld [vmem:[#allocation11 + $0x428] sm:$0xff] }
 0x2a7   :  { %v2125_v29 = vpop.f32.mrf.mxu0  ;;  %v2523_v24 = vld [vmem:[#allocation11 + $0x7c8] sm:$0xff]  ;;  %v6809_v43 = vcombine.low %v2403_v23, %v2407_v26 }
 0x2a8   :  { %v2167_v33 = vadd.f32 %v2166_v28, %v2124_v27  ;;  %v2126_v13 = vadd.f32 %v2125_v29, %v749_v7  ;;  %v2168_v35 = vpop.f32.mrf.mxu1  ;;  %v2258_v14 = vmax.f32 %v2165_v30, 0.0  ;;  %v6817_v30 = vcombine.low %v2411_v2, %v2415_v3  ;;  %v2499_v3 = vld [vmem:[#allocation11 + $0x708] sm:$0xff] }
 0x2aa   :  { %v2169_v47 = vadd.f32 %v2168_v35, %v2126_v13  ;;  %v2264_v49 = vmax.f32 %v2167_v33, 0.0  ;;  %v6810_v13 = vcombine.high %v2403_v23, %v2407_v26 }
 0x2ac   :  { %v2265_v36 = vmax.f32 %v2169_v47, 0.0  ;;  %v8198_v48 = vpack.c.bf16 %v2264_v49, %v2257_v44  ;;  %v2527_v49 = vld [vmem:[#allocation11 + $0x7e8] sm:$0xff] }
 0x2ad   :  { %v6930_v44 = vcombine.high %v2523_v24, %v2527_v49  ;;  %v6929_v55 = vcombine.low %v2523_v24, %v2527_v49  ;;  %v2475_v49 = vld [vmem:[#allocation11 + $0x648] sm:$0xff] }
 0x2ae   :  { %v8194_v45 = vpack.c.bf16 %v2265_v36, %v2258_v14 }
 0x2b0   :  { %5122 = vmatprep.mubr.bf16.mxu0 %v8194_v45 }
 0x2b1   :  { %5123 = vmatmul.mubr.bf16.vlgmr.msra.gmra.mxu0 %v8198_v48 }
 0x2b2   :  { %5220 = vmatpush1.bf16.msra.mxu0 %v6865_v31  ;;  %5251 = vmatprep.mubr.bf16.mxu0 %v8169_v21 }
 0x2b3   :  { %5221 = vmatprep.subr.bf16.mxu0 %v6858_v9  ;;  %v2515_v9 = vld [vmem:[#allocation11 + $0x788] sm:$0xff] }
 0x2b4   :  { %v6921_v61 = vcombine.low %v2515_v9, %v2519_v51 }
 0x2b6   :  { %5222 = vmatpush1.bf16.msra.mxu0 %v6857_v10  ;;  %v2327_v10 = vld [vmem:[#allocation11 + $0x1a8] sm:$0xff] }
 0x2b7   :  { %5223 = vmatprep.subr.bf16.mxu0 %v6850_v53  ;;  %v6730_v50 = vcombine.high %v2323_v52, %v2327_v10 }
 0x2ba   :  { %5224 = vmatpush1.bf16.msra.mxu0 %v6849_v56 }
 0x2bb   :  { %5225 = vmatprep.subr.bf16.mxu0 %v6842_v46  ;;  %v6922_v46 = vcombine.high %v2515_v9, %v2519_v51  ;;  %v2467_v51 = vld [vmem:[#allocation11 + $0x608] sm:$0xff] }
 0x2be   :  { %5226 = vmatpush1.bf16.msra.mxu0 %v6841_v58  ;;  %v2511_v58 = vld [vmem:[#allocation11 + $0x768] sm:$0xff] }
 0x2bf   :  { %5227 = vmatprep.subr.bf16.mxu0 %v6834_v59  ;;  %v2315_v59 = vld [vmem:[#allocation11 + $0x148] sm:$0xff] }
 0x2c0   :  { %v6722_v2 = vcombine.high %v2315_v59, %v2319_v60 }
 0x2c1   :  { %v7208_v4 = vpop.f32.mrf.mxu0 }
 0x2c2   :  { %v7230_v7 = vpop.f32.mrf.mxu1  ;;  %5228 = vmatpush1.bf16.msra.mxu0 %v6833_v62  ;;  %v6729_v62 = vcombine.low %v2323_v52, %v2327_v10  ;;  %v2471_v52 = vld [vmem:[#allocation11 + $0x628] sm:$0xff] }
 0x2c3   :  { %v7209_v15 = vpop.f32.mrf.mxu0  ;;  %5229 = vmatprep.subr.bf16.mxu0 %v6826_v1  ;;  %v6914_v1 = vcombine.high %v2507_v57, %v2511_v58  ;;  %v2275_v10 = vld [vmem:[#allocation11 + $0x8] sm:$0xff] }
 0x2c4   :  { %v7210_v20 = vadd.f32 %v7209_v15, %v7208_v4  ;;  %v7231_v22 = vpop.f32.mrf.mxu1  ;;  %v2503_v4 = vld [vmem:[#allocation11 + $0x728] sm:$0xff]  ;;  %v6721_v15 = vcombine.low %v2315_v59, %v2319_v60 }
 0x2c5   :  { %v7211_v27 = vpop.f32.mrf.mxu0  ;;  %v7232_v34 = vadd.f32 %v7231_v22, %v7230_v7  ;;  %v2307_v7 = vld [vmem:[#allocation11 + $0x108] sm:$0xff]  ;;  %v6905_v23 = vcombine.low %v2499_v3, %v2503_v4 }
 0x2c6   :  { %v2206_v28 = vadd.f32 %v7210_v20, %v753_v8  ;;  %v7233_v29 = vpop.f32.mrf.mxu1  ;;  %5230 = vmatpush1.bf16.msra.mxu0 %v6825_v12  ;;  %v6913_v12 = vcombine.low %v2507_v57, %v2511_v58  ;;  %v2299_v20 = vld [vmem:[#allocation11 + $0xc8] sm:$0xff] }
 0x2c7   :  { %v7212_v33 = vpop.f32.mrf.mxu0  ;;  %5231 = vmatprep.subr.bf16.mxu0 %v6818_v19  ;;  %v6906_v19 = vcombine.high %v2499_v3, %v2503_v4  ;;  %v2303_v22 = vld [vmem:[#allocation11 + $0xe8] sm:$0xff] }
 0x2c8   :  { %v7213_v35 = vadd.f32 %v7212_v33, %v7211_v27  ;;  %v7234_v47 = vpop.f32.mrf.mxu1  ;;  %v2247_v14 = vadd.f32 %v7232_v34, %v2206_v28  ;;  %v6706_v28 = vcombine.high %v2299_v20, %v2303_v22  ;;  %v2291_v33 = vld [vmem:[#allocation11 + $0x88] sm:$0xff] }
 0x2c9   :  { %v7235_v37 = vadd.f32 %v7234_v47, %v7233_v29  ;;  %v2483_v29 = vld [vmem:[#allocation11 + $0x688] sm:$0xff] }
 0x2ca   :  { %v2209_v36 = vadd.f32 %v7213_v35, %v753_v8  ;;  %5232 = vmatpush1.bf16.msra.mxu0 %v6817_v30  ;;  %v2259_v53 = vmax.f32 %v2247_v14, 0.0  ;;  %v2311_v8 = vld [vmem:[#allocation11 + $0x128] sm:$0xff]  ;;  %v6705_v35 = vcombine.low %v2299_v20, %v2303_v22 }
 0x2cb   :  { %5233 = vmatprep.subr.bf16.mxu0 %v6810_v13  ;;  %v6714_v16 = vcombine.high %v2307_v7, %v2311_v8  ;;  %v6713_v26 = vcombine.low %v2307_v7, %v2311_v8  ;;  %v2487_v30 = vld [vmem:[#allocation11 + $0x6a8] sm:$0xff] }
 0x2cc   :  { %v2250_v31 = vadd.f32 %v7235_v37, %v2209_v36  ;;  %v2295_v13 = vld [vmem:[#allocation11 + $0xa8] sm:$0xff]  ;;  %v6890_v47 = vcombine.high %v2483_v29, %v2487_v30 }
 0x2cd   :  { %v6698_v24 = vcombine.high %v2291_v33, %v2295_v13  ;;  %v2479_v14 = vld [vmem:[#allocation11 + $0x668] sm:$0xff] }
 0x2ce   :  { %v2266_v32 = vmax.f32 %v2250_v31, 0.0  ;;  %5234 = vmatpush1.bf16.msra.mxu0 %v6809_v43  ;;  %v2283_v36 = vld [vmem:[#allocation11 + $0x48] sm:$0xff]  ;;  %v6889_v43 = vcombine.low %v2483_v29, %v2487_v30  ;;  %v6882_v31 = vcombine.high %v2475_v49, %v2479_v14 }
 0x2cf   :  { %5235 = vmatprep.subr.bf16.mxu0 %v6930_v44  ;;  %v2287_v37 = vld [vmem:[#allocation11 + $0x68] sm:$0xff]  ;;  %v6697_v44 = vcombine.low %v2291_v33, %v2295_v13 }
 0x2d0   :  { %v8207_v56 = vpack.c.bf16 %v2266_v32, %v2259_v53  ;;  %v6690_v9 = vcombine.high %v2283_v36, %v2287_v37  ;;  %v2279_v53 = vld [vmem:[#allocation11 + $0x28] sm:$0xff]  ;;  %v6881_v32 = vcombine.low %v2475_v49, %v2479_v14 }
 0x2d1   :  { %v2715_v57 = vld [vmem:[#allocation11 + $0xdc8] sm:$0xff] }
 0x2d2   :  { %5236 = vmatpush2.bf16.msra.mxu0 %v6929_v55  ;;  %5166 = vmatmul.mubr.bf16.vlgmr.msra.gmra.mxu1 %v8207_v56  ;;  %v6689_v55 = vcombine.low %v2283_v36, %v2287_v37  ;;  %v2719_v58 = vld [vmem:[#allocation11 + $0xde8] sm:$0xff] }
 0x2d3   :  { %5177 = vmatpush1.bf16.msra.mxu1 %v6737_v18  ;;  %5208 = vmatprep.mubr.bf16.mxu1 %v8142_v11  ;;  %v2495_v18 = vld [vmem:[#allocation11 + $0x6e8] sm:$0xff] }
 0x2d4   :  { %5237 = vmatprep.subr.bf16.mxu0 %v6922_v46  ;;  %5178 = vmatprep.subr.bf16.mxu1 %v6730_v50  ;;  %v6898_v27 = vcombine.high %v2491_v17, %v2495_v18  ;;  %v6897_v34 = vcombine.low %v2491_v17, %v2495_v18  ;;  %v6874_v46 = vcombine.high %v2467_v51, %v2471_v52  ;;  %v2395_v59 = vld [vmem:[#allocation11 + $0x3c8] sm:$0xff] }
 0x2d5   :  { %v6682_v50 = vcombine.high %v2275_v10, %v2279_v53  ;;  %v2399_v60 = vld [vmem:[#allocation11 + $0x3e8] sm:$0xff] }
 0x2d6   :  { %5238 = vmatpush2.bf16.msra.mxu0 %v6921_v61  ;;  %v6873_v61 = vcombine.low %v2467_v51, %v2471_v52  ;;  %v2707_v3 = vld [vmem:[#allocation11 + $0xd88] sm:$0xff] }
 0x2d7   :  { %5179 = vmatpush1.bf16.msra.mxu1 %v6729_v62  ;;  %5239 = vmatprep.subr.bf16.mxu0 %v6914_v1  ;;  %v6681_v62 = vcombine.low %v2275_v10, %v2279_v53  ;;  %v7122_v1 = vcombine.high %v2715_v57, %v2719_v58  ;;  %v2711_v4 = vld [vmem:[#allocation11 + $0xda8] sm:$0xff] }
 0x2d8   :  { %5180 = vmatprep.subr.bf16.mxu1 %v6722_v2  ;;  %v6802_v2 = vcombine.high %v2395_v59, %v2399_v60  ;;  %v2387_v7 = vld [vmem:[#allocation11 + $0x388] sm:$0xff] }
 0x2d9   :  { %v2391_v8 = vld [vmem:[#allocation11 + $0x3a8] sm:$0xff] }
 0x2da   :  { %5240 = vmatpush2.bf16.msra.mxu0 %v6913_v12  ;;  %v7121_v12 = vcombine.low %v2715_v57, %v2719_v58  ;;  %v2699_v17 = vld [vmem:[#allocation11 + $0xd48] sm:$0xff] }
 0x2db   :  { %5181 = vmatpush1.bf16.msra.mxu1 %v6721_v15  ;;  %5241 = vmatprep.subr.bf16.mxu0 %v6906_v19  ;;  %v6801_v15 = vcombine.low %v2395_v59, %v2399_v60  ;;  %v7114_v19 = vcombine.high %v2707_v3, %v2711_v4  ;;  %v2703_v18 = vld [vmem:[#allocation11 + $0xd68] sm:$0xff] }
 0x2dc   :  { %5182 = vmatprep.subr.bf16.mxu1 %v6714_v16  ;;  %v6794_v16 = vcombine.high %v2387_v7, %v2391_v8  ;;  %v2379_v20 = vld [vmem:[#allocation11 + $0x348] sm:$0xff] }
 0x2dd   :  { %v2383_v22 = vld [vmem:[#allocation11 + $0x368] sm:$0xff] }
 0x2de   :  { %5242 = vmatpush2.bf16.msra.mxu0 %v6905_v23  ;;  %v7113_v23 = vcombine.low %v2707_v3, %v2711_v4  ;;  %v2691_v29 = vld [vmem:[#allocation11 + $0xd08] sm:$0xff] }
 0x2df   :  { %5183 = vmatpush1.bf16.msra.mxu1 %v6713_v26  ;;  %5243 = vmatprep.subr.bf16.mxu0 %v6898_v27  ;;  %v6793_v26 = vcombine.low %v2387_v7, %v2391_v8  ;;  %v7106_v27 = vcombine.high %v2699_v17, %v2703_v18  ;;  %v2695_v30 = vld [vmem:[#allocation11 + $0xd28] sm:$0xff] }
 0x2e0   :  { %5184 = vmatprep.subr.bf16.mxu1 %v6706_v28  ;;  %v6786_v28 = vcombine.high %v2379_v20, %v2383_v22  ;;  %v2371_v33 = vld [vmem:[#allocation11 + $0x308] sm:$0xff] }
 0x2e1   :  { %v2375_v13 = vld [vmem:[#allocation11 + $0x328] sm:$0xff] }
 0x2e2   :  { %5244 = vmatpush2.bf16.msra.mxu0 %v6897_v34  ;;  %v7105_v34 = vcombine.low %v2699_v17, %v2703_v18  ;;  %v2683_v49 = vld [vmem:[#allocation11 + $0xcc8] sm:$0xff]  ;;  %v2332_v17 = vld [vmem:[#allocation11 + $0x1d0] sm:$0xff] }
 0x2e3   :  { %5185 = vmatpush1.bf16.msra.mxu1 %v6705_v35  ;;  %5245 = vmatprep.subr.bf16.mxu0 %v6890_v47  ;;  %v6785_v35 = vcombine.low %v2379_v20, %v2383_v22  ;;  %v7098_v47 = vcombine.high %v2691_v29, %v2695_v30  ;;  %v2687_v14 = vld [vmem:[#allocation11 + $0xce8] sm:$0xff]  ;;  %v2336_v18 = vld [vmem:[#allocation11 + $0x1f0] sm:$0xff] }
 0x2e4   :  { %5186 = vmatprep.subr.bf16.mxu1 %v6698_v24  ;;  %v6778_v24 = vcombine.high %v2371_v33, %v2375_v13  ;;  %v2363_v36 = vld [vmem:[#allocation11 + $0x2c8] sm:$0xff] }
 0x2e5   :  { %v2367_v37 = vld [vmem:[#allocation11 + $0x2e8] sm:$0xff] }
 0x2e6   :  { %5246 = vmatpush2.bf16.msra.mxu0 %v6889_v43  ;;  %v7097_v43 = vcombine.low %v2691_v29, %v2695_v30  ;;  %v2675_v51 = vld [vmem:[#allocation11 + $0xc88] sm:$0xff]  ;;  %v2324_v29 = vld [vmem:[#allocation11 + $0x190] sm:$0xff] }
 0x2e7   :  { %5187 = vmatpush1.bf16.msra.mxu1 %v6697_v44  ;;  %5247 = vmatprep.subr.bf16.mxu0 %v6882_v31  ;;  %v6777_v44 = vcombine.low %v2371_v33, %v2375_v13  ;;  %v7090_v31 = vcombine.high %v2683_v49, %v2687_v14  ;;  %v2679_v52 = vld [vmem:[#allocation11 + $0xca8] sm:$0xff]  ;;  %v2328_v30 = vld [vmem:[#allocation11 + $0x1b0] sm:$0xff]  ;;  %v6739_v33 = vcombine.low %v2332_v17, %v2336_v18 }
 0x2e8   :  { %5188 = vmatprep.subr.bf16.mxu1 %v6690_v9  ;;  %v6770_v9 = vcombine.high %v2363_v36, %v2367_v37  ;;  %v2355_v10 = vld [vmem:[#allocation11 + $0x288] sm:$0xff] }
 0x2e9   :  { %v2359_v53 = vld [vmem:[#allocation11 + $0x2a8] sm:$0xff] }
 0x2ea   :  { %5248 = vmatpush2.bf16.msra.mxu0 %v6881_v32  ;;  %v7089_v32 = vcombine.low %v2683_v49, %v2687_v14  ;;  %v2667_v57 = vld [vmem:[#allocation11 + $0xc48] sm:$0xff]  ;;  %v2320_v49 = vld [vmem:[#allocation11 + $0x170] sm:$0xff] }
 0x2eb   :  { %5189 = vmatpush1.bf16.msra.mxu1 %v6689_v55  ;;  %5249 = vmatprep.subr.bf16.mxu0 %v6874_v46  ;;  %v6769_v55 = vcombine.low %v2363_v36, %v2367_v37  ;;  %v7082_v46 = vcombine.high %v2675_v51, %v2679_v52  ;;  %v2671_v58 = vld [vmem:[#allocation11 + $0xc68] sm:$0xff] }
 0x2ec   :  { %5190 = vmatprep.subr.bf16.mxu1 %v6682_v50  ;;  %v6762_v50 = vcombine.high %v2355_v10, %v2359_v53  ;;  %v2347_v59 = vld [vmem:[#allocation11 + $0x248] sm:$0xff] }
 0x2ed   :  { %v2351_v60 = vld [vmem:[#allocation11 + $0x268] sm:$0xff] }
 0x2ee   :  { %5250 = vmatpush2.bf16.msra.mxu0 %v6873_v61  ;;  %v7081_v61 = vcombine.low %v2675_v51, %v2679_v52  ;;  %v2659_v3 = vld [vmem:[#allocation11 + $0xc08] sm:$0xff]  ;;  %v2308_v51 = vld [vmem:[#allocation11 + $0x110] sm:$0xff] }
 0x2ef   :  { %5191 = vmatpush1.bf16.msra.mxu1 %v6681_v62  ;;  %5305 = vmatprep.subr.bf16.mxu0 %v7122_v1  ;;  %v6761_v62 = vcombine.low %v2355_v10, %v2359_v53  ;;  %v7074_v1 = vcombine.high %v2667_v57, %v2671_v58  ;;  %v2663_v4 = vld [vmem:[#allocation11 + $0xc28] sm:$0xff]  ;;  %v2312_v52 = vld [vmem:[#allocation11 + $0x130] sm:$0xff] }
 0x2f0   :  { %5192 = vmatprep.subr.bf16.mxu1 %v6802_v2  ;;  %v6754_v2 = vcombine.high %v2347_v59, %v2351_v60  ;;  %v2339_v7 = vld [vmem:[#allocation11 + $0x208] sm:$0xff] }
 0x2f1   :  { %5252 = vmatmul.mubr.bf16.vlgmr.msra.gmra.mxu0 %v8173_v25  ;;  %v2343_v8 = vld [vmem:[#allocation11 + $0x228] sm:$0xff] }
 0x2f2   :  { %5306 = vmatpush1.bf16.msra.mxu0 %v7121_v12  ;;  %5337 = vmatprep.mubr.bf16.mxu0 %v8007_v0  ;;  %v7073_v12 = vcombine.low %v2667_v57, %v2671_v58  ;;  %v2587_v20 = vld [vmem:[#allocation11 + $0x9c8] sm:$0xff]  ;;  %v2300_v57 = vld [vmem:[#allocation11 + $0xd0] sm:$0xff] }
 0x2f3   :  { %5193 = vmatpush2.bf16.msra.mxu1 %v6801_v15  ;;  %5307 = vmatprep.subr.bf16.mxu0 %v7114_v19  ;;  %v6753_v15 = vcombine.low %v2347_v59, %v2351_v60  ;;  %v7066_v19 = vcombine.high %v2659_v3, %v2663_v4  ;;  %v2591_v22 = vld [vmem:[#allocation11 + $0x9e8] sm:$0xff]  ;;  %v2304_v58 = vld [vmem:[#allocation11 + $0xf0] sm:$0xff] }
 0x2f4   :  { %5194 = vmatprep.subr.bf16.mxu1 %v6794_v16  ;;  %v6746_v16 = vcombine.high %v2339_v7, %v2343_v8  ;;  %v2579_v13 = vld [vmem:[#allocation11 + $0x988] sm:$0xff] }
 0x2f5   :  { %v2571_v36 = vld [vmem:[#allocation11 + $0x948] sm:$0xff] }
 0x2f6   :  { %5308 = vmatpush1.bf16.msra.mxu0 %v7113_v23  ;;  %v7065_v23 = vcombine.low %v2659_v3, %v2663_v4  ;;  %v2575_v37 = vld [vmem:[#allocation11 + $0x968] sm:$0xff]  ;;  %v2292_v3 = vld [vmem:[#allocation11 + $0x90] sm:$0xff] }
 0x2f7   :  { %5195 = vmatpush2.bf16.msra.mxu1 %v6793_v26  ;;  %5309 = vmatprep.subr.bf16.mxu0 %v7106_v27  ;;  %v6745_v26 = vcombine.low %v2339_v7, %v2343_v8  ;;  %v6740_v27 = vcombine.high %v2332_v17, %v2336_v18  ;;  %v2563_v10 = vld [vmem:[#allocation11 + $0x908] sm:$0xff]  ;;  %v2296_v4 = vld [vmem:[#allocation11 + $0xb0] sm:$0xff] }
 0x2f8   :  { %5196 = vmatprep.subr.bf16.mxu1 %v6786_v28  ;;  %v6994_v28 = vcombine.high %v2587_v20, %v2591_v22  ;;  %v2567_v53 = vld [vmem:[#allocation11 + $0x928] sm:$0xff]  ;;  %v2284_v17 = vld [vmem:[#allocation11 + $0x50] sm:$0xff] }
 0x2f9   :  { %v2555_v59 = vld [vmem:[#allocation11 + $0x8c8] sm:$0xff]  ;;  %v2288_v18 = vld [vmem:[#allocation11 + $0x70] sm:$0xff] }
 0x2fa   :  { %5310 = vmatpush1.bf16.msra.mxu0 %v7105_v34  ;;  %v2583_v34 = vld [vmem:[#allocation11 + $0x9a8] sm:$0xff] }
 0x2fb   :  { %5197 = vmatpush2.bf16.msra.mxu1 %v6785_v35  ;;  %5311 = vmatprep.subr.bf16.mxu0 %v7098_v47  ;;  %v6993_v35 = vcombine.low %v2587_v20, %v2591_v22  ;;  %v6732_v47 = vcombine.high %v2324_v29, %v2328_v30  ;;  %v6986_v14 = vcombine.high %v2579_v13, %v2583_v34  ;;  %v2559_v60 = vld [vmem:[#allocation11 + $0x8e8] sm:$0xff] }
 0x2fc   :  { %5198 = vmatprep.subr.bf16.mxu1 %v6778_v24  ;;  %v2316_v24 = vld [vmem:[#allocation11 + $0x150] sm:$0xff]  ;;  %v2547_v7 = vld [vmem:[#allocation11 + $0x888] sm:$0xff] }
 0x2fd   :  { %v2551_v8 = vld [vmem:[#allocation11 + $0x8a8] sm:$0xff] }
 0x2fe   :  { %5312 = vmatpush1.bf16.msra.mxu0 %v7097_v43  ;;  %v6731_v43 = vcombine.low %v2324_v29, %v2328_v30  ;;  %v2539_v20 = vld [vmem:[#allocation11 + $0x848] sm:$0xff]  ;;  %v2276_v29 = vld [vmem:[#allocation11 + $0x10] sm:$0xff] }
 0x2ff   :  { %5199 = vmatpush2.bf16.msra.mxu1 %v6777_v44  ;;  %5313 = vmatprep.subr.bf16.mxu0 %v7090_v31  ;;  %v6985_v44 = vcombine.low %v2579_v13, %v2583_v34  ;;  %v6724_v31 = vcombine.high %v2316_v24, %v2320_v49  ;;  %v2543_v22 = vld [vmem:[#allocation11 + $0x868] sm:$0xff]  ;;  %v2280_v30 = vld [vmem:[#allocation11 + $0x30] sm:$0xff]  ;;  %v6691_v34 = vcombine.low %v2284_v17, %v2288_v18 }
 0x300   :  { %5200 = vmatprep.subr.bf16.mxu1 %v6770_v9  ;;  %v6978_v9 = vcombine.high %v2571_v36, %v2575_v37  ;;  %v2535_v13 = vld [vmem:[#allocation11 + $0x828] sm:$0xff] }
 0x302   :  { %5314 = vmatpush1.bf16.msra.mxu0 %v7089_v32  ;;  %v6723_v32 = vcombine.low %v2316_v24, %v2320_v49  ;;  %v2396_v49 = vld [vmem:[#allocation11 + $0x3d0] sm:$0xff] }
 0x303   :  { %5201 = vmatpush2.bf16.msra.mxu1 %v6769_v55  ;;  %5315 = vmatprep.subr.bf16.mxu0 %v7082_v46  ;;  %v6977_v55 = vcombine.low %v2571_v36, %v2575_v37  ;;  %v6716_v46 = vcombine.high %v2308_v51, %v2312_v52  ;;  %v2651_v36 = vld [vmem:[#allocation11 + $0xbc8] sm:$0xff] }
 0x304   :  { %5202 = vmatprep.subr.bf16.mxu1 %v6762_v50  ;;  %v6970_v50 = vcombine.high %v2563_v10, %v2567_v53  ;;  %v2655_v37 = vld [vmem:[#allocation11 + $0xbe8] sm:$0xff] }
 0x306   :  { %5316 = vmatpush1.bf16.msra.mxu0 %v7081_v61  ;;  %v6715_v61 = vcombine.low %v2308_v51, %v2312_v52  ;;  %v2388_v51 = vld [vmem:[#allocation11 + $0x390] sm:$0xff] }
 0x307   :  { %5203 = vmatpush2.bf16.msra.mxu1 %v6761_v62  ;;  %5317 = vmatprep.subr.bf16.mxu0 %v7074_v1  ;;  %v6969_v62 = vcombine.low %v2563_v10, %v2567_v53  ;;  %v6708_v1 = vcombine.high %v2300_v57, %v2304_v58  ;;  %v2392_v52 = vld [vmem:[#allocation11 + $0x3b0] sm:$0xff]  ;;  %v2643_v10 = vld [vmem:[#allocation11 + $0xb88] sm:$0xff] }
 0x308   :  { %5204 = vmatprep.subr.bf16.mxu1 %v6754_v2  ;;  %v6962_v2 = vcombine.high %v2555_v59, %v2559_v60  ;;  %v2647_v53 = vld [vmem:[#allocation11 + $0xba8] sm:$0xff] }
 0x30a   :  { %5318 = vmatpush1.bf16.msra.mxu0 %v7073_v12  ;;  %v6707_v12 = vcombine.low %v2300_v57, %v2304_v58  ;;  %v2380_v57 = vld [vmem:[#allocation11 + $0x350] sm:$0xff] }
 0x30b   :  { %5205 = vmatpush2.bf16.msra.mxu1 %v6753_v15  ;;  %5319 = vmatprep.subr.bf16.mxu0 %v7066_v19  ;;  %v6961_v15 = vcombine.low %v2555_v59, %v2559_v60  ;;  %v6700_v19 = vcombine.high %v2292_v3, %v2296_v4  ;;  %v2384_v58 = vld [vmem:[#allocation11 + $0x370] sm:$0xff]  ;;  %v2635_v59 = vld [vmem:[#allocation11 + $0xb48] sm:$0xff] }
 0x30c   :  { %5206 = vmatprep.subr.bf16.mxu1 %v6746_v16  ;;  %v6954_v16 = vcombine.high %v2547_v7, %v2551_v8  ;;  %v2639_v60 = vld [vmem:[#allocation11 + $0xb68] sm:$0xff] }
 0x30e   :  { %5320 = vmatpush1.bf16.msra.mxu0 %v7065_v23  ;;  %v6699_v23 = vcombine.low %v2292_v3, %v2296_v4  ;;  %v2372_v3 = vld [vmem:[#allocation11 + $0x310] sm:$0xff] }
 0x30f   :  { %5207 = vmatpush2.bf16.msra.mxu1 %v6745_v26  ;;  %5348 = vmatprep.subr.bf16.mxu0 %v6740_v27  ;;  %v6953_v26 = vcombine.low %v2547_v7, %v2551_v8  ;;  %v6692_v27 = vcombine.high %v2284_v17, %v2288_v18  ;;  %v2376_v4 = vld [vmem:[#allocation11 + $0x330] sm:$0xff]  ;;  %v2627_v7 = vld [vmem:[#allocation11 + $0xb08] sm:$0xff] }
 0x310   :  { %5262 = vmatprep.subr.bf16.mxu1 %v6994_v28  ;;  %v6946_v28 = vcombine.high %v2539_v20, %v2543_v22  ;;  %v2631_v8 = vld [vmem:[#allocation11 + $0xb28] sm:$0xff]  ;;  %v2364_v17 = vld [vmem:[#allocation11 + $0x2d0] sm:$0xff] }
 0x311   :  { %5338 = vmatmul.mubr.bf16.vlgmr.msra.gmra.mxu0 %v8207_v56  ;;  %v2368_v18 = vld [vmem:[#allocation11 + $0x2f0] sm:$0xff] }
 0x312   :  { %5209 = vmatmul.mubr.bf16.vlgmr.msra.gmra.mxu1 %v8156_v54  ;;  %5349 = vmatpush1.bf16.msra.mxu0 %v6739_v33  ;;  %v2531_v33 = vld [vmem:[#allocation11 + $0x808] sm:$0xff] }
 0x313   :  { %5380 = vmatprep.mubr.bf16.mxu0 %v8142_v11  ;;  %5263 = vmatpush1.bf16.msra.mxu1 %v6993_v35  ;;  %v6945_v35 = vcombine.low %v2539_v20, %v2543_v22  ;;  %v6938_v24 = vcombine.high %v2531_v33, %v2535_v13  ;;  %v2619_v20 = vld [vmem:[#allocation11 + $0xac8] sm:$0xff] }
 0x314   :  { %5294 = vmatprep.mubr.bf16.mxu1 %v8194_v45  ;;  %5350 = vmatprep.subr.bf16.mxu0 %v6732_v47  ;;  %v6684_v47 = vcombine.high %v2276_v29, %v2280_v30  ;;  %v2623_v22 = vld [vmem:[#allocation11 + $0xae8] sm:$0xff] }
 0x315   :  { %5264 = vmatprep.subr.bf16.mxu1 %v6986_v14  ;;  %v2400_v14 = vld [vmem:[#allocation11 + $0x3f0] sm:$0xff] }
 0x316   :  { %5351 = vmatpush1.bf16.msra.mxu0 %v6731_v43  ;;  %v6683_v43 = vcombine.low %v2276_v29, %v2280_v30  ;;  %v2356_v29 = vld [vmem:[#allocation11 + $0x290] sm:$0xff] }
 0x317   :  { %5265 = vmatpush1.bf16.msra.mxu1 %v6985_v44  ;;  %5352 = vmatprep.subr.bf16.mxu0 %v6724_v31  ;;  %v6937_v44 = vcombine.low %v2531_v33, %v2535_v13  ;;  %v6804_v31 = vcombine.high %v2396_v49, %v2400_v14  ;;  %v2360_v30 = vld [vmem:[#allocation11 + $0x2b0] sm:$0xff]  ;;  %v2611_v33 = vld [vmem:[#allocation11 + $0xa88] sm:$0xff] }
 0x318   :  { %5266 = vmatprep.subr.bf16.mxu1 %v6978_v9  ;;  %v7058_v9 = vcombine.high %v2651_v36, %v2655_v37  ;;  %v2615_v13 = vld [vmem:[#allocation11 + $0xaa8] sm:$0xff] }
 0x31a   :  { %5353 = vmatpush1.bf16.msra.mxu0 %v6723_v32  ;;  %v6803_v32 = vcombine.low %v2396_v49, %v2400_v14  ;;  %v2348_v49 = vld [vmem:[#allocation11 + $0x250] sm:$0xff] }
 0x31b   :  { %5267 = vmatpush1.bf16.msra.mxu1 %v6977_v55  ;;  %5354 = vmatprep.subr.bf16.mxu0 %v6716_v46  ;;  %v7057_v55 = vcombine.low %v2651_v36, %v2655_v37  ;;  %v6796_v46 = vcombine.high %v2388_v51, %v2392_v52  ;;  %v2352_v14 = vld [vmem:[#allocation11 + $0x270] sm:$0xff]  ;;  %v2603_v36 = vld [vmem:[#allocation11 + $0xa48] sm:$0xff] }
 0x31c   :  { %5268 = vmatprep.subr.bf16.mxu1 %v6970_v50  ;;  %v7050_v50 = vcombine.high %v2643_v10, %v2647_v53  ;;  %v2607_v37 = vld [vmem:[#allocation11 + $0xa68] sm:$0xff] }
 0x31e   :  { %5355 = vmatpush1.bf16.msra.mxu0 %v6715_v61  ;;  %v6795_v61 = vcombine.low %v2388_v51, %v2392_v52  ;;  %v2340_v51 = vld [vmem:[#allocation11 + $0x210] sm:$0xff] }
 0x31f   :  { %5269 = vmatpush1.bf16.msra.mxu1 %v6969_v62  ;;  %5356 = vmatprep.subr.bf16.mxu0 %v6708_v1  ;;  %v7049_v62 = vcombine.low %v2643_v10, %v2647_v53  ;;  %v6788_v1 = vcombine.high %v2380_v57, %v2384_v58  ;;  %v2344_v52 = vld [vmem:[#allocation11 + $0x230] sm:$0xff]  ;;  %v2595_v10 = vld [vmem:[#allocation11 + $0xa08] sm:$0xff] }
 0x320   :  { %5270 = vmatprep.subr.bf16.mxu1 %v6962_v2  ;;  %v7042_v2 = vcombine.high %v2635_v59, %v2639_v60  ;;  %v2599_v53 = vld [vmem:[#allocation11 + $0xa28] sm:$0xff] }
 0x322   :  { %5357 = vmatpush1.bf16.msra.mxu0 %v6707_v12  ;;  %v6787_v12 = vcombine.low %v2380_v57, %v2384_v58  ;;  %v2588_v57 = vld [vmem:[#allocation11 + $0x9d0] sm:$0xff] }
 0x323   :  { %5271 = vmatpush1.bf16.msra.mxu1 %v6961_v15  ;;  %5358 = vmatprep.subr.bf16.mxu0 %v6700_v19  ;;  %v7041_v15 = vcombine.low %v2635_v59, %v2639_v60  ;;  %v6780_v19 = vcombine.high %v2372_v3, %v2376_v4  ;;  %v2592_v58 = vld [vmem:[#allocation11 + $0x9f0] sm:$0xff] }
 0x324   :  { %5272 = vmatprep.subr.bf16.mxu1 %v6954_v16  ;;  %v7034_v16 = vcombine.high %v2627_v7, %v2631_v8  ;;  %v2460_v59 = vld [vmem:[#allocation11 + $0x5d0] sm:$0xff] }
 0x325   :  { %v2464_v60 = vld [vmem:[#allocation11 + $0x5f0] sm:$0xff] }
 0x326   :  { %5359 = vmatpush1.bf16.msra.mxu0 %v6699_v23  ;;  %v6779_v23 = vcombine.low %v2372_v3, %v2376_v4  ;;  %v2580_v3 = vld [vmem:[#allocation11 + $0x990] sm:$0xff] }
 0x327   :  { %5273 = vmatpush1.bf16.msra.mxu1 %v6953_v26  ;;  %5360 = vmatprep.subr.bf16.mxu0 %v6692_v27  ;;  %v7033_v26 = vcombine.low %v2627_v7, %v2631_v8  ;;  %v6772_v27 = vcombine.high %v2364_v17, %v2368_v18  ;;  %v2584_v4 = vld [vmem:[#allocation11 + $0x9b0] sm:$0xff]  ;;  %v6995_v7 = vcombine.low %v2588_v57, %v2592_v58 }
 0x328   :  { %5274 = vmatprep.subr.bf16.mxu1 %v6946_v28  ;;  %v7026_v28 = vcombine.high %v2619_v20, %v2623_v22  ;;  %v2452_v8 = vld [vmem:[#allocation11 + $0x590] sm:$0xff] }
 0x32a   :  { %5361 = vmatpush1.bf16.msra.mxu0 %v6691_v34  ;;  %v6771_v34 = vcombine.low %v2364_v17, %v2368_v18  ;;  %v2576_v17 = vld [vmem:[#allocation11 + $0x970] sm:$0xff] }
 0x32b   :  { %5275 = vmatpush1.bf16.msra.mxu1 %v6945_v35  ;;  %5362 = vmatprep.subr.bf16.mxu0 %v6684_v47  ;;  %v7025_v35 = vcombine.low %v2619_v20, %v2623_v22  ;;  %v6764_v47 = vcombine.high %v2356_v29, %v2360_v30  ;;  %v2444_v20 = vld [vmem:[#allocation11 + $0x550] sm:$0xff] }
 0x32c   :  { %5276 = vmatprep.subr.bf16.mxu1 %v6938_v24  ;;  %v7018_v24 = vcombine.high %v2611_v33, %v2615_v13  ;;  %v2448_v22 = vld [vmem:[#allocation11 + $0x570] sm:$0xff] }
 0x32e   :  { %5363 = vmatpush1.bf16.msra.mxu0 %v6683_v43  ;;  %v6763_v43 = vcombine.low %v2356_v29, %v2360_v30  ;;  %v2564_v29 = vld [vmem:[#allocation11 + $0x910] sm:$0xff] }
 0x32f   :  { %5277 = vmatpush1.bf16.msra.mxu1 %v6937_v44  ;;  %5364 = vmatprep.subr.bf16.mxu0 %v6804_v31  ;;  %v7017_v44 = vcombine.low %v2611_v33, %v2615_v13  ;;  %v6756_v31 = vcombine.high %v2348_v49, %v2352_v14  ;;  %v2568_v30 = vld [vmem:[#allocation11 + $0x930] sm:$0xff] }
 0x330   :  { %5278 = vmatprep.subr.bf16.mxu1 %v7058_v9  ;;  %v7010_v9 = vcombine.high %v2603_v36, %v2607_v37  ;;  %v2436_v33 = vld [vmem:[#allocation11 + $0x510] sm:$0xff] }
 0x331   :  { %v2440_v13 = vld [vmem:[#allocation11 + $0x530] sm:$0xff] }
 0x332   :  { %5365 = vmatpush2.bf16.msra.mxu0 %v6803_v32  ;;  %v6755_v32 = vcombine.low %v2348_v49, %v2352_v14  ;;  %v2556_v49 = vld [vmem:[#allocation11 + $0x8d0] sm:$0xff] }
 0x333   :  { %5279 = vmatpush2.bf16.msra.mxu1 %v7057_v55  ;;  %5366 = vmatprep.subr.bf16.mxu0 %v6796_v46  ;;  %v7009_v55 = vcombine.low %v2603_v36, %v2607_v37  ;;  %v6748_v46 = vcombine.high %v2340_v51, %v2344_v52  ;;  %v2560_v14 = vld [vmem:[#allocation11 + $0x8f0] sm:$0xff] }
 0x334   :  { %5280 = vmatprep.subr.bf16.mxu1 %v7050_v50  ;;  %v7002_v50 = vcombine.high %v2595_v10, %v2599_v53  ;;  %v2428_v36 = vld [vmem:[#allocation11 + $0x4d0] sm:$0xff] }
 0x335   :  { %v2432_v37 = vld [vmem:[#allocation11 + $0x4f0] sm:$0xff] }
 0x336   :  { %5367 = vmatpush2.bf16.msra.mxu0 %v6795_v61  ;;  %v6747_v61 = vcombine.low %v2340_v51, %v2344_v52  ;;  %v2548_v51 = vld [vmem:[#allocation11 + $0x890] sm:$0xff] }
 0x337   :  { %5281 = vmatpush2.bf16.msra.mxu1 %v7049_v62  ;;  %5368 = vmatprep.subr.bf16.mxu0 %v6788_v1  ;;  %v7001_v62 = vcombine.low %v2595_v10, %v2599_v53  ;;  %v6996_v1 = vcombine.high %v2588_v57, %v2592_v58  ;;  %v2552_v52 = vld [vmem:[#allocation11 + $0x8b0] sm:$0xff] }
 0x338   :  { %5282 = vmatprep.subr.bf16.mxu1 %v7042_v2  ;;  %v6868_v2 = vcombine.high %v2460_v59, %v2464_v60  ;;  %v2420_v10 = vld [vmem:[#allocation11 + $0x490] sm:$0xff] }
 0x339   :  { %v2424_v53 = vld [vmem:[#allocation11 + $0x4b0] sm:$0xff] }
 0x33a   :  { %5369 = vmatpush2.bf16.msra.mxu0 %v6787_v12  ;;  %v2456_v12 = vld [vmem:[#allocation11 + $0x5b0] sm:$0xff] }
 0x33b   :  { %5283 = vmatpush2.bf16.msra.mxu1 %v7041_v15  ;;  %5370 = vmatprep.subr.bf16.mxu0 %v6780_v19  ;;  %v6867_v15 = vcombine.low %v2460_v59, %v2464_v60  ;;  %v6988_v19 = vcombine.high %v2580_v3, %v2584_v4  ;;  %v6860_v18 = vcombine.high %v2452_v8, %v2456_v12  ;;  %v2540_v57 = vld [vmem:[#allocation11 + $0x850] sm:$0xff] }
 0x33c   :  { %5284 = vmatprep.subr.bf16.mxu1 %v7034_v16  ;;  %v2572_v16 = vld [vmem:[#allocation11 + $0x950] sm:$0xff] }
 0x33d   :  { %v2544_v58 = vld [vmem:[#allocation11 + $0x870] sm:$0xff] }
 0x33e   :  { %5371 = vmatpush2.bf16.msra.mxu0 %v6779_v23  ;;  %v6987_v23 = vcombine.low %v2580_v3, %v2584_v4  ;;  %v2412_v59 = vld [vmem:[#allocation11 + $0x450] sm:$0xff] }
 0x33f   :  { %5285 = vmatpush2.bf16.msra.mxu1 %v7033_v26  ;;  %5372 = vmatprep.subr.bf16.mxu0 %v6772_v27  ;;  %v6859_v26 = vcombine.low %v2452_v8, %v2456_v12  ;;  %v6980_v27 = vcombine.high %v2572_v16, %v2576_v17  ;;  %v2416_v60 = vld [vmem:[#allocation11 + $0x470] sm:$0xff]  ;;  %v6947_v12 = vcombine.low %v2540_v57, %v2544_v58 }
 0x340   :  { %5286 = vmatprep.subr.bf16.mxu1 %v7026_v28  ;;  %v6852_v28 = vcombine.high %v2444_v20, %v2448_v22  ;;  %v2532_v3 = vld [vmem:[#allocation11 + $0x810] sm:$0xff] }
 0x341   :  { %v2536_v4 = vld [vmem:[#allocation11 + $0x830] sm:$0xff] }
 0x342   :  { %5373 = vmatpush2.bf16.msra.mxu0 %v6771_v34  ;;  %v6979_v34 = vcombine.low %v2572_v16, %v2576_v17  ;;  %v2408_v8 = vld [vmem:[#allocation11 + $0x430] sm:$0xff] }
 0x343   :  { %5287 = vmatpush2.bf16.msra.mxu1 %v7025_v35  ;;  %5374 = vmatprep.subr.bf16.mxu0 %v6764_v47  ;;  %v6851_v35 = vcombine.low %v2444_v20, %v2448_v22  ;;  %v6972_v47 = vcombine.high %v2564_v29, %v2568_v30  ;;  %v2652_v17 = vld [vmem:[#allocation11 + $0xbd0] sm:$0xff] }
 0x344   :  { %5288 = vmatprep.subr.bf16.mxu1 %v7018_v24  ;;  %v6844_v24 = vcombine.high %v2436_v33, %v2440_v13  ;;  %v2524_v20 = vld [vmem:[#allocation11 + $0x7d0] sm:$0xff] }
 0x345   :  { %v2528_v22 = vld [vmem:[#allocation11 + $0x7f0] sm:$0xff] }
 0x346   :  { %5375 = vmatpush2.bf16.msra.mxu0 %v6763_v43  ;;  %v6971_v43 = vcombine.low %v2564_v29, %v2568_v30  ;;  %v2644_v29 = vld [vmem:[#allocation11 + $0xb90] sm:$0xff] }
 0x347   :  { %5289 = vmatpush2.bf16.msra.mxu1 %v7017_v44  ;;  %5376 = vmatprep.subr.bf16.mxu0 %v6756_v31  ;;  %v6843_v44 = vcombine.low %v2436_v33, %v2440_v13  ;;  %v6964_v31 = vcombine.high %v2556_v49, %v2560_v14  ;;  %v2648_v30 = vld [vmem:[#allocation11 + $0xbb0] sm:$0xff] }
 0x348   :  { %5290 = vmatprep.subr.bf16.mxu1 %v7010_v9  ;;  %v6836_v9 = vcombine.high %v2428_v36, %v2432_v37  ;;  %v2516_v33 = vld [vmem:[#allocation11 + $0x790] sm:$0xff] }
 0x349   :  { %v2520_v13 = vld [vmem:[#allocation11 + $0x7b0] sm:$0xff] }
 0x34a   :  { %5377 = vmatpush2.bf16.msra.mxu0 %v6755_v32  ;;  %v6963_v32 = vcombine.low %v2556_v49, %v2560_v14  ;;  %v2636_v49 = vld [vmem:[#allocation11 + $0xb50] sm:$0xff] }
 0x34b   :  { %5291 = vmatpush2.bf16.msra.mxu1 %v7009_v55  ;;  %5378 = vmatprep.subr.bf16.mxu0 %v6748_v46  ;;  %v6835_v55 = vcombine.low %v2428_v36, %v2432_v37  ;;  %v6956_v46 = vcombine.high %v2548_v51, %v2552_v52  ;;  %v2640_v14 = vld [vmem:[#allocation11 + $0xb70] sm:$0xff] }
 0x34c   :  { %5292 = vmatprep.subr.bf16.mxu1 %v7002_v50  ;;  %v6828_v50 = vcombine.high %v2420_v10, %v2424_v53  ;;  %v2508_v36 = vld [vmem:[#allocation11 + $0x750] sm:$0xff] }
 0x34d   :  { %v2512_v37 = vld [vmem:[#allocation11 + $0x770] sm:$0xff] }
 0x34e   :  { %5379 = vmatpush2.bf16.msra.mxu0 %v6747_v61  ;;  %v6955_v61 = vcombine.low %v2548_v51, %v2552_v52  ;;  %v2628_v51 = vld [vmem:[#allocation11 + $0xb10] sm:$0xff] }
 0x34f   :  { %5293 = vmatpush2.bf16.msra.mxu1 %v7001_v62  ;;  %5434 = vmatprep.subr.bf16.mxu0 %v6996_v1  ;;  %v6827_v62 = vcombine.low %v2420_v10, %v2424_v53  ;;  %v6948_v1 = vcombine.high %v2540_v57, %v2544_v58  ;;  %v2632_v52 = vld [vmem:[#allocation11 + $0xb30] sm:$0xff] }
 0x350   :  { %5391 = vmatprep.subr.bf16.mxu1 %v6868_v2  ;;  %v6820_v2 = vcombine.high %v2412_v59, %v2416_v60  ;;  %v2500_v10 = vld [vmem:[#allocation11 + $0x710] sm:$0xff] }
 0x351   :  { %5381 = vmatmul.mubr.bf16.vlgmr.msra.gmra.mxu0 %v8156_v54  ;;  %v2504_v53 = vld [vmem:[#allocation11 + $0x730] sm:$0xff] }
 0x352   :  { %5295 = vmatmul.mubr.bf16.vlgmr.msra.gmra.mxu1 %v8198_v48  ;;  %5435 = vmatpush1.bf16.msra.mxu0 %v6995_v7  ;;  %v2404_v7 = vld [vmem:[#allocation11 + $0x410] sm:$0xff] }
 0x353   :  { %5466 = vmatprep.mubr.bf16.mxu0 %v8194_v45  ;;  %5392 = vmatpush1.bf16.msra.mxu1 %v6867_v15  ;;  %v6819_v15 = vcombine.low %v2412_v59, %v2416_v60  ;;  %v6812_v16 = vcombine.high %v2404_v7, %v2408_v8  ;;  %v2620_v57 = vld [vmem:[#allocation11 + $0xad0] sm:$0xff] }
 0x354   :  { %5423 = vmatprep.mubr.bf16.mxu1 %v8169_v21  ;;  %5436 = vmatprep.subr.bf16.mxu0 %v6988_v19  ;;  %v6940_v19 = vcombine.high %v2532_v3, %v2536_v4  ;;  %v2624_v58 = vld [vmem:[#allocation11 + $0xaf0] sm:$0xff] }
 0x355   :  { %5393 = vmatprep.subr.bf16.mxu1 %v6860_v18  ;;  %v2656_v18 = vld [vmem:[#allocation11 + $0xbf0] sm:$0xff] }
 0x356   :  { %5437 = vmatpush1.bf16.msra.mxu0 %v6987_v23  ;;  %v6939_v23 = vcombine.low %v2532_v3, %v2536_v4  ;;  %v2492_v59 = vld [vmem:[#allocation11 + $0x6d0] sm:$0xff] }
 0x357   :  { %5394 = vmatpush1.bf16.msra.mxu1 %v6859_v26  ;;  %5438 = vmatprep.subr.bf16.mxu0 %v6980_v27  ;;  %v6811_v26 = vcombine.low %v2404_v7, %v2408_v8  ;;  %v7060_v27 = vcombine.high %v2652_v17, %v2656_v18  ;;  %v2496_v60 = vld [vmem:[#allocation11 + $0x6f0] sm:$0xff] }
 0x358   :  { %5395 = vmatprep.subr.bf16.mxu1 %v6852_v28  ;;  %v6932_v28 = vcombine.high %v2524_v20, %v2528_v22  ;;  %v2612_v3 = vld [vmem:[#allocation11 + $0xa90] sm:$0xff] }
 0x359   :  { %v2616_v4 = vld [vmem:[#allocation11 + $0xab0] sm:$0xff] }
 0x35a   :  { %5439 = vmatpush1.bf16.msra.mxu0 %v6979_v34  ;;  %v7059_v34 = vcombine.low %v2652_v17, %v2656_v18  ;;  %v2484_v7 = vld [vmem:[#allocation11 + $0x690] sm:$0xff] }
 0x35b   :  { %5396 = vmatpush1.bf16.msra.mxu1 %v6851_v35  ;;  %5440 = vmatprep.subr.bf16.mxu0 %v6972_v47  ;;  %v6931_v35 = vcombine.low %v2524_v20, %v2528_v22  ;;  %v7052_v47 = vcombine.high %v2644_v29, %v2648_v30  ;;  %v2488_v8 = vld [vmem:[#allocation11 + $0x6b0] sm:$0xff] }
 0x35c   :  { %5397 = vmatprep.subr.bf16.mxu1 %v6844_v24  ;;  %v6924_v24 = vcombine.high %v2516_v33, %v2520_v13  ;;  %v2604_v17 = vld [vmem:[#allocation11 + $0xa50] sm:$0xff] }
 0x35d   :  { %v2608_v18 = vld [vmem:[#allocation11 + $0xa70] sm:$0xff] }
 0x35e   :  { %5441 = vmatpush1.bf16.msra.mxu0 %v6971_v43  ;;  %v7051_v43 = vcombine.low %v2644_v29, %v2648_v30  ;;  %v2476_v20 = vld [vmem:[#allocation11 + $0x650] sm:$0xff] }
 0x35f   :  { %5398 = vmatpush1.bf16.msra.mxu1 %v6843_v44  ;;  %5442 = vmatprep.subr.bf16.mxu0 %v6964_v31  ;;  %v6923_v44 = vcombine.low %v2516_v33, %v2520_v13  ;;  %v7044_v31 = vcombine.high %v2636_v49, %v2640_v14  ;;  %v2480_v22 = vld [vmem:[#allocation11 + $0x670] sm:$0xff] }
 0x360   :  { %5399 = vmatprep.subr.bf16.mxu1 %v6836_v9  ;;  %v6916_v9 = vcombine.high %v2508_v36, %v2512_v37  ;;  %v2596_v29 = vld [vmem:[#allocation11 + $0xa10] sm:$0xff] }
 0x361   :  { %v2600_v30 = vld [vmem:[#allocation11 + $0xa30] sm:$0xff] }
 0x362   :  { %5443 = vmatpush1.bf16.msra.mxu0 %v6963_v32  ;;  %v7043_v32 = vcombine.low %v2636_v49, %v2640_v14  ;;  %v2468_v33 = vld [vmem:[#allocation11 + $0x610] sm:$0xff]  ;;  %v2461_v49 = vld [vmem:[#allocation11 + $0x5d8] sm:$0xff] }
 0x363   :  { %5400 = vmatpush1.bf16.msra.mxu1 %v6835_v55  ;;  %5444 = vmatprep.subr.bf16.mxu0 %v6956_v46  ;;  %v6915_v55 = vcombine.low %v2508_v36, %v2512_v37  ;;  %v7036_v46 = vcombine.high %v2628_v51, %v2632_v52  ;;  %v2472_v13 = vld [vmem:[#allocation11 + $0x630] sm:$0xff]  ;;  %v2465_v14 = vld [vmem:[#allocation11 + $0x5f8] sm:$0xff] }
 0x364   :  { %5401 = vmatprep.subr.bf16.mxu1 %v6828_v50  ;;  %v6908_v50 = vcombine.high %v2500_v10, %v2504_v53  ;;  %v2716_v36 = vld [vmem:[#allocation11 + $0xdd0] sm:$0xff] }
 0x365   :  { %v2720_v37 = vld [vmem:[#allocation11 + $0xdf0] sm:$0xff] }
 0x366   :  { %5445 = vmatpush1.bf16.msra.mxu0 %v6955_v61  ;;  %v7035_v61 = vcombine.low %v2628_v51, %v2632_v52  ;;  %v2453_v51 = vld [vmem:[#allocation11 + $0x598] sm:$0xff] }
 0x367   :  { %5402 = vmatpush1.bf16.msra.mxu1 %v6827_v62  ;;  %5446 = vmatprep.subr.bf16.mxu0 %v6948_v1  ;;  %v6907_v62 = vcombine.low %v2500_v10, %v2504_v53  ;;  %v7028_v1 = vcombine.high %v2620_v57, %v2624_v58  ;;  %v2457_v52 = vld [vmem:[#allocation11 + $0x5b8] sm:$0xff]  ;;  %v2708_v10 = vld [vmem:[#allocation11 + $0xd90] sm:$0xff] }
 0x368   :  { %5403 = vmatprep.subr.bf16.mxu1 %v6820_v2  ;;  %v6900_v2 = vcombine.high %v2492_v59, %v2496_v60  ;;  %v2712_v53 = vld [vmem:[#allocation11 + $0xdb0] sm:$0xff] }
 0x36a   :  { %5447 = vmatpush1.bf16.msra.mxu0 %v6947_v12  ;;  %v7027_v12 = vcombine.low %v2620_v57, %v2624_v58  ;;  %v2445_v57 = vld [vmem:[#allocation11 + $0x558] sm:$0xff] }
 0x36b   :  { %5404 = vmatpush1.bf16.msra.mxu1 %v6819_v15  ;;  %5448 = vmatprep.subr.bf16.mxu0 %v6940_v19  ;;  %v6899_v15 = vcombine.low %v2492_v59, %v2496_v60  ;;  %v7020_v19 = vcombine.high %v2612_v3, %v2616_v4  ;;  %v2449_v58 = vld [vmem:[#allocation11 + $0x578] sm:$0xff]  ;;  %v2700_v59 = vld [vmem:[#allocation11 + $0xd50] sm:$0xff] }
 0x36c   :  { %5405 = vmatprep.subr.bf16.mxu1 %v6812_v16  ;;  %v6892_v16 = vcombine.high %v2484_v7, %v2488_v8  ;;  %v2704_v60 = vld [vmem:[#allocation11 + $0xd70] sm:$0xff] }
 0x36e   :  { %5449 = vmatpush1.bf16.msra.mxu0 %v6939_v23  ;;  %v7019_v23 = vcombine.low %v2612_v3, %v2616_v4  ;;  %v2437_v3 = vld [vmem:[#allocation11 + $0x518] sm:$0xff] }
 0x36f   :  { %5406 = vmatpush1.bf16.msra.mxu1 %v6811_v26  ;;  %5450 = vmatprep.subr.bf16.mxu0 %v7060_v27  ;;  %v6891_v26 = vcombine.low %v2484_v7, %v2488_v8  ;;  %v7012_v27 = vcombine.high %v2604_v17, %v2608_v18  ;;  %v2441_v4 = vld [vmem:[#allocation11 + $0x538] sm:$0xff]  ;;  %v2692_v7 = vld [vmem:[#allocation11 + $0xd10] sm:$0xff] }
 0x370   :  { %5407 = vmatprep.subr.bf16.mxu1 %v6932_v28  ;;  %v6884_v28 = vcombine.high %v2476_v20, %v2480_v22  ;;  %v2696_v8 = vld [vmem:[#allocation11 + $0xd30] sm:$0xff] }
 0x372   :  { %5451 = vmatpush2.bf16.msra.mxu0 %v7059_v34  ;;  %v7011_v34 = vcombine.low %v2604_v17, %v2608_v18  ;;  %v2433_v17 = vld [vmem:[#allocation11 + $0x4f8] sm:$0xff]  ;;  %v2684_v18 = vld [vmem:[#allocation11 + $0xcd0] sm:$0xff] }
 0x373   :  { %5408 = vmatpush2.bf16.msra.mxu1 %v6931_v35  ;;  %5452 = vmatprep.subr.bf16.mxu0 %v7052_v47  ;;  %v6883_v35 = vcombine.low %v2476_v20, %v2480_v22  ;;  %v7004_v47 = vcombine.high %v2596_v29, %v2600_v30  ;;  %v2688_v20 = vld [vmem:[#allocation11 + $0xcf0] sm:$0xff]  ;;  %v6845_v22 = vcombine.low %v2437_v3, %v2441_v4 }
 0x374   :  { %5409 = vmatprep.subr.bf16.mxu1 %v6924_v24  ;;  %v6876_v24 = vcombine.high %v2468_v33, %v2472_v13 }
 0x376   :  { %5453 = vmatpush2.bf16.msra.mxu0 %v7051_v43  ;;  %v7003_v43 = vcombine.low %v2596_v29, %v2600_v30  ;;  %v2425_v29 = vld [vmem:[#allocation11 + $0x4b8] sm:$0xff]  ;;  %v2676_v30 = vld [vmem:[#allocation11 + $0xc90] sm:$0xff] }
 0x377   :  { %5410 = vmatpush2.bf16.msra.mxu1 %v6923_v44  ;;  %5454 = vmatprep.subr.bf16.mxu0 %v7044_v31  ;;  %v6875_v44 = vcombine.low %v2468_v33, %v2472_v13  ;;  %v6870_v31 = vcombine.high %v2461_v49, %v2465_v14  ;;  %v2680_v33 = vld [vmem:[#allocation11 + $0xcb0] sm:$0xff] }
 0x378   :  { %5411 = vmatprep.subr.bf16.mxu1 %v6916_v9  ;;  %v7124_v9 = vcombine.high %v2716_v36, %v2720_v37 }
 0x37a   :  { %5455 = vmatpush2.bf16.msra.mxu0 %v7043_v32  ;;  %v6869_v32 = vcombine.low %v2461_v49, %v2465_v14  ;;  %v2417_v49 = vld [vmem:[#allocation11 + $0x478] sm:$0xff]  ;;  %v2668_v14 = vld [vmem:[#allocation11 + $0xc50] sm:$0xff] }
 0x37b   :  { %5412 = vmatpush2.bf16.msra.mxu1 %v6915_v55  ;;  %5456 = vmatprep.subr.bf16.mxu0 %v7036_v46  ;;  %v7123_v55 = vcombine.low %v2716_v36, %v2720_v37  ;;  %v6862_v46 = vcombine.high %v2453_v51, %v2457_v52  ;;  %v2672_v36 = vld [vmem:[#allocation11 + $0xc70] sm:$0xff] }
 0x37c   :  { %5413 = vmatprep.subr.bf16.mxu1 %v6908_v50  ;;  %v7116_v50 = vcombine.high %v2708_v10, %v2712_v53 }
 0x37e   :  { %5457 = vmatpush2.bf16.msra.mxu0 %v7035_v61  ;;  %v6861_v61 = vcombine.low %v2453_v51, %v2457_v52  ;;  %v2409_v51 = vld [vmem:[#allocation11 + $0x438] sm:$0xff]  ;;  %v2660_v52 = vld [vmem:[#allocation11 + $0xc10] sm:$0xff] }
 0x37f   :  { %5414 = vmatpush2.bf16.msra.mxu1 %v6907_v62  ;;  %5458 = vmatprep.subr.bf16.mxu0 %v7028_v1  ;;  %v7115_v62 = vcombine.low %v2708_v10, %v2712_v53  ;;  %v6854_v1 = vcombine.high %v2445_v57, %v2449_v58  ;;  %v2664_v10 = vld [vmem:[#allocation11 + $0xc30] sm:$0xff] }
 0x380   :  { %5415 = vmatprep.subr.bf16.mxu1 %v6900_v2  ;;  %v7108_v2 = vcombine.high %v2700_v59, %v2704_v60 }
 0x382   :  { %5459 = vmatpush2.bf16.msra.mxu0 %v7027_v12  ;;  %v6853_v12 = vcombine.low %v2445_v57, %v2449_v58  ;;  %v2529_v57 = vld [vmem:[#allocation11 + $0x7f8] sm:$0xff] }
 0x383   :  { %5416 = vmatpush2.bf16.msra.mxu1 %v6899_v15  ;;  %5460 = vmatprep.subr.bf16.mxu0 %v7020_v19  ;;  %v7107_v15 = vcombine.low %v2700_v59, %v2704_v60  ;;  %v6846_v19 = vcombine.high %v2437_v3, %v2441_v4  ;;  %v2333_v58 = vld [vmem:[#allocation11 + $0x1d8] sm:$0xff] }
 0x384   :  { %5417 = vmatprep.subr.bf16.mxu1 %v6892_v16  ;;  %v2429_v16 = vld [vmem:[#allocation11 + $0x4d8] sm:$0xff] }
 0x385   :  { %v6837_v13 = vcombine.low %v2429_v16, %v2433_v17  ;;  %v2337_v59 = vld [vmem:[#allocation11 + $0x1f8] sm:$0xff] }
 0x386   :  { %5461 = vmatpush2.bf16.msra.mxu0 %v7019_v23  ;;  %v7099_v23 = vcombine.low %v2692_v7, %v2696_v8  ;;  %v2521_v3 = vld [vmem:[#allocation11 + $0x7b8] sm:$0xff] }
 0x387   :  { %5418 = vmatpush2.bf16.msra.mxu1 %v6891_v26  ;;  %5462 = vmatprep.subr.bf16.mxu0 %v7012_v27  ;;  %v6838_v26 = vcombine.high %v2429_v16, %v2433_v17  ;;  %v7092_v27 = vcombine.high %v2684_v18, %v2688_v20  ;;  %v2325_v4 = vld [vmem:[#allocation11 + $0x198] sm:$0xff] }
 0x388   :  { %5419 = vmatprep.subr.bf16.mxu1 %v6884_v28  ;;  %v2421_v28 = vld [vmem:[#allocation11 + $0x498] sm:$0xff] }
 0x389   :  { %v6829_v37 = vcombine.low %v2421_v28, %v2425_v29  ;;  %v2513_v16 = vld [vmem:[#allocation11 + $0x778] sm:$0xff] }
 0x38a   :  { %5463 = vmatpush2.bf16.msra.mxu0 %v7011_v34  ;;  %v7091_v34 = vcombine.low %v2684_v18, %v2688_v20  ;;  %v2317_v17 = vld [vmem:[#allocation11 + $0x158] sm:$0xff] }
 0x38b   :  { %5420 = vmatpush2.bf16.msra.mxu1 %v6883_v35  ;;  %5464 = vmatprep.subr.bf16.mxu0 %v7004_v47  ;;  %v6830_v35 = vcombine.high %v2421_v28, %v2425_v29  ;;  %v7084_v47 = vcombine.high %v2676_v30, %v2680_v33  ;;  %v2321_v18 = vld [vmem:[#allocation11 + $0x178] sm:$0xff] }
 0x38c   :  { %5421 = vmatprep.subr.bf16.mxu1 %v6876_v24  ;;  %v2413_v24 = vld [vmem:[#allocation11 + $0x458] sm:$0xff] }
 0x38d   :  { %v6821_v53 = vcombine.low %v2413_v24, %v2417_v49  ;;  %v2505_v28 = vld [vmem:[#allocation11 + $0x738] sm:$0xff] }
 0x38e   :  { %5465 = vmatpush2.bf16.msra.mxu0 %v7003_v43  ;;  %v7083_v43 = vcombine.low %v2676_v30, %v2680_v33  ;;  %v2309_v29 = vld [vmem:[#allocation11 + $0x118] sm:$0xff] }
 0x38f   :  { %5422 = vmatpush2.bf16.msra.mxu1 %v6875_v44  ;;  %5563 = vmatprep.subr.bf16.mxu0 %v6870_v31  ;;  %v6822_v44 = vcombine.high %v2413_v24, %v2417_v49  ;;  %v7076_v31 = vcombine.high %v2668_v14, %v2672_v36  ;;  %v2313_v30 = vld [vmem:[#allocation11 + $0x138] sm:$0xff] }
 0x390   :  { %5477 = vmatprep.subr.bf16.mxu1 %v7124_v9  ;;  %v2405_v9 = vld [vmem:[#allocation11 + $0x418] sm:$0xff] }
 0x391   :  { %5467 = vmatmul.mubr.bf16.vlgmr.msra.gmra.mxu0 %v8198_v48  ;;  %v6813_v60 = vcombine.low %v2405_v9, %v2409_v51  ;;  %v2497_v24 = vld [vmem:[#allocation11 + $0x6f8] sm:$0xff] }
 0x392   :  { %5424 = vmatmul.mubr.bf16.vlgmr.msra.gmra.mxu1 %v8173_v25  ;;  %5564 = vmatpush1.bf16.msra.mxu0 %v6869_v32  ;;  %v7075_v32 = vcombine.low %v2668_v14, %v2672_v36  ;;  %v2305_v49 = vld [vmem:[#allocation11 + $0xf8] sm:$0xff]  ;;  %v6717_v36 = vcombine.low %v2309_v29, %v2313_v30 }
 0x393   :  { %5595 = vmatprep.mubr.bf16.mxu0 %v8169_v21  ;;  %5478 = vmatpush1.bf16.msra.mxu1 %v7123_v55  ;;  %v7100_v21 = vcombine.high %v2692_v7, %v2696_v8  ;;  %v6814_v55 = vcombine.high %v2405_v9, %v2409_v51  ;;  %v2329_v7 = vld [vmem:[#allocation11 + $0x1b8] sm:$0xff] }
 0x394   :  { %5565 = vmatprep.subr.bf16.mxu0 %v6862_v46  ;;  %5479 = vmatprep.subr.bf16.mxu1 %v7116_v50  ;;  %v7068_v46 = vcombine.high %v2660_v52, %v2664_v10  ;;  %v2525_v50 = vld [vmem:[#allocation11 + $0x7d8] sm:$0xff] }
 0x395   :  { %5509 = vmatprep.mubr.bf16.mxu1 %v8007_v0  ;;  %v6933_v8 = vcombine.low %v2525_v50, %v2529_v57  ;;  %v2293_v9 = vld [vmem:[#allocation11 + $0x98] sm:$0xff] }
 0x396   :  { %5566 = vmatpush1.bf16.msra.mxu0 %v6861_v61  ;;  %v7067_v61 = vcombine.low %v2660_v52, %v2664_v10  ;;  %v2297_v51 = vld [vmem:[#allocation11 + $0xb8] sm:$0xff] }
 0x397   :  { %5480 = vmatpush1.bf16.msra.mxu1 %v7115_v62  ;;  %5567 = vmatprep.subr.bf16.mxu0 %v6854_v1  ;;  %v6934_v62 = vcombine.high %v2525_v50, %v2529_v57  ;;  %v6742_v1 = vcombine.high %v2333_v58, %v2337_v59  ;;  %v2285_v50 = vld [vmem:[#allocation11 + $0x58] sm:$0xff] }
 0x398   :  { %5481 = vmatprep.subr.bf16.mxu1 %v7108_v2  ;;  %v2517_v2 = vld [vmem:[#allocation11 + $0x798] sm:$0xff] }
 0x399   :  { %v6925_v20 = vcombine.low %v2517_v2, %v2521_v3  ;;  %v2289_v57 = vld [vmem:[#allocation11 + $0x78] sm:$0xff] }
 0x39a   :  { %5568 = vmatpush1.bf16.msra.mxu0 %v6853_v12  ;;  %v6741_v12 = vcombine.low %v2333_v58, %v2337_v59  ;;  %v6701_v59 = vcombine.low %v2293_v9, %v2297_v51 }
 0x39b   :  { %5482 = vmatpush1.bf16.msra.mxu1 %v7107_v15  ;;  %5569 = vmatprep.subr.bf16.mxu0 %v6846_v19  ;;  %v6926_v15 = vcombine.high %v2517_v2, %v2521_v3  ;;  %v6734_v19 = vcombine.high %v2325_v4, %v2329_v7  ;;  %v2277_v2 = vld [vmem:[#allocation11 + $0x18] sm:$0xff] }
 0x39c   :  { %5483 = vmatprep.subr.bf16.mxu1 %v7100_v21  ;;  %v2509_v21 = vld [vmem:[#allocation11 + $0x758] sm:$0xff] }
 0x39d   :  { %v6917_v33 = vcombine.low %v2509_v21, %v2513_v16  ;;  %v2281_v3 = vld [vmem:[#allocation11 + $0x38] sm:$0xff] }
 0x39e   :  { %5570 = vmatpush1.bf16.msra.mxu0 %v6845_v22  ;;  %v6733_v22 = vcombine.low %v2325_v4, %v2329_v7  ;;  %v6693_v7 = vcombine.low %v2285_v50, %v2289_v57 }
 0x39f   :  { %5484 = vmatpush1.bf16.msra.mxu1 %v7099_v23  ;;  %5571 = vmatprep.subr.bf16.mxu0 %v6838_v26  ;;  %v6918_v23 = vcombine.high %v2509_v21, %v2513_v16  ;;  %v6726_v26 = vcombine.high %v2317_v17, %v2321_v18  ;;  %v2397_v21 = vld [vmem:[#allocation11 + $0x3d8] sm:$0xff] }
 0x3a0   :  { %5485 = vmatprep.subr.bf16.mxu1 %v7092_v27  ;;  %v2501_v27 = vld [vmem:[#allocation11 + $0x718] sm:$0xff] }
 0x3a1   :  { %v6909_v14 = vcombine.low %v2501_v27, %v2505_v28  ;;  %v2401_v16 = vld [vmem:[#allocation11 + $0x3f8] sm:$0xff] }
 0x3a2   :  { %5572 = vmatpush1.bf16.msra.mxu0 %v6837_v13  ;;  %v6725_v13 = vcombine.low %v2317_v17, %v2321_v18  ;;  %v8230_v17 = vpop.f32.mrf.mxu0 }
 0x3a3   :  { %5486 = vmatpush1.bf16.msra.mxu1 %v7091_v34  ;;  %5573 = vmatprep.subr.bf16.mxu0 %v6830_v35  ;;  %v6910_v34 = vcombine.high %v2501_v27, %v2505_v28  ;;  %v6718_v35 = vcombine.high %v2309_v29, %v2313_v30  ;;  %v2709_v27 = vld [vmem:[#allocation11 + $0xd98] sm:$0xff] }
 0x3a4   :  { %5487 = vmatprep.subr.bf16.mxu1 %v7084_v47  ;;  %v2493_v47 = vld [vmem:[#allocation11 + $0x6d8] sm:$0xff] }
 0x3a5   :  { %v6901_v52 = vcombine.low %v2493_v47, %v2497_v24  ;;  %v2713_v28 = vld [vmem:[#allocation11 + $0xdb8] sm:$0xff] }
 0x3a6   :  { %5574 = vmatpush1.bf16.msra.mxu0 %v6829_v37  ;;  %v6902_v37 = vcombine.high %v2493_v47, %v2497_v24  ;;  %v2389_v29 = vld [vmem:[#allocation11 + $0x398] sm:$0xff] }
 0x3a7   :  { %5488 = vmatpush1.bf16.msra.mxu1 %v7083_v43  ;;  %5575 = vmatprep.subr.bf16.mxu0 %v6822_v44  ;;  %v2485_v44 = vld [vmem:[#allocation11 + $0x698] sm:$0xff] }
 0x3a8   :  { %5489 = vmatprep.subr.bf16.mxu1 %v7076_v31  ;;  %v2489_v31 = vld [vmem:[#allocation11 + $0x6b8] sm:$0xff] }
 0x3a9   :  { %v6893_v58 = vcombine.low %v2485_v44, %v2489_v31  ;;  %v2393_v30 = vld [vmem:[#allocation11 + $0x3b8] sm:$0xff] }
 0x3aa   :  { %5576 = vmatpush1.bf16.msra.mxu0 %v6821_v53  ;;  %v6894_v53 = vcombine.high %v2485_v44, %v2489_v31  ;;  %v6798_v24 = vcombine.high %v2389_v29, %v2393_v30  ;;  %v6797_v44 = vcombine.low %v2389_v29, %v2393_v30  ;;  %v2669_v30 = vld [vmem:[#allocation11 + $0xc58] sm:$0xff] }
 0x3ab   :  { %5490 = vmatpush1.bf16.msra.mxu1 %v7075_v32  ;;  %5577 = vmatprep.subr.bf16.mxu0 %v6814_v55  ;;  %v6702_v32 = vcombine.high %v2293_v9, %v2297_v51  ;;  %v2477_v55 = vld [vmem:[#allocation11 + $0x658] sm:$0xff] }
 0x3ac   :  { %5491 = vmatprep.subr.bf16.mxu1 %v7068_v46  ;;  %v2481_v46 = vld [vmem:[#allocation11 + $0x678] sm:$0xff] }
 0x3ad   :  { %v6885_v4 = vcombine.low %v2477_v55, %v2481_v46 }
 0x3ae   :  { %5578 = vmatpush1.bf16.msra.mxu0 %v6813_v60  ;;  %v6886_v60 = vcombine.high %v2477_v55, %v2481_v46 }
 0x3af   :  { %5492 = vmatpush1.bf16.msra.mxu1 %v7067_v61  ;;  %5579 = vmatprep.subr.bf16.mxu0 %v6934_v62  ;;  %v6694_v61 = vcombine.high %v2285_v50, %v2289_v57  ;;  %v2469_v62 = vld [vmem:[#allocation11 + $0x618] sm:$0xff] }
 0x3b0   :  { %5520 = vmatprep.subr.bf16.mxu1 %v6742_v1  ;;  %v2473_v1 = vld [vmem:[#allocation11 + $0x638] sm:$0xff] }
 0x3b1   :  { %v6877_v18 = vcombine.low %v2469_v62, %v2473_v1 }
 0x3b2   :  { %5510 = vmatmul.mubr.bf16.vlgmr.msra.gmra.mxu1 %v8207_v56  ;;  %5580 = vmatpush2.bf16.msra.mxu0 %v6933_v8  ;;  %v6878_v8 = vcombine.high %v2469_v62, %v2473_v1  ;;  %v2369_v62 = vld [vmem:[#allocation11 + $0x2f8] sm:$0xff] }
 0x3b3   :  { %5521 = vmatpush1.bf16.msra.mxu1 %v6741_v12  ;;  %5552 = vmatprep.mubr.bf16.mxu1 %v8142_v11  ;;  %v2301_v11 = vld [vmem:[#allocation11 + $0xd8] sm:$0xff]  ;;  %v6686_v12 = vcombine.high %v2277_v2, %v2281_v3 }
 0x3b4   :  { %5581 = vmatprep.subr.bf16.mxu0 %v6926_v15  ;;  %5522 = vmatprep.subr.bf16.mxu1 %v6734_v19  ;;  %v6710_v43 = vcombine.high %v2301_v11, %v2305_v49  ;;  %v6709_v10 = vcombine.low %v2301_v11, %v2305_v49  ;;  %v2717_v15 = vld [vmem:[#allocation11 + $0xdd8] sm:$0xff] }
 0x3b5   :  { %v2721_v19 = vld [vmem:[#allocation11 + $0xdf8] sm:$0xff] }
 0x3b6   :  { %5582 = vmatpush2.bf16.msra.mxu0 %v6925_v20  ;;  %v6685_v20 = vcombine.low %v2277_v2, %v2281_v3  ;;  %v2701_v11 = vld [vmem:[#allocation11 + $0xd58] sm:$0xff] }
 0x3b7   :  { %5523 = vmatpush1.bf16.msra.mxu1 %v6733_v22  ;;  %5583 = vmatprep.subr.bf16.mxu0 %v6918_v23  ;;  %v7126_v22 = vcombine.high %v2717_v15, %v2721_v19  ;;  %v8232_v23 = vpop.f32.mrf.mxu1  ;;  %v2705_v49 = vld [vmem:[#allocation11 + $0xd78] sm:$0xff] }
 0x3b8   :  { %5524 = vmatprep.subr.bf16.mxu1 %v6726_v26  ;;  %v6806_v26 = vcombine.high %v2397_v21, %v2401_v16  ;;  %v7110_v31 = vcombine.high %v2701_v11, %v2705_v49  ;;  %v7109_v55 = vcombine.low %v2701_v11, %v2705_v49 }
 0x3b9   :  { %v8236_v47 = vpop.f32.mrf.mxu1 }
 0x3ba   :  { %5584 = vmatpush2.bf16.msra.mxu0 %v6917_v33  ;;  %v8234_v33 = vpop.f32.mrf.mxu0 }
 0x3bb   :  { %5525 = vmatpush1.bf16.msra.mxu1 %v6725_v13  ;;  %5585 = vmatprep.subr.bf16.mxu0 %v6910_v34  ;;  %v7125_v13 = vcombine.low %v2717_v15, %v2721_v19  ;;  %v6805_v34 = vcombine.low %v2397_v21, %v2401_v16  ;;  %v8242_v9 = vpop.f32.mrf.mxu1  ;;  %v2681_v15 = vld [vmem:[#allocation11 + $0xcb8] sm:$0xff] }
 0x3bc   :  { %5526 = vmatprep.subr.bf16.mxu1 %v6718_v35  ;;  %v7118_v35 = vcombine.high %v2709_v27, %v2713_v28  ;;  %v2357_v19 = vld [vmem:[#allocation11 + $0x298] sm:$0xff] }
 0x3bd   :  { %v2361_v21 = vld [vmem:[#allocation11 + $0x2b8] sm:$0xff] }
 0x3be   :  { %5586 = vmatpush2.bf16.msra.mxu0 %v6909_v14  ;;  %v2381_v14 = vld [vmem:[#allocation11 + $0x358] sm:$0xff]  ;;  %v6766_v29 = vcombine.high %v2357_v19, %v2361_v21 }
 0x3bf   :  { %5527 = vmatpush1.bf16.msra.mxu1 %v6717_v36  ;;  %5587 = vmatprep.subr.bf16.mxu0 %v6902_v37  ;;  %v2385_v36 = vld [vmem:[#allocation11 + $0x378] sm:$0xff]  ;;  %v8239_v37 = vpop.f32.mrf.mxu0 }
 0x3c0   :  { %5528 = vmatprep.subr.bf16.mxu1 %v6710_v43  ;;  %v7117_v43 = vcombine.low %v2709_v27, %v2713_v28  ;;  %v6790_v51 = vcombine.high %v2381_v14, %v2385_v36  ;;  %v6789_v46 = vcombine.low %v2381_v14, %v2385_v36  ;;  %v6765_v14 = vcombine.low %v2357_v19, %v2361_v21  ;;  %v2585_v19 = vld [vmem:[#allocation11 + $0x9b8] sm:$0xff] }
 0x3c2   :  { %5588 = vmatpush2.bf16.msra.mxu0 %v6901_v52  ;;  %v2693_v52 = vld [vmem:[#allocation11 + $0xd18] sm:$0xff] }
 0x3c3   :  { %5529 = vmatpush1.bf16.msra.mxu1 %v6709_v10  ;;  %5589 = vmatprep.subr.bf16.mxu0 %v6894_v53  ;;  %v2697_v10 = vld [vmem:[#allocation11 + $0xd38] sm:$0xff] }
 0x3c4   :  { %5530 = vmatprep.subr.bf16.mxu1 %v6702_v32  ;;  %v2373_v53 = vld [vmem:[#allocation11 + $0x318] sm:$0xff]  ;;  %v5044_v32 = vpop.f32.mrf.mxu0  ;;  %v7102_v50 = vcombine.high %v2693_v52, %v2697_v10  ;;  %v7101_v2 = vcombine.low %v2693_v52, %v2697_v10 }
 0x3c5   :  { %v2341_v10 = vld [vmem:[#allocation11 + $0x218] sm:$0xff] }
 0x3c6   :  { %5590 = vmatpush2.bf16.msra.mxu0 %v6893_v58  ;;  %v8244_v57 = vpop.f32.mrf.mxu0 }
 0x3c7   :  { %5531 = vmatpush1.bf16.msra.mxu1 %v6701_v59  ;;  %5591 = vmatprep.subr.bf16.mxu0 %v6886_v60  ;;  %v2685_v59 = vld [vmem:[#allocation11 + $0xcd8] sm:$0xff] }
 0x3c8   :  { %5532 = vmatprep.subr.bf16.mxu1 %v6694_v61  ;;  %v2689_v60 = vld [vmem:[#allocation11 + $0xcf8] sm:$0xff] }
 0x3c9   :  { %v2365_v61 = vld [vmem:[#allocation11 + $0x2d8] sm:$0xff] }
 0x3ca   :  { %5592 = vmatpush2.bf16.msra.mxu0 %v6885_v4  ;;  %v7094_v4 = vcombine.high %v2685_v59, %v2689_v60 }
 0x3cb   :  { %5533 = vmatpush1.bf16.msra.mxu1 %v6693_v7  ;;  %5593 = vmatprep.subr.bf16.mxu0 %v6878_v8  ;;  %v5126_v7 = vpop.f32.mrf.mxu0  ;;  %v6774_v8 = vcombine.high %v2365_v61, %v2369_v62 }
 0x3cc   :  { %5534 = vmatprep.subr.bf16.mxu1 %v6686_v12  ;;  %v2677_v12 = vld [vmem:[#allocation11 + $0xc98] sm:$0xff] }
 0x3cd   :  { %v8252_v28 = vpop.f32.mrf.mxu0  ;;  %v7085_v11 = vcombine.low %v2677_v12, %v2681_v15 }
 0x3ce   :  { %5594 = vmatpush2.bf16.msra.mxu0 %v6877_v18  ;;  %v7093_v18 = vcombine.low %v2685_v59, %v2689_v60 }
 0x3cf   :  { %5535 = vmatpush1.bf16.msra.mxu1 %v6685_v20  ;;  %5649 = vmatprep.subr.bf16.mxu0 %v7126_v22  ;;  %v8248_v20 = vld [vmem:[#allocation13] sm:$0xff]  ;;  %v6773_v22 = vcombine.low %v2365_v61, %v2369_v62  ;;  %v2589_v61 = vld [vmem:[#allocation11 + $0x9d8] sm:$0xff] }
 0x3d0   :  { %5536 = vmatprep.subr.bf16.mxu1 %v6806_v26  ;;  %v7086_v26 = vcombine.high %v2677_v12, %v2681_v15  ;;  %v2731_v27 = vrot.slane %v8248_v20, %v8093_v39  ;;  %v5130_v39 = vpop.f32.mrf.mxu0  ;;  %v2593_v62 = vld [vmem:[#allocation11 + $0x9f8] sm:$0xff]  ;;  %v7715_v12 = vld [vmem:[#allocation14 + $0x38] sm:$0xff]  }
 0x3d1   :  { %5596 = vmatmul.mubr.bf16.vlgmr.msra.gmra.mxu0 %v8173_v25  ;;  %v2377_v25 = vld [vmem:[#allocation11 + $0x338] sm:$0xff] }
 0x3d2   :  { %5650 = vmatpush1.bf16.msra.mxu0 %v7125_v13  ;;  %5681 = vmatprep.mubr.bf16.mxu0 %v8007_v0  ;;  %v5087_v0 = vpop.f32.mrf.mxu1  ;;  %v6782_v58 = vcombine.high %v2373_v53, %v2377_v25  ;;  %v6781_v3 = vcombine.low %v2373_v53, %v2377_v25  ;;  %v2673_v13 = vld [vmem:[#allocation11 + $0xc78] sm:$0xff]  ;;  %v5045_v49 = vadd.f32 %v5044_v32, %v2731_v27 }
 0x3d3   :  { %5537 = vmatpush2.bf16.msra.mxu1 %v6805_v34  ;;  %5651 = vmatprep.subr.bf16.mxu0 %v7118_v35  ;;  %v2349_v34 = vld [vmem:[#allocation11 + $0x258] sm:$0xff]  ;;  %v7078_v36 = vcombine.high %v2669_v30, %v2673_v13 }
 0x3d4   :  { %5538 = vmatprep.subr.bf16.mxu1 %v6798_v24  ;;  %v8246_v1 = vpop.f32.mrf.mxu1  ;;  %v2353_v35 = vld [vmem:[#allocation11 + $0x278] sm:$0xff]  ;;  %v5088_v52 = vadd.f32 %v5087_v0, %v5045_v49 }
 0x3d5   :  { %v2345_v53 = vld [vmem:[#allocation11 + $0x238] sm:$0xff] }
 0x3d6   :  { %5652 = vmatpush1.bf16.msra.mxu0 %v7117_v43  ;;  %v5169_v16 = vpop.f32.mrf.mxu1  ;;  %v5041_v43 = vadd.f32 %v8234_v33, %v2731_v27  ;;  %v5131_v32 = vadd.f32 %v5130_v39, %v5088_v52  ;;  %v6750_v33 = vcombine.high %v2341_v10, %v2345_v53  ;;  %v2581_v15 = vld [vmem:[#allocation11 + $0x998] sm:$0xff]  ;;  %v7721_v39 = vld [vmem:[#allocation14 + $0x20] sm:$0xff]  }
 0x3d7   :  { %5539 = vmatpush2.bf16.msra.mxu1 %v6797_v44  ;;  %5653 = vmatprep.subr.bf16.mxu0 %v7110_v31  ;;  %v6758_v44 = vcombine.high %v2349_v34, %v2353_v35  ;;  %v2661_v31 = vld [vmem:[#allocation11 + $0xc18] sm:$0xff] }
 0x3d8   :  { %5540 = vmatprep.subr.bf16.mxu1 %v6790_v51  ;;  %v8254_v24 = vpop.f32.mrf.mxu1  ;;  %v2665_v51 = vld [vmem:[#allocation11 + $0xc38] sm:$0xff]  ;;  %v5084_v25 = vadd.f32 %v8236_v47, %v5041_v43  ;;  %v6749_v47 = vcombine.low %v2341_v10, %v2345_v53  ;;  %v7723_v10 = vld [vmem:[#allocation14 + $0x18] sm:$0xff]   ;;  %v2727_v53 = vrot.slane %v8248_v20, %v8099_v41  ;;  %v7726_v41 = vld [vmem:[#allocation14 + $0x48] sm:$0xff]  }
 0x3d9   :  { %v7069_v0 = vcombine.low %v2661_v31, %v2665_v51  ;;  %v2577_v27 = vld [vmem:[#allocation11 + $0x978] sm:$0xff] }
 0x3da   :  { %5654 = vmatpush1.bf16.msra.mxu0 %v7109_v55  ;;  %v5173_v55 = vpop.f32.mrf.mxu1  ;;  %v5127_v59 = vadd.f32 %v5126_v7, %v5084_v25  ;;  %v6997_v7 = vcombine.low %v2589_v61, %v2593_v62  ;;  %v2561_v43 = vld [vmem:[#allocation11 + $0x8f8] sm:$0xff] }
 0x3db   :  { %5541 = vmatpush2.bf16.msra.mxu1 %v6789_v46  ;;  %5655 = vmatprep.subr.bf16.mxu0 %v7102_v50  ;;  %v7077_v46 = vcombine.low %v2669_v30, %v2673_v13  ;;  %v6757_v50 = vcombine.low %v2349_v34, %v2353_v35  ;;  %v5174_v60 = vadd.f32 %v5173_v55, %v5131_v32  ;;  %v7718_v13 = vld [vmem:[#allocation14 + $0x68] sm:$0xff]   ;;  %v2565_v35 = vld [vmem:[#allocation11 + $0x918] sm:$0xff] }
 0x3dc   :  { %5542 = vmatprep.subr.bf16.mxu1 %v6782_v58  ;;  %v7070_v58 = vcombine.high %v2661_v31, %v2665_v51  ;;  %v6989_v30 = vcombine.low %v2581_v15, %v2585_v19  ;;  %v2549_v51 = vld [vmem:[#allocation11 + $0x898] sm:$0xff]  ;;  %v5043_v32 = vadd.f32 %v8239_v37, %v2727_v53 }
 0x3dd   :  { %v2553_v52 = vld [vmem:[#allocation11 + $0x8b8] sm:$0xff] }
 0x3de   :  { %5656 = vmatpush1.bf16.msra.mxu0 %v7101_v2  ;;  %v5170_v2 = vadd.f32 %v5169_v16, %v5127_v59  ;;  %v6990_v16 = vcombine.high %v2581_v15, %v2585_v19  ;;  %v7724_v55 = vld [vmem:[#allocation14 + $0x50] sm:$0xff]   ;;  %v5039_v59 = vadd.f32 %v8230_v17, %v2727_v53 }
 0x3df   :  { %5543 = vmatpush2.bf16.msra.mxu1 %v6781_v3  ;;  %5657 = vmatprep.subr.bf16.mxu0 %v7094_v4  ;;  %v7714_v3 = vld [vmem:[#allocation14 + $0x78] sm:$0xff]   ;;  %v6998_v4 = vcombine.high %v2589_v61, %v2593_v62  ;;  %v6957_v61 = vcombine.low %v2549_v51, %v2553_v52  ;;  %v2537_v37 = vld [vmem:[#allocation11 + $0x838] sm:$0xff] }
 0x3e0   :  { %5544 = vmatprep.subr.bf16.mxu1 %v6774_v8  ;;  %v5701_v8 = vmax.f32 %v5174_v60, 0.0  ;;  %v5693_v21 = vmax.f32 %v5170_v2, 0.0  ;;  %v5086_v60 = vadd.f32 %v8242_v9, %v5043_v32  ;;  %v2653_v19 = vld [vmem:[#allocation11 + $0xbd8] sm:$0xff] }
 0x3e1   :  { %v2625_v32 = vld [vmem:[#allocation11 + $0xaf8] sm:$0xff] }
 0x3e2   :  { %5658 = vmatpush1.bf16.msra.mxu0 %v7093_v18  ;;  %v7716_v18 = vld [vmem:[#allocation14 + $0x70] sm:$0xff]   ;;  %v5129_v2 = vadd.f32 %v8252_v28, %v5086_v60  ;;  %v7754_v60 = vld [vmem:[#allocation14 + $0x158] sm:$0xff]  }
 0x3e3   :  { %5545 = vmatpush2.bf16.msra.mxu1 %v6773_v22  ;;  %5659 = vmatprep.subr.bf16.mxu0 %v7086_v26  ;;  %v5709_v22 = vpack.c.bf16 %v5701_v8, %v5693_v21  ;;  %v2573_v26 = vld [vmem:[#allocation11 + $0x958] sm:$0xff]  ;;  %v7728_v8 = vld [vmem:[#allocation14 + $0x40] sm:$0xff]  }
 0x3e4   :  { %5546 = vmatprep.subr.bf16.mxu1 %v6766_v29  ;;  %v7717_v29 = vld [vmem:[#allocation14 + $0x30] sm:$0xff]   ;;  %v6982_v34 = vcombine.high %v2573_v26, %v2577_v27  ;;  %v6981_v49 = vcombine.low %v2573_v26, %v2577_v27  ;;  %v5172_v17 = vadd.f32 %v8254_v24, %v5129_v2  ;;  %v7729_v21 = vld [vmem:[#allocation14] sm:$0xff]  }
 0x3e5   :  { %v2657_v28 = vld [vmem:[#allocation11 + $0xbf8] sm:$0xff] }
 0x3e6   :  { %5660 = vmatpush1.bf16.msra.mxu0 %v7085_v11  ;;  %v2569_v11 = vld [vmem:[#allocation11 + $0x938] sm:$0xff] }
 0x3e7   :  { %5547 = vmatpush2.bf16.msra.mxu1 %v6765_v14  ;;  %5661 = vmatprep.subr.bf16.mxu0 %v7078_v36  ;;  %v7720_v14 = vld [vmem:[#allocation14 + $0x60] sm:$0xff]   ;;  %v2557_v36 = vld [vmem:[#allocation11 + $0x8d8] sm:$0xff] }
 0x3e8   :  { %5548 = vmatprep.subr.bf16.mxu1 %v6758_v44  ;;  %v7722_v44 = vld [vmem:[#allocation14 + $0x58] sm:$0xff]   ;;  %v6966_v31 = vcombine.high %v2557_v36, %v2561_v43  ;;  %v6965_v25 = vcombine.low %v2557_v36, %v2561_v43  ;;  %v2645_v26 = vld [vmem:[#allocation11 + $0xb98] sm:$0xff]  ;;  %v7750_v43 = vld [vmem:[#allocation14 + $0x168] sm:$0xff]  }
 0x3e9   :  { %v2649_v27 = vld [vmem:[#allocation11 + $0xbb8] sm:$0xff] }
 0x3ea   :  { %5662 = vmatpush1.bf16.msra.mxu0 %v7077_v46  ;;  %v6958_v46 = vcombine.high %v2549_v51, %v2553_v52  ;;  %v7053_v36 = vcombine.low %v2645_v26, %v2649_v27  ;;  %v2617_v2 = vld [vmem:[#allocation11 + $0xab8] sm:$0xff] }
 0x3eb   :  { %5549 = vmatpush2.bf16.msra.mxu1 %v6757_v50  ;;  %5663 = vmatprep.subr.bf16.mxu0 %v7070_v58  ;;  %v2541_v50 = vld [vmem:[#allocation11 + $0x858] sm:$0xff] }
 0x3ec   :  { %5550 = vmatprep.subr.bf16.mxu1 %v6750_v33  ;;  %v2545_v58 = vld [vmem:[#allocation11 + $0x878] sm:$0xff] }
 0x3ed   :  { %v7725_v33 = vld [vmem:[#allocation14 + $0x10] sm:$0xff]   ;;  %v6950_v62 = vcombine.high %v2541_v50, %v2545_v58  ;;  %v6949_v9 = vcombine.low %v2541_v50, %v2545_v58 }
 0x3ee   :  { %5664 = vmatpush1.bf16.msra.mxu0 %v7069_v0  ;;  %v5082_v0 = vadd.f32 %v8232_v23, %v5039_v59 }
 0x3ef   :  { %5551 = vmatpush2.bf16.msra.mxu1 %v6749_v47  ;;  %7236 = vmatprep.subr.bf16.mxu0 %v7714_v3  ;;  %v2533_v47 = vld [vmem:[#allocation11 + $0x818] sm:$0xff]  ;;  %v7727_v3 = vld [vmem:[#allocation14 + $0x8] sm:$0xff]  }
 0x3f0   :  { %5606 = vmatprep.subr.bf16.mxu1 %v6998_v4  ;;  %v5125_v4 = vadd.f32 %v8244_v57, %v5082_v0  ;;  %v6942_v15 = vcombine.high %v2533_v47, %v2537_v37  ;;  %v6941_v57 = vcombine.low %v2533_v47, %v2537_v37  ;;  %v2613_v0 = vld [vmem:[#allocation11 + $0xa98] sm:$0xff]  ;;  %v7755_v37 = vld [vmem:[#allocation14 + $0x118] sm:$0xff]  }
 0x3f1   :  { %5682 = vmatmul.mubr.bf16.vlgmr.msra.gmra.mxu0 %v8207_v56  ;;  %v7719_v56 = vld [vmem:[#allocation14 + $0x28] sm:$0xff]  }
 0x3f2   :  { %5553 = vmatmul.mubr.bf16.vlgmr.msra.gmra.mxu1 %v8156_v54  ;;  %7237 = vmatpush3.bf16.msra.mxu0 %v7715_v12  ;;  %v6974_v54 = vcombine.high %v2565_v35, %v2569_v11  ;;  %v8270_v12 = vpop.f32.mrf.mxu1  ;;  %v5168_v23 = vadd.f32 %v8246_v1, %v5125_v4  ;;  %v7747_v1 = vld [vmem:[#allocation14 + $0x138] sm:$0xff]  }
 0x3f3   :  { %6267 = vmatprep.mubr.bf16.mxu0 %v5709_v22  ;;  %5607 = vmatpush1.bf16.msra.mxu1 %v6997_v7  ;;  %v5700_v7 = vmax.f32 %v5172_v17, 0.0  ;;  %v7062_v22 = vcombine.high %v2653_v19, %v2657_v28  ;;  %v7756_v17 = vld [vmem:[#allocation14 + $0x150] sm:$0xff]  }
 0x3f4   :  { %5638 = vmatprep.mubr.bf16.mxu1 %v8194_v45  ;;  %7238 = vmatprep.subr.bf16.mxu0 %v7716_v18  ;;  %v6973_v45 = vcombine.low %v2565_v35, %v2569_v11  ;;  %v7746_v18 = vld [vmem:[#allocation14 + $0x178] sm:$0xff]   ;;  %v8273_v24 = vpop.f32.mrf.mxu1  ;;  %v7054_v11 = vcombine.high %v2645_v26, %v2649_v27  ;;  %v2597_v27 = vld [vmem:[#allocation11 + $0xa18] sm:$0xff] }
 0x3f5   :  { %5608 = vmatprep.subr.bf16.mxu1 %v6990_v16  ;;  %v5692_v16 = vmax.f32 %v5168_v23, 0.0  ;;  %v2605_v23 = vld [vmem:[#allocation11 + $0xa58] sm:$0xff] }
 0x3f6   :  { %7239 = vmatpush3.bf16.msra.mxu0 %v7717_v29  ;;  %v8275_v29 = vpop.f32.mrf.mxu0  ;;  %v8277_v35 = vpop.f32.mrf.mxu1 }
 0x3f7   :  { %5609 = vmatpush1.bf16.msra.mxu1 %v6989_v30  ;;  %7240 = vmatprep.subr.bf16.mxu0 %v7718_v13  ;;  %v5708_v30 = vpack.c.bf16 %v5700_v7, %v5692_v16  ;;  %v7061_v13 = vcombine.low %v2653_v19, %v2657_v28  ;;  %v2609_v19 = vld [vmem:[#allocation11 + $0xa78] sm:$0xff]  ;;  %v7021_v7 = vcombine.low %v2613_v0, %v2617_v2 }
 0x3f8   :  { %5610 = vmatprep.subr.bf16.mxu1 %v6982_v34  ;;  %v7748_v34 = vld [vmem:[#allocation14 + $0x170] sm:$0xff]  }
 0x3fa   :  { %7241 = vmatpush3.bf16.msra.mxu0 %v7719_v56  ;;  %v2637_v56 = vld [vmem:[#allocation11 + $0xb58] sm:$0xff] }
 0x3fb   :  { %5611 = vmatpush1.bf16.msra.mxu1 %v6981_v49  ;;  %7242 = vmatprep.subr.bf16.mxu0 %v7720_v14  ;;  %v2641_v49 = vld [vmem:[#allocation11 + $0xb78] sm:$0xff]  ;;  %v8279_v14 = vpop.f32.mrf.mxu0 }
 0x3fc   :  { %5612 = vmatprep.subr.bf16.mxu1 %v6974_v54  ;;  %v7749_v54 = vld [vmem:[#allocation14 + $0x130] sm:$0xff]   ;;  %v7045_v53 = vcombine.low %v2637_v56, %v2641_v49 }
 0x3fd   :  { %v8281_v51 = vpop.f32.mrf.mxu0 }
 0x3fe   :  { %7243 = vmatpush3.bf16.msra.mxu0 %v7721_v39  ;;  %v5216_v39 = vpop.f32.mrf.mxu1 }
 0x3ff   :  { %5613 = vmatpush1.bf16.msra.mxu1 %v6973_v45  ;;  %7244 = vmatprep.subr.bf16.mxu0 %v7722_v44  ;;  %v7046_v45 = vcombine.high %v2637_v56, %v2641_v49  ;;  %v2629_v44 = vld [vmem:[#allocation11 + $0xb18] sm:$0xff]  ;;  %v5259_v50 = vpop.f32.mrf.mxu0 }
 0x400   :  { %5614 = vmatprep.subr.bf16.mxu1 %v6966_v31  ;;  %v2633_v31 = vld [vmem:[#allocation11 + $0xb38] sm:$0xff] }
 0x401   :  { %v7037_v59 = vcombine.low %v2629_v44, %v2633_v31 }
 0x402   :  { %7245 = vmatpush3.bf16.msra.mxu0 %v7723_v10  ;;  %v7751_v10 = vld [vmem:[#allocation14 + $0x128] sm:$0xff]  }
 0x403   :  { %5615 = vmatpush1.bf16.msra.mxu1 %v6965_v25  ;;  %7246 = vmatprep.subr.bf16.mxu0 %v7724_v55  ;;  %v7752_v25 = vld [vmem:[#allocation14 + $0x160] sm:$0xff]   ;;  %v7038_v55 = vcombine.high %v2629_v44, %v2633_v31  ;;  %v7731_v44 = vld [vmem:[#allocation14 + $0xb8] sm:$0xff]   ;;  %v7732_v31 = vld [vmem:[#allocation14 + $0xf0] sm:$0xff]  }
 0x404   :  { %5616 = vmatprep.subr.bf16.mxu1 %v6958_v46  ;;  %v2621_v46 = vld [vmem:[#allocation11 + $0xad8] sm:$0xff] }
 0x405   :  { %v7029_v4 = vcombine.low %v2621_v46, %v2625_v32 }
 0x406   :  { %7247 = vmatpush3.bf16.msra.mxu0 %v7725_v33  ;;  %v7753_v33 = vld [vmem:[#allocation14 + $0x120] sm:$0xff]  }
 0x407   :  { %5617 = vmatpush1.bf16.msra.mxu1 %v6957_v61  ;;  %7248 = vmatprep.subr.bf16.mxu0 %v7726_v41  ;;  %v8285_v61 = vpop.f32.mrf.mxu0  ;;  %v7030_v41 = vcombine.high %v2621_v46, %v2625_v32  ;;  %v7736_v46 = vld [vmem:[#allocation14 + $0xe0] sm:$0xff]  }
 0x408   :  { %5618 = vmatprep.subr.bf16.mxu1 %v6950_v62  ;;  %v2739_v62 = vrot.slane %v8248_v20, %v8096_v40  ;;  %v7757_v40 = vld [vmem:[#allocation14 + $0x110] sm:$0xff]   ;;  %v7737_v32 = vld [vmem:[#allocation14 + $0xa0] sm:$0xff]  }
 0x40a   :  { %7249 = vmatpush3.bf16.msra.mxu0 %v7727_v3  ;;  %v5217_v3 = vadd.f32 %v5216_v39, %v2739_v62 }
 0x40b   :  { %5619 = vmatpush1.bf16.msra.mxu1 %v6949_v9  ;;  %7250 = vmatprep.subr.bf16.mxu0 %v7728_v8  ;;  %v5341_v9 = vpop.f32.mrf.mxu0  ;;  %v7022_v8 = vcombine.high %v2613_v0, %v2617_v2 }
 0x40c   :  { %5620 = vmatprep.subr.bf16.mxu1 %v6942_v15  ;;  %v5213_v15 = vadd.f32 %v8273_v24, %v2739_v62  ;;  %v7759_v24 = vld [vmem:[#allocation14 + $0x108] sm:$0xff]   ;;  %v7741_v62 = vld [vmem:[#allocation14 + $0x90] sm:$0xff]  }
 0x40e   :  { %7251 = vmatpush3.bf16.msra.mxu0 %v7729_v21  ;;  %v5260_v21 = vadd.f32 %v5259_v50, %v5217_v3  ;;  %v5256_v16 = vadd.f32 %v8279_v14, %v5213_v15  ;;  %v7730_v14 = vld [vmem:[#allocation14 + $0xf8] sm:$0xff]   ;;  %v2735_v50 = vrot.slane %v8248_v20, %v8102_v42  ;;  %v7742_v42 = vld [vmem:[#allocation14 + $0xc8] sm:$0xff]   ;;  %v7764_v15 = vld [vmem:[#allocation14 + $0x1f0] sm:$0xff]  }
 0x40f   :  { %5621 = vmatpush1.bf16.msra.mxu1 %v6941_v57  ;;  %7280 = vmatprep.subr.bf16.mxu0 %v7746_v18  ;;  %v7758_v57 = vld [vmem:[#allocation14 + $0x148] sm:$0xff]   ;;  %v8292_v18 = vpop.f32.mrf.mxu0 }
 0x410   :  { %5622 = vmatprep.subr.bf16.mxu1 %v7062_v22  ;;  %v7014_v22 = vcombine.high %v2605_v23, %v2609_v19 }
 0x411   :  { %6268 = vmatmul.mubr.bf16.vlgmr.msra.gmra.mxu0 %v5708_v30 }
 0x412   :  { %7281 = vmatpush3.bf16.msra.mxu0 %v7747_v1  ;;  %v8283_v52 = vpop.f32.mrf.mxu1  ;;  %v2601_v1 = vld [vmem:[#allocation11 + $0xa38] sm:$0xff] }
 0x413   :  { %5623 = vmatpush2.bf16.msra.mxu1 %v7061_v13  ;;  %7282 = vmatprep.subr.bf16.mxu0 %v7748_v34  ;;  %v7013_v13 = vcombine.low %v2605_v23, %v2609_v19  ;;  %v7760_v34 = vld [vmem:[#allocation14 + $0x140] sm:$0xff]   ;;  %v7006_v56 = vcombine.high %v2597_v27, %v2601_v1  ;;  %v7765_v23 = vld [vmem:[#allocation14 + $0x1b0] sm:$0xff]   ;;  %v7766_v19 = vld [vmem:[#allocation14 + $0x1e8] sm:$0xff]  }
 0x414   :  { %5624 = vmatprep.subr.bf16.mxu1 %v7054_v11  ;;  %v5298_v58 = vpop.f32.mrf.mxu1  ;;  %v5345_v11 = vpop.f32.mrf.mxu0 }
 0x415   :  { %v5299_v30 = vadd.f32 %v5298_v58, %v5256_v16  ;;  %v7738_v58 = vld [vmem:[#allocation14 + $0xd8] sm:$0xff]  }
 0x416   :  { %7283 = vmatpush3.bf16.msra.mxu0 %v7749_v54  ;;  %v8289_v47 = vpop.f32.mrf.mxu1  ;;  %v7761_v54 = vld [vmem:[#allocation14 + $0x100] sm:$0xff]  }
 0x417   :  { %5625 = vmatpush2.bf16.msra.mxu1 %v7053_v36  ;;  %7284 = vmatprep.subr.bf16.mxu0 %v7750_v43  ;;  %v5342_v36 = vadd.f32 %v5341_v9, %v5299_v30  ;;  %v7005_v43 = vcombine.low %v2597_v27, %v2601_v1  ;;  %v2743_v27 = vrot.slane %v8248_v20, %v744_v6 }
 0x418   :  { %5626 = vmatprep.subr.bf16.mxu1 %v7046_v45  ;;  %v5302_v28 = vpop.f32.mrf.mxu1 }
 0x419   :  { %v5303_v26 = vadd.f32 %v5302_v28, %v5260_v21  ;;  %v5695_v45 = vmax.f32 %v5342_v36, 0.0  ;;  %v7770_v36 = vld [vmem:[#allocation14 + $0x1d8] sm:$0xff]  }
 0x41a   :  { %7285 = vmatpush3.bf16.msra.mxu0 %v7751_v10 }
 0x41b   :  { %5627 = vmatpush2.bf16.msra.mxu1 %v7045_v53  ;;  %7286 = vmatprep.subr.bf16.mxu0 %v7752_v25  ;;  %v5346_v49 = vadd.f32 %v5345_v11, %v5303_v26  ;;  %v7733_v53 = vld [vmem:[#allocation14 + $0xb0] sm:$0xff]   ;;  %v7734_v25 = vld [vmem:[#allocation14 + $0xe8] sm:$0xff]   ;;  %v2747_v26 = vrot.slane %v8248_v20, %v748_v5 }
 0x41c   :  { %5628 = vmatprep.subr.bf16.mxu1 %v7038_v55  ;;  %v7735_v55 = vld [vmem:[#allocation14 + $0xa8] sm:$0xff]  }
 0x41d   :  { %v5703_v39 = vmax.f32 %v5346_v49, 0.0 }
 0x41e   :  { %7287 = vmatpush3.bf16.msra.mxu0 %v7753_v33  ;;  %v5215_v33 = vadd.f32 %v8277_v35, %v2735_v50  ;;  %v7743_v35 = vld [vmem:[#allocation14 + $0x88] sm:$0xff]  }
 0x41f   :  { %5629 = vmatpush2.bf16.msra.mxu1 %v7037_v59  ;;  %7288 = vmatprep.subr.bf16.mxu0 %v7754_v60  ;;  %v5711_v10 = vpack.c.bf16 %v5703_v39, %v5695_v45  ;;  %v5211_v59 = vadd.f32 %v8270_v12, %v2735_v50  ;;  %v7740_v60 = vld [vmem:[#allocation14 + $0xd0] sm:$0xff]   ;;  %v7744_v12 = vld [vmem:[#allocation14 + $0xc0] sm:$0xff]   ;;  %v7771_v45 = vld [vmem:[#allocation14 + $0x198] sm:$0xff]  }
 0x420   :  { %5630 = vmatprep.subr.bf16.mxu1 %v7030_v41  ;;  %v5258_v41 = vadd.f32 %v8281_v51, %v5215_v33  ;;  %v7745_v51 = vld [vmem:[#allocation14 + $0x80] sm:$0xff]  }
 0x421   :  { %v5254_v0 = vadd.f32 %v8275_v29, %v5211_v59 }
 0x422   :  { %7289 = vmatpush3.bf16.msra.mxu0 %v7755_v37  ;;  %v5301_v2 = vadd.f32 %v8289_v47, %v5258_v41  ;;  %v7762_v47 = vld [vmem:[#allocation14 + $0x1f8] sm:$0xff]  }
 0x423   :  { %5631 = vmatpush2.bf16.msra.mxu1 %v7029_v4  ;;  %7290 = vmatprep.subr.bf16.mxu0 %v7756_v17  ;;  %v5297_v37 = vadd.f32 %v8283_v52, %v5254_v0  ;;  %v5382_v52 = vpop.f32.mrf.mxu0 }
 0x424   :  { %5632 = vmatprep.subr.bf16.mxu1 %v7022_v8  ;;  %v5344_v3 = vadd.f32 %v8292_v18, %v5301_v2  ;;  %v7763_v8 = vld [vmem:[#allocation14 + $0x1b8] sm:$0xff]  }
 0x425   :  { %v5340_v4 = vadd.f32 %v8285_v61, %v5297_v37  ;;  %v5384_v28 = vpop.f32.mrf.mxu0  ;;  %v7767_v61 = vld [vmem:[#allocation14 + $0x1a8] sm:$0xff]  }
 0x426   :  { %7291 = vmatpush3.bf16.msra.mxu0 %v7757_v40  ;;  %v5702_v17 = vmax.f32 %v5344_v3, 0.0  ;;  %v7768_v40 = vld [vmem:[#allocation14 + $0x1e0] sm:$0xff]   ;;  %v5385_v30 = vadd.f32 %v5384_v28, %v2747_v26 }
 0x427   :  { %5633 = vmatpush2.bf16.msra.mxu1 %v7021_v7  ;;  %7292 = vmatprep.subr.bf16.mxu0 %v7758_v57  ;;  %v5694_v9 = vmax.f32 %v5340_v4, 0.0  ;;  %v5386_v21 = vpop.f32.mrf.mxu0  ;;  %v7769_v57 = vld [vmem:[#allocation14 + $0x1a0] sm:$0xff]  }
 0x428   :  { %5634 = vmatprep.subr.bf16.mxu1 %v7014_v22  ;;  %v7777_v3 = vld [vmem:[#allocation14 + $0x180] sm:$0xff]  }
 0x429   :  { %v5710_v29 = vpack.c.bf16 %v5702_v17, %v5694_v9  ;;  %v5388_v18 = vpop.f32.mrf.mxu0  ;;  %v2754_v9 = vsub.s32 7, %v8090_v38 }
 0x42a   :  { %7293 = vmatpush3.bf16.msra.mxu0 %v7759_v24 }
 0x42b   :  { %5635 = vmatpush2.bf16.msra.mxu1 %v7013_v13  ;;  %7294 = vmatprep.subr.bf16.mxu0 %v7760_v34  ;;  %v5387_v13 = vadd.f32 %v5386_v21, %v2743_v27  ;;  %v5383_v34 = vadd.f32 %v5382_v52, %v2743_v27  ;;  %v2751_v52 = vrot.slane %v8248_v20, %v752_v63 }
 0x42c   :  { %5636 = vmatprep.subr.bf16.mxu1 %v7006_v56  ;;  %v5389_v56 = vadd.f32 %v5388_v18, %v2747_v26 }
 0x42e   :  { %7295 = vmatpush3.bf16.msra.mxu0 %v7761_v54 }
 0x42f   :  { %5637 = vmatpush2.bf16.msra.mxu1 %v7005_v43 }
 0x430   :  { %7258 = vmatprep.subr.bf16.mxu1 %v7730_v14 }
 0x432   :  { %5639 = vmatmul.mubr.bf16.vlgmr.msra.gmra.mxu1 %v8198_v48  ;;  %v7739_v48 = vld [vmem:[#allocation14 + $0x98] sm:$0xff]  }
 0x433   :  { %7259 = vmatpush3.bf16.msra.mxu1 %v7731_v44  ;;  %6308 = vmatprep.mubr.bf16.mxu1 %v5711_v10  ;;  %v7772_v10 = vld [vmem:[#allocation14 + $0x1d0] sm:$0xff]  }
 0x434   :  { %7260 = vmatprep.subr.bf16.mxu1 %v7732_v31 }
 0x437   :  { %7261 = vmatpush3.bf16.msra.mxu1 %v7733_v53 }
 0x438   :  { %7262 = vmatprep.subr.bf16.mxu1 %v7734_v25 }
 0x43b   :  { %7263 = vmatpush3.bf16.msra.mxu1 %v7735_v55 }
 0x43c   :  { %7264 = vmatprep.subr.bf16.mxu1 %v7736_v46  ;;  %v7773_v46 = vld [vmem:[#allocation14 + $0x190] sm:$0xff]  }
 0x43f   :  { %7265 = vmatpush3.bf16.msra.mxu1 %v7737_v32 }
 0x440   :  { %7266 = vmatprep.subr.bf16.mxu1 %v7738_v58 }
 0x443   :  { %7267 = vmatpush3.bf16.msra.mxu1 %v7739_v48 }
 0x444   :  { %7268 = vmatprep.subr.bf16.mxu1 %v7740_v60  ;;  %v7774_v60 = vld [vmem:[#allocation14 + $0x1c8] sm:$0xff]  }
 0x447   :  { %7269 = vmatpush3.bf16.msra.mxu1 %v7741_v62  ;;  %v7775_v62 = vld [vmem:[#allocation14 + $0x188] sm:$0xff]  }
 0x448   :  { %7270 = vmatprep.subr.bf16.mxu1 %v7742_v42 }
 0x44b   :  { %7271 = vmatpush3.bf16.msra.mxu1 %v7743_v35  ;;  %v7776_v35 = vld [vmem:[#allocation14 + $0x1c0] sm:$0xff]  }
 0x44c   :  { %7272 = vmatprep.subr.bf16.mxu1 %v7744_v12 }
 0x44f   :  { %7273 = vmatpush3.bf16.msra.mxu1 %v7745_v51 }
 0x450   :  { %7302 = vmatprep.subr.bf16.mxu1 %v7762_v47 }
 0x451   :  { %v5468_v16 = vpop.f32.mrf.mxu0 }
 0x452   :  { %6309 = vmatmul.mubr.bf16.vlgmr.msra.gmra.mxu1 %v5710_v29  ;;  %v5425_v7 = vpop.f32.mrf.mxu1 }
 0x453   :  { %7303 = vmatpush3.bf16.msra.mxu1 %v7763_v8  ;;  %v5470_v24 = vpop.f32.mrf.mxu0  ;;  %v5426_v43 = vadd.f32 %v5425_v7, %v5383_v34  ;;  %v2755_v8 = vrot.slane %v8248_v20, %v2754_v9 }
 0x454   :  { %7304 = vmatprep.subr.bf16.mxu1 %v7764_v15  ;;  %v5427_v22 = vpop.f32.mrf.mxu1 }
 0x455   :  { %v5428_v49 = vadd.f32 %v5427_v22, %v5385_v30  ;;  %v5472_v14 = vpop.f32.mrf.mxu0  ;;  %v5469_v25 = vadd.f32 %v5468_v16, %v5426_v43 }
 0x456   :  { %v5429_v1 = vpop.f32.mrf.mxu1 }
 0x457   :  { %7305 = vmatpush3.bf16.msra.mxu1 %v7765_v23  ;;  %v5430_v54 = vadd.f32 %v5429_v1, %v5387_v13  ;;  %v5471_v31 = vadd.f32 %v5470_v24, %v5428_v49  ;;  %v5474_v53 = vpop.f32.mrf.mxu0 }
 0x458   :  { %7306 = vmatprep.subr.bf16.mxu1 %v7766_v19  ;;  %v5431_v11 = vpop.f32.mrf.mxu1 }
 0x459   :  { %v5432_v44 = vadd.f32 %v5431_v11, %v5389_v56  ;;  %v5473_v6 = vadd.f32 %v5472_v14, %v5430_v54 }
 0x45b   :  { %7307 = vmatpush3.bf16.msra.mxu1 %v7767_v61  ;;  %v5475_v58 = vadd.f32 %v5474_v53, %v5432_v44 }
 0x45c   :  { %7308 = vmatprep.subr.bf16.mxu1 %v7768_v40 }
 0x45f   :  { %7309 = vmatpush3.bf16.msra.mxu1 %v7769_v57 }
 0x460   :  { %7310 = vmatprep.subr.bf16.mxu1 %v7770_v36 }
 0x463   :  { %7311 = vmatpush3.bf16.msra.mxu1 %v7771_v45 }
 0x464   :  { %7312 = vmatprep.subr.bf16.mxu1 %v7772_v10 }
 0x467   :  { %7313 = vmatpush3.bf16.msra.mxu1 %v7773_v46 }
 0x468   :  { %7314 = vmatprep.subr.bf16.mxu1 %v7774_v60 }
 0x46b   :  { %7315 = vmatpush3.bf16.msra.mxu1 %v7775_v62 }
 0x46c   :  { %7316 = vmatprep.subr.bf16.mxu1 %v7776_v35 }
 0x46f   :  { %7317 = vmatpush3.bf16.msra.mxu1 %v7777_v3 }
 0x472   :  { %v5511_v39 = vpop.f32.mrf.mxu1 }
 0x473   :  { %v5512_v33 = vadd.f32 %v5511_v39, %v5469_v25 }
 0x474   :  { %v5513_v5 = vpop.f32.mrf.mxu1 }
 0x475   :  { %v5514_v32 = vadd.f32 %v5513_v5, %v5471_v31  ;;  %v5696_v42 = vmax.f32 %v5512_v33, 0.0  ;;  %v7127_v33 = vld [vmem:[#allocation16] ss:$0 sm:$0xff] }
 0x476   :  { %v5515_v55 = vpop.f32.mrf.mxu1 }
 0x477   :  { %v5516_v50 = vadd.f32 %v5515_v55, %v5473_v6  ;;  %v5697_v0 = vmax.f32 %v5514_v32, 0.0 }
 0x478   :  { %v5517_v48 = vpop.f32.mrf.mxu1 }
 0x479   :  { %v5518_v59 = vadd.f32 %v5517_v48, %v5475_v58  ;;  %v5704_v41 = vmax.f32 %v5516_v50, 0.0 }
 0x47b   :  { %v5705_v2 = vmax.f32 %v5518_v59, 0.0  ;;  %v5712_v12 = vpack.c.bf16 %v5704_v41, %v5696_v42 }
 0x47d   :  { %v5713_v37 = vpack.c.bf16 %v5705_v2, %v5697_v0 }
 0x47f   :  { %6349 = vmatprep.mubr.bf16.mxu0 %v5713_v37 }
 0x480   :  { %6350 = vmatmul.mubr.bf16.vlgmr.msra.gmra.mxu0 %v5712_v12 }
 0x491   :  { %v5597_v4 = vpop.f32.mrf.mxu0 }
 0x493   :  { %v5599_v51 = vpop.f32.mrf.mxu0 }
 0x495   :  { %v5601_v29 = vpop.f32.mrf.mxu0 }
 0x497   :  { %v5603_v15 = vpop.f32.mrf.mxu0 }
 0x4b1   :  { %v5683_v19 = vpop.f32.mrf.mxu0 }
 0x4b2   :  { %v5554_v17 = vpop.f32.mrf.mxu1 }
 0x4b3   :  { %v5555_v61 = vadd.f32 %v5554_v17, %v2751_v52  ;;  %v5685_v7 = vpop.f32.mrf.mxu0 }
 0x4b4   :  { %v5556_v47 = vpop.f32.mrf.mxu1 }
 0x4b5   :  { %v5557_v28 = vadd.f32 %v5556_v47, %v2755_v8  ;;  %v5598_v16 = vadd.f32 %v5597_v4, %v5555_v61  ;;  %v5687_v24 = vpop.f32.mrf.mxu0 }
 0x4b6   :  { %v5558_v23 = vpop.f32.mrf.mxu1 }
 0x4b7   :  { %v5559_v21 = vadd.f32 %v5558_v23, %v2751_v52  ;;  %v5600_v22 = vadd.f32 %v5599_v51, %v5557_v28  ;;  %v5689_v49 = vpop.f32.mrf.mxu0 }
 0x4b8   :  { %v5560_v40 = vpop.f32.mrf.mxu1 }
 0x4b9   :  { %v5561_v18 = vadd.f32 %v5560_v40, %v2755_v8  ;;  %v5602_v1 = vadd.f32 %v5601_v29, %v5559_v21 }
 0x4bb   :  { %v5604_v34 = vadd.f32 %v5603_v15, %v5561_v18 }
 0x4d1   :  { %v7252_v31 = vpop.f32.mrf.mxu0 }
 0x4d3   :  { %v7253_v6 = vpop.f32.mrf.mxu0 }
 0x4d4   :  { %v7254_v58 = vadd.f32 %v7253_v6, %v7252_v31 }
 0x4d5   :  { %v7255_v10 = vpop.f32.mrf.mxu0 }
 0x4d6   :  { %v6270_v41 = vadd.f32 %v7254_v58, %v7127_v33 }
 0x4d7   :  { %v7256_v53 = vpop.f32.mrf.mxu0 }
 0x4d8   :  { %v7257_v62 = vadd.f32 %v7256_v53, %v7255_v10 }
 0x4da   :  { %v6273_v12 = vadd.f32 %v7257_v62, %v7127_v33 }
 0x4f2   :  { %v5640_v57 = vpop.f32.mrf.mxu1 }
 0x4f3   :  { %v5641_v30 = vadd.f32 %v5640_v57, %v5598_v16 }
 0x4f4   :  { %v5642_v26 = vpop.f32.mrf.mxu1 }
 0x4f5   :  { %v5643_v27 = vadd.f32 %v5642_v26, %v5600_v22  ;;  %v5684_v54 = vadd.f32 %v5683_v19, %v5641_v30 }
 0x4f6   :  { %v5644_v13 = vpop.f32.mrf.mxu1 }
 0x4f7   :  { %v5645_v38 = vadd.f32 %v5644_v13, %v5602_v1  ;;  %v5686_v20 = vadd.f32 %v5685_v7, %v5643_v27  ;;  %v5698_v45 = vmax.f32 %v5684_v54, 0.0 }
 0x4f8   :  { %v5646_v63 = vpop.f32.mrf.mxu1 }
 0x4f9   :  { %v5688_v11 = vadd.f32 %v5687_v24, %v5645_v38  ;;  %v5647_v56 = vadd.f32 %v5646_v63, %v5604_v34  ;;  %v5699_v14 = vmax.f32 %v5686_v20, 0.0 }
 0x4fb   :  { %v5690_v36 = vadd.f32 %v5689_v49, %v5647_v56  ;;  %v5706_v43 = vmax.f32 %v5688_v11, 0.0 }
 0x4fd   :  { %v5707_v39 = vmax.f32 %v5690_v36, 0.0  ;;  %v5714_v5 = vpack.c.bf16 %v5706_v43, %v5698_v45 }
 0x4ff   :  { %v5715_v44 = vpack.c.bf16 %v5707_v39, %v5699_v14 }
 0x501   :  { %6390 = vmatprep.mubr.bf16.mxu1 %v5715_v44 }
 0x502   :  { %6391 = vmatmul.mubr.bf16.vlgmr.msra.gmra.mxu1 %v5714_v5 }
 0x512   :  { %v7274_v25 = vpop.f32.mrf.mxu1 }
 0x514   :  { %v7275_v46 = vpop.f32.mrf.mxu1 }
 0x515   :  { %v7276_v59 = vadd.f32 %v7275_v46, %v7274_v25 }
 0x516   :  { %v7277_v50 = vpop.f32.mrf.mxu1 }
 0x517   :  { %v6311_v37 = vadd.f32 %v7276_v59, %v6270_v41 }
 0x518   :  { %v7278_v60 = vpop.f32.mrf.mxu1 }
 0x519   :  { %v7279_v35 = vadd.f32 %v7278_v60, %v7277_v50 }
 0x51b   :  { %v6314_v29 = vadd.f32 %v7279_v35, %v6273_v12 }
 0x540   :  { %v7296_v55 = vpop.f32.mrf.mxu0 }
 0x542   :  { %v7297_v32 = vpop.f32.mrf.mxu0 }
 0x543   :  { %v7298_v0 = vadd.f32 %v7297_v32, %v7296_v55 }
 0x544   :  { %v7299_v48 = vpop.f32.mrf.mxu0 }
 0x545   :  { %v6352_v4 = vadd.f32 %v7298_v0, %v6311_v37 }
 0x546   :  { %v7300_v2 = vpop.f32.mrf.mxu0 }
 0x547   :  { %v7301_v51 = vadd.f32 %v7300_v2, %v7299_v48 }
 0x549   :  { %v6355_v15 = vadd.f32 %v7301_v51, %v6314_v29 }
 0x5c2   :  { %v7318_v42 = vpop.f32.mrf.mxu1 }
 0x5c4   :  { %v7319_v3 = vpop.f32.mrf.mxu1 }
 0x5c5   :  { %v7320_v17 = vadd.f32 %v7319_v3, %v7318_v42 }
 0x5c6   :  { %v7321_v9 = vpop.f32.mrf.mxu1 }
 0x5c7   :  { %v6393_v47 = vadd.f32 %v7320_v17, %v6352_v4 }
 0x5c8   :  { %v7322_v8 = vpop.f32.mrf.mxu1 }
 0x5c9   :  { %6399 = vst [vmem:[#allocation17] sm:$0xff] %v6393_v47  ;;  %v7323_v52 = vadd.f32 %v7322_v8, %v7321_v9 }
 0x5cb   :  { %v6396_v23 = vadd.f32 %v7323_v52, %v6355_v15 }
 0x5cd   :  { %6400 = vst [vmem:[#allocation17 + $0x8] sm:$0xff] %v6396_v23 }
 0x5ce   :  { %7969 = shalt.err (!%p7966_p7)
}
 0x5cf   :  { %s8009_s14 = smov 128   ;;  %s8010_s15 = smov 8  }
 0x5d0   :  { %6412 = dma.vmem_to_hbm [thread:$0]  %s6407_s8, 256, %s8329_s9, [#allocation4], %s8009_s14, %s8009_s14, %s8010_s15  }
 0x5d1   :  { %7988 = dma.done.wait [#allocation4], 256  }
 0x5d2   :  { %7989 = vsyncadd [#allocation4], 4294967040 }
 0x5d3   :  { %6416 = vsyncpa [#allocation3], 1 }
 0x5d4   :  { %6417 = vsyncpa [#allocation6], 1 }
 0x5d5   :  { %6418 = vsyncpa [#allocation9], 1 }
 0x5d6   :  { %6419 = vsyncpa [#allocation12], 1 }
 0x5d7   :  { %6420 = vsyncpa [#allocation15], 1 }
 0x5d8   :  { %6421 = vsyncpa [#allocation4], 1 }

</bundles_post_ra>
